<compile_context>
chip_gen: v5e
topology: v5e:2x2
jax: 0.10.0
libtpu: 0.0.40
codegen_flags: <defaults>
</compile_context>

<pallas_src>
import functools

import jax
import jax.numpy as jnp
from jax.experimental import pallas as pl
from jax.experimental.pallas import tpu as pltpu

LANES = 128
SUBLANES = 8


def _round_up(x, m):
    return (x + m - 1) // m * m


def _vmem_budget_bytes():
    """Total VMEM budget for the pipelined blocks of one pallas_call.

    Scaled by the generation's physical VMEM (128 MiB on v5e/v6e, 64 MiB on
    v7x) but always kept below the default scoped-VMEM limit so no flags are
    required."""
    try:
        cap = int(pltpu.get_tpu_info().vmem_capacity_bytes)
    except Exception:  # interpret mode / older API: be conservative
        cap = 0
    if cap >= (96 << 20):      # 128 MiB-class parts (v5e / v6e)
        return 16 << 20
    return 8 << 20             # 64 MiB-class parts (v7x) or unknown


def _pick_row_tile(r, bytes_per_row, budget_bytes):
    """Largest multiple-of-8 sublane-row count that divides `r` and whose
    pipelined blocks (bytes_per_row already includes double buffering and the
    128-lane row width) fit the VMEM budget."""
    cap = max(SUBLANES, budget_bytes // max(bytes_per_row, 1))
    t = min(r, cap)
    t -= t % SUBLANES
    while t >= SUBLANES:
        if r % t == 0:
            return t
        t -= SUBLANES
    return SUBLANES  # r is always a multiple of 8 here, so 8 divides r


# ---------------------------------------------------------------------------
# Kernel 1: channel mean / max.
#   x_ref : (C, TILE_R, 128)  -- spatial on (sublane, lane), channels leading
#   am_ref: (2, TILE_R, 128)  -- row 0 = mean, row 1 = max (lane-dense stores)
# Reducing over the leading C axis is C-1 dense VPU adds / maxes of
# (TILE_R, 128) slabs — no XLU cross-lane reduce.
# ---------------------------------------------------------------------------
def _chan_stats_kernel(x_ref, am_ref):
    c = x_ref.shape[0]
    x0 = x_ref[0].astype(jnp.float32)
    ssum = x0
    smax = x0
    for ci in range(1, c):
        xi = x_ref[ci].astype(jnp.float32)
        ssum = ssum + xi
        smax = jnp.maximum(smax, xi)
    am_ref[0] = ssum * (1.0 / c)
    am_ref[1] = smax


# ---------------------------------------------------------------------------
# Kernel 2: 7x7x7 conv (2 -> 1 ch) as shifted VPU FMAs + fused SiLU self-gate.
#   Grid = (N, D, k); kd is the last ("arbitrary") reduction axis.
#   w_ref  : SMEM (k*k*k*2,) f32, flattened in (kd, kh, kw, c) order
#   amp_ref: VMEM (2, Hp, Wp)  -- padded [avg, max] plane at depth d + kd
#   o_ref  : (H, W) output plane (same block for every kd step)
#   acc_ref: (H, W) f32 accumulator scratch
# ---------------------------------------------------------------------------
def _conv_gate_kernel(w_ref, amp_ref, o_ref, acc_ref, *, k, h, w):
    kd = pl.program_id(2)

    @pl.when(kd == 0)
    def _():
        acc_ref[...] = jnp.zeros_like(acc_ref)

    plane = amp_ref[...]                       # (2, Hp, Wp) f32
    base = kd * (k * k * 2)                    # dynamic SMEM offset for this kd
    acc = jnp.zeros((h, w), jnp.float32)
    for kh in range(k):
        for kw in range(k):
            for c in range(2):
                tap = w_ref[base + (kh * k + kw) * 2 + c]   # SMEM scalar
                acc = acc + tap * plane[c, kh:kh + h, kw:kw + w]
    acc_ref[...] += acc

    @pl.when(kd == pl.num_programs(2) - 1)
    def _():
        att = acc_ref[...]
        o_ref[...] = (att * jax.nn.sigmoid(att)).astype(o_ref.dtype)


# ---------------------------------------------------------------------------
# Wrapper: (N, C, D, H, W) -> (N, 1, D, H, W).  Glue does only reshapes and the
# zero-pad of the tiny 2-channel map.
# ---------------------------------------------------------------------------
def spatial_attention_3d(x_ncdhw, w_dhwio, *, kernel_size=7):
    n, c, d, h, w = x_ncdhw.shape
    k = kernel_size
    p = k // 2
    assert w_dhwio.shape == (k, k, k, 2, 1), w_dhwio.shape

    # ---- stage 1: channel mean / max, spatial flattened onto (rows, 128) ----
    s = d * h * w
    s_pad = _round_up(s, SUBLANES * LANES)     # rows always a multiple of 8
    r = s_pad // LANES

    xs = x_ncdhw.reshape(n, c, s)
    if s_pad != s:
        xs = jnp.pad(xs, ((0, 0), (0, 0), (0, s_pad - s)))
    xr = xs.reshape(n, c, r, LANES)

    x_item = jnp.dtype(x_ncdhw.dtype).itemsize
    # Real VMEM per sublane-row of 128 lanes, double-buffered in + out blocks
    # (TILE_R is a multiple of 8 and the lane dim is exactly 128 -> no extra
    #  tile padding to account for).
    bytes_per_row = 2 * (c * LANES * x_item) + 2 * (2 * LANES * 4)
    tile_r = _pick_row_tile(r, bytes_per_row, _vmem_budget_bytes())

    am = pl.pallas_call(
        _chan_stats_kernel,
        out_shape=jax.ShapeDtypeStruct((n, 2, r, LANES), jnp.float32),
        grid=(n, r // tile_r),
        in_specs=[pl.BlockSpec((None, c, tile_r, LANES),
                               lambda i, j: (i, 0, j, 0))],
        out_specs=pl.BlockSpec((None, 2, tile_r, LANES),
                               lambda i, j: (i, 0, j, 0)),
        compiler_params=pltpu.CompilerParams(
            dimension_semantics=("parallel", "parallel")),
    )(xr)

    # ---- glue: reshape the small 2-channel map back to a volume and zero-pad
    #      it by 3 voxels (Conv3d padding=3 semantics). ----
    am_vol = am.reshape(n, 2, s_pad)[:, :, :s].reshape(n, 2, d, h, w)
    amp = jnp.pad(am_vol, ((0, 0), (0, 0), (p, p), (p, p), (p, p)))
    dp, hp, wp = d + 2 * p, h + 2 * p, w + 2 * p
    del dp  # (documented above; padded-D indexing happens in the index_map)

    w_flat = w_dhwio.astype(jnp.float32).reshape(-1)   # (k^3*2,), (kd,kh,kw,c)

    # ---- stage 2: conv + att*sigmoid(att), one padded plane per (n, d, kd) ----
    out = pl.pallas_call(
        functools.partial(_conv_gate_kernel, k=k, h=h, w=w),
        out_shape=jax.ShapeDtypeStruct((n, d, h, w), x_ncdhw.dtype),
        grid=(n, d, k),
        in_specs=[
            pl.BlockSpec(memory_space=pltpu.MemorySpace.SMEM),     # weights
            pl.BlockSpec((None, 2, None, hp, wp),                  # [avg,max]
                         lambda i, j, kd: (i, 0, j + kd, 0, 0)),   # halo slice
        ],
        out_specs=pl.BlockSpec((None, None, h, w),
                               lambda i, j, kd: (i, j, 0, 0)),
        scratch_shapes=[pltpu.VMEM((h, w), jnp.float32)],
        compiler_params=pltpu.CompilerParams(
            dimension_semantics=("parallel", "parallel", "arbitrary")),
    )(w_flat, amp)

    return out[:, None]                                 # (N, 1, D, H, W)


# ---------------------------------------------------------------------------
# Pure-JAX reference (for the in-script correctness check)
# ---------------------------------------------------------------------------
def _reference(x_ncdhw, w_dhwio, kernel_size=7):
    p = kernel_size // 2
    x = jnp.transpose(x_ncdhw, (0, 2, 3, 4, 1)).astype(jnp.float32)
    avg = jnp.mean(x, axis=-1, keepdims=True)
    mx = jnp.max(x, axis=-1, keepdims=True)
    am = jnp.concatenate([avg, mx], axis=-1)
    att = jax.lax.conv_general_dilated(
        am, w_dhwio, window_strides=(1, 1, 1),
        padding=[(p, p)] * 3,
        dimension_numbers=("NDHWC", "DHWIO", "NDHWC"),
        precision=jax.lax.Precision.HIGHEST)
    out = att * jax.nn.sigmoid(att)
    return jnp.transpose(out, (0, 4, 1, 2, 3))


if __name__ == "__main__":
    key = jax.random.PRNGKey(0)
    kx, kw_key = jax.random.split(key)

    # PyTorch-style NCDHW input: (batch=2, channels=4, D=H=W=16)
    n, c, d, h, w = 2, 4, 16, 16, 16
    k = 7
    x = jax.random.normal(kx, (n, c, d, h, w), jnp.float32)

    # Conv3d(2, 1, kernel_size=7, bias=False) weight, stored DHWIO=(7,7,7,2,1).
    # (Real PyTorch weights (O,I,kD,kH,kW) load via transpose (2,3,4,1,0).)
    bound = (2 * k ** 3) ** -0.5
    w_conv = jax.random.uniform(kw_key, (k, k, k, 2, 1), jnp.float32, -bound, bound)

    fwd = jax.jit(functools.partial(spatial_attention_3d, kernel_size=k))
    out = jax.block_until_ready(fwd(x, w_conv))

    assert out.shape == (n, 1, d, h, w), out.shape
    assert bool(jnp.all(jnp.isfinite(out)))

    ref = _reference(x, w_conv, kernel_size=k)
    err = float(jnp.max(jnp.abs(out - ref)))
    assert err < 1e-3, f"max abs error vs reference: {err}"
    print("KERNEL_OK")
</pallas_src>

<mosaic_0001>
module attributes {stable_mosaic.version = 11 : i64} {
  func.func @_chan_stats_kernel(%arg0: i32, %arg1: i32, %arg2: memref<1x4x32x128xf32, #tpu.memory_space<vmem>>, %arg3: memref<1x2x32x128xf32, #tpu.memory_space<vmem>>) attributes {dimension_semantics = [#tpu.dimension_semantics<parallel>, #tpu.dimension_semantics<parallel>], iteration_bounds = array<i64: 2, 1>, scalar_prefetch = 0 : i64, scratch_operands = 0 : i64, tpu.core_type = #tpu.core_type<tc>, window_params = [{transform_indices = @transform_0, window_bounds = array<i64: 1, 4, 32, 128>}, {transform_indices = @transform_1, window_bounds = array<i64: 1, 2, 32, 128>}]} {
    %c0 = arith.constant 0 : index
    %c0_0 = arith.constant 0 : index
    %c0_1 = arith.constant 0 : index
    %c0_2 = arith.constant 0 : index
    %0 = vector.load %arg2[%c0, %c0_0, %c0_1, %c0_2] : memref<1x4x32x128xf32, #tpu.memory_space<vmem>>, vector<1x1x32x128xf32>
    %1 = vector.shape_cast %0 : vector<1x1x32x128xf32> to vector<32x128xf32>
    %c0_3 = arith.constant 0 : index
    %c1 = arith.constant 1 : index
    %c0_4 = arith.constant 0 : index
    %c0_5 = arith.constant 0 : index
    %2 = vector.load %arg2[%c0_3, %c1, %c0_4, %c0_5] : memref<1x4x32x128xf32, #tpu.memory_space<vmem>>, vector<1x1x32x128xf32>
    %3 = vector.shape_cast %2 : vector<1x1x32x128xf32> to vector<32x128xf32>
    %4 = arith.addf %1, %3 : vector<32x128xf32>
    %5 = arith.maximumf %1, %3 : vector<32x128xf32>
    %c0_6 = arith.constant 0 : index
    %c2 = arith.constant 2 : index
    %c0_7 = arith.constant 0 : index
    %c0_8 = arith.constant 0 : index
    %6 = vector.load %arg2[%c0_6, %c2, %c0_7, %c0_8] : memref<1x4x32x128xf32, #tpu.memory_space<vmem>>, vector<1x1x32x128xf32>
    %7 = vector.shape_cast %6 : vector<1x1x32x128xf32> to vector<32x128xf32>
    %8 = arith.addf %4, %7 : vector<32x128xf32>
    %9 = arith.maximumf %5, %7 : vector<32x128xf32>
    %c0_9 = arith.constant 0 : index
    %c3 = arith.constant 3 : index
    %c0_10 = arith.constant 0 : index
    %c0_11 = arith.constant 0 : index
    %10 = vector.load %arg2[%c0_9, %c3, %c0_10, %c0_11] : memref<1x4x32x128xf32, #tpu.memory_space<vmem>>, vector<1x1x32x128xf32>
    %11 = vector.shape_cast %10 : vector<1x1x32x128xf32> to vector<32x128xf32>
    %12 = arith.addf %8, %11 : vector<32x128xf32>
    %13 = arith.maximumf %9, %11 : vector<32x128xf32>
    %cst = arith.constant 2.500000e-01 : f32
    %14 = vector.broadcast %cst : f32 to vector<32x128xf32>
    %15 = arith.mulf %12, %14 : vector<32x128xf32>
    %c0_12 = arith.constant 0 : index
    %c0_13 = arith.constant 0 : index
    %c0_14 = arith.constant 0 : index
    %c0_15 = arith.constant 0 : index
    %16 = vector.load %arg3[%c0_12, %c0_13, %c0_14, %c0_15] : memref<1x2x32x128xf32, #tpu.memory_space<vmem>>, vector<1x1x32x128xf32>
    %17 = vector.shape_cast %16 : vector<1x1x32x128xf32> to vector<32x128xf32>
    %18 = vector.shape_cast %15 : vector<32x128xf32> to vector<1x1x32x128xf32>
    tpu.vector_store %arg3[%c0_12, %c0_13, %c0_14, %c0_15], %18 {strides = array<i32>} : memref<1x2x32x128xf32, #tpu.memory_space<vmem>>, vector<1x1x32x128xf32>,
    %c0_16 = arith.constant 0 : index
    %c1_17 = arith.constant 1 : index
    %c0_18 = arith.constant 0 : index
    %c0_19 = arith.constant 0 : index
    %19 = vector.load %arg3[%c0_16, %c1_17, %c0_18, %c0_19] : memref<1x2x32x128xf32, #tpu.memory_space<vmem>>, vector<1x1x32x128xf32>
    %20 = vector.shape_cast %19 : vector<1x1x32x128xf32> to vector<32x128xf32>
    %21 = vector.shape_cast %13 : vector<32x128xf32> to vector<1x1x32x128xf32>
    tpu.vector_store %arg3[%c0_16, %c1_17, %c0_18, %c0_19], %21 {strides = array<i32>} : memref<1x2x32x128xf32, #tpu.memory_space<vmem>>, vector<1x1x32x128xf32>,
    return
  }
  func.func @transform_0(%arg0: i32, %arg1: i32) -> (i32, i32, i32, i32) {
    %c0_i32 = arith.constant 0 : i32
    %c0_i32_0 = arith.constant 0 : i32
    %c0_i32_1 = arith.constant 0 : i32
    return %arg0, %c0_i32, %arg1, %c0_i32_0 : i32, i32, i32, i32
  }
  func.func @transform_1(%arg0: i32, %arg1: i32) -> (i32, i32, i32, i32) {
    %c0_i32 = arith.constant 0 : i32
    %c0_i32_0 = arith.constant 0 : i32
    %c0_i32_1 = arith.constant 0 : i32
    return %arg0, %c0_i32, %arg1, %c0_i32_0 : i32, i32, i32, i32
  }
}

module attributes {stable_mosaic.version = 11 : i64} {
  func.func @_conv_gate_kernel(%arg0: i32, %arg1: i32, %arg2: i32, %arg3: memref<686xf32, #tpu.memory_space<smem>>, %arg4: memref<1x2x1x22x22xf32, #tpu.memory_space<vmem>>, %arg5: memref<1x1x16x16xf32, #tpu.memory_space<vmem>>, %arg6: memref<16x16xf32, #tpu.memory_space<vmem>>) attributes {dimension_semantics = [#tpu.dimension_semantics<parallel>, #tpu.dimension_semantics<parallel>, #tpu.dimension_semantics<arbitrary>], iteration_bounds = array<i64: 2, 16, 7>, scalar_prefetch = 0 : i64, scratch_operands = 1 : i64, tpu.core_type = #tpu.core_type<tc>, window_params = [{transform_indices = @transform_0, window_bounds = array<i64: 686>}, {transform_indices = @transform_1, window_bounds = array<i64: 1, 2, 1, 22, 22>}, {transform_indices = @transform_2, window_bounds = array<i64: 1, 1, 16, 16>}]} {
    %c0_i32 = arith.constant 0 : i32
    %0 = arith.cmpi eq, %arg2, %c0_i32 : i32
    %1 = arith.extui %0 : i1 to i32
    %c0_i32_0 = arith.constant 0 : i32
    %2 = arith.cmpi ne, %1, %c0_i32_0 : i32
    scf.if %2 {
      %cst_158 = arith.constant 0.000000e+00 : f32
      %895 = vector.broadcast %cst_158 : f32 to vector<16x16xf32>
      %c0_159 = arith.constant 0 : index
      %c0_160 = arith.constant 0 : index
      %896 = vector.load %arg6[%c0_159, %c0_160] : memref<16x16xf32, #tpu.memory_space<vmem>>, vector<16x16xf32>
      tpu.vector_store %arg6[%c0_159, %c0_160], %895 {strides = array<i32>} : memref<16x16xf32, #tpu.memory_space<vmem>>, vector<16x16xf32>,
    } else {
    }
    %c0 = arith.constant 0 : index
    %c0_1 = arith.constant 0 : index
    %c0_2 = arith.constant 0 : index
    %c0_3 = arith.constant 0 : index
    %c0_4 = arith.constant 0 : index
    %3 = vector.load %arg4[%c0, %c0_1, %c0_2, %c0_3, %c0_4] : memref<1x2x1x22x22xf32, #tpu.memory_space<vmem>>, vector<1x2x1x22x22xf32>
    %4 = vector.shape_cast %3 : vector<1x2x1x22x22xf32> to vector<2x22x22xf32>
    %c98_i32 = arith.constant 98 : i32
    %5 = arith.muli %arg2, %c98_i32 : i32
    %cst = arith.constant 0.000000e+00 : f32
    %6 = vector.broadcast %cst : f32 to vector<16x16xf32>
    %c0_i32_5 = arith.constant 0 : i32
    %7 = arith.addi %5, %c0_i32_5 : i32
    %c0_i32_6 = arith.constant 0 : i32
    %8 = arith.addi %7, %c0_i32_6 : i32
    %9 = arith.index_cast %8 : i32 to index
    %10 = memref.load %arg3[%9] : memref<686xf32, #tpu.memory_space<smem>>
    %11 = vector.extract_strided_slice %4 {offsets = [0, 0, 0], sizes = [1, 16, 16], strides = [1, 1, 1]} : vector<2x22x22xf32> to vector<1x16x16xf32>
    %12 = vector.shape_cast %11 : vector<1x16x16xf32> to vector<16x16xf32>
    %13 = vector.broadcast %10 : f32 to vector<16x16xf32>
    %14 = arith.mulf %13, %12 : vector<16x16xf32>
    %15 = arith.addf %6, %14 : vector<16x16xf32>
    %c0_i32_7 = arith.constant 0 : i32
    %16 = arith.addi %5, %c0_i32_7 : i32
    %c1_i32 = arith.constant 1 : i32
    %17 = arith.addi %16, %c1_i32 : i32
    %18 = arith.index_cast %17 : i32 to index
    %19 = memref.load %arg3[%18] : memref<686xf32, #tpu.memory_space<smem>>
    %20 = vector.extract_strided_slice %4 {offsets = [1, 0, 0], sizes = [1, 16, 16], strides = [1, 1, 1]} : vector<2x22x22xf32> to vector<1x16x16xf32>
    %21 = vector.shape_cast %20 : vector<1x16x16xf32> to vector<16x16xf32>
    %22 = vector.broadcast %19 : f32 to vector<16x16xf32>
    %23 = arith.mulf %22, %21 : vector<16x16xf32>
    %24 = arith.addf %15, %23 : vector<16x16xf32>
    %c2_i32 = arith.constant 2 : i32
    %25 = arith.addi %5, %c2_i32 : i32
    %c0_i32_8 = arith.constant 0 : i32
    %26 = arith.addi %25, %c0_i32_8 : i32
    %27 = arith.index_cast %26 : i32 to index
    %28 = memref.load %arg3[%27] : memref<686xf32, #tpu.memory_space<smem>>
    %29 = vector.extract_strided_slice %4 {offsets = [0, 0, 1], sizes = [1, 16, 16], strides = [1, 1, 1]} : vector<2x22x22xf32> to vector<1x16x16xf32>
    %30 = vector.shape_cast %29 : vector<1x16x16xf32> to vector<16x16xf32>
    %31 = vector.broadcast %28 : f32 to vector<16x16xf32>
    %32 = arith.mulf %31, %30 : vector<16x16xf32>
    %33 = arith.addf %24, %32 : vector<16x16xf32>
    %c2_i32_9 = arith.constant 2 : i32
    %34 = arith.addi %5, %c2_i32_9 : i32
    %c1_i32_10 = arith.constant 1 : i32
    %35 = arith.addi %34, %c1_i32_10 : i32
    %36 = arith.index_cast %35 : i32 to index
    %37 = memref.load %arg3[%36] : memref<686xf32, #tpu.memory_space<smem>>
    %38 = vector.extract_strided_slice %4 {offsets = [1, 0, 1], sizes = [1, 16, 16], strides = [1, 1, 1]} : vector<2x22x22xf32> to vector<1x16x16xf32>
    %39 = vector.shape_cast %38 : vector<1x16x16xf32> to vector<16x16xf32>
    %40 = vector.broadcast %37 : f32 to vector<16x16xf32>
    %41 = arith.mulf %40, %39 : vector<16x16xf32>
    %42 = arith.addf %33, %41 : vector<16x16xf32>
    %c4_i32 = arith.constant 4 : i32
    %43 = arith.addi %5, %c4_i32 : i32
    %c0_i32_11 = arith.constant 0 : i32
    %44 = arith.addi %43, %c0_i32_11 : i32
    %45 = arith.index_cast %44 : i32 to index
    %46 = memref.load %arg3[%45] : memref<686xf32, #tpu.memory_space<smem>>
    %47 = vector.extract_strided_slice %4 {offsets = [0, 0, 2], sizes = [1, 16, 16], strides = [1, 1, 1]} : vector<2x22x22xf32> to vector<1x16x16xf32>
    %48 = vector.shape_cast %47 : vector<1x16x16xf32> to vector<16x16xf32>
    %49 = vector.broadcast %46 : f32 to vector<16x16xf32>
    %50 = arith.mulf %49, %48 : vector<16x16xf32>
    %51 = arith.addf %42, %50 : vector<16x16xf32>
    %c4_i32_12 = arith.constant 4 : i32
    %52 = arith.addi %5, %c4_i32_12 : i32
    %c1_i32_13 = arith.constant 1 : i32
    %53 = arith.addi %52, %c1_i32_13 : i32
    %54 = arith.index_cast %53 : i32 to index
    %55 = memref.load %arg3[%54] : memref<686xf32, #tpu.memory_space<smem>>
    %56 = vector.extract_strided_slice %4 {offsets = [1, 0, 2], sizes = [1, 16, 16], strides = [1, 1, 1]} : vector<2x22x22xf32> to vector<1x16x16xf32>
    %57 = vector.shape_cast %56 : vector<1x16x16xf32> to vector<16x16xf32>
    %58 = vector.broadcast %55 : f32 to vector<16x16xf32>
    %59 = arith.mulf %58, %57 : vector<16x16xf32>
    %60 = arith.addf %51, %59 : vector<16x16xf32>
    %c6_i32 = arith.constant 6 : i32
    %61 = arith.addi %5, %c6_i32 : i32
    %c0_i32_14 = arith.constant 0 : i32
    %62 = arith.addi %61, %c0_i32_14 : i32
    %63 = arith.index_cast %62 : i32 to index
    %64 = memref.load %arg3[%63] : memref<686xf32, #tpu.memory_space<smem>>
    %65 = vector.extract_strided_slice %4 {offsets = [0, 0, 3], sizes = [1, 16, 16], strides = [1, 1, 1]} : vector<2x22x22xf32> to vector<1x16x16xf32>
    %66 = vector.shape_cast %65 : vector<1x16x16xf32> to vector<16x16xf32>
    %67 = vector.broadcast %64 : f32 to vector<16x16xf32>
    %68 = arith.mulf %67, %66 : vector<16x16xf32>
    %69 = arith.addf %60, %68 : vector<16x16xf32>
    %c6_i32_15 = arith.constant 6 : i32
    %70 = arith.addi %5, %c6_i32_15 : i32
    %c1_i32_16 = arith.constant 1 : i32
    %71 = arith.addi %70, %c1_i32_16 : i32
    %72 = arith.index_cast %71 : i32 to index
    %73 = memref.load %arg3[%72] : memref<686xf32, #tpu.memory_space<smem>>
    %74 = vector.extract_strided_slice %4 {offsets = [1, 0, 3], sizes = [1, 16, 16], strides = [1, 1, 1]} : vector<2x22x22xf32> to vector<1x16x16xf32>
    %75 = vector.shape_cast %74 : vector<1x16x16xf32> to vector<16x16xf32>
    %76 = vector.broadcast %73 : f32 to vector<16x16xf32>
    %77 = arith.mulf %76, %75 : vector<16x16xf32>
    %78 = arith.addf %69, %77 : vector<16x16xf32>
    %c8_i32 = arith.constant 8 : i32
    %79 = arith.addi %5, %c8_i32 : i32
    %c0_i32_17 = arith.constant 0 : i32
    %80 = arith.addi %79, %c0_i32_17 : i32
    %81 = arith.index_cast %80 : i32 to index
    %82 = memref.load %arg3[%81] : memref<686xf32, #tpu.memory_space<smem>>
    %83 = vector.extract_strided_slice %4 {offsets = [0, 0, 4], sizes = [1, 16, 16], strides = [1, 1, 1]} : vector<2x22x22xf32> to vector<1x16x16xf32>
    %84 = vector.shape_cast %83 : vector<1x16x16xf32> to vector<16x16xf32>
    %85 = vector.broadcast %82 : f32 to vector<16x16xf32>
    %86 = arith.mulf %85, %84 : vector<16x16xf32>
    %87 = arith.addf %78, %86 : vector<16x16xf32>
    %c8_i32_18 = arith.constant 8 : i32
    %88 = arith.addi %5, %c8_i32_18 : i32
    %c1_i32_19 = arith.constant 1 : i32
    %89 = arith.addi %88, %c1_i32_19 : i32
    %90 = arith.index_cast %89 : i32 to index
    %91 = memref.load %arg3[%90] : memref<686xf32, #tpu.memory_space<smem>>
    %92 = vector.extract_strided_slice %4 {offsets = [1, 0, 4], sizes = [1, 16, 16], strides = [1, 1, 1]} : vector<2x22x22xf32> to vector<1x16x16xf32>
    %93 = vector.shape_cast %92 : vector<1x16x16xf32> to vector<16x16xf32>
    %94 = vector.broadcast %91 : f32 to vector<16x16xf32>
    %95 = arith.mulf %94, %93 : vector<16x16xf32>
    %96 = arith.addf %87, %95 : vector<16x16xf32>
    %c10_i32 = arith.constant 10 : i32
    %97 = arith.addi %5, %c10_i32 : i32
    %c0_i32_20 = arith.constant 0 : i32
    %98 = arith.addi %97, %c0_i32_20 : i32
    %99 = arith.index_cast %98 : i32 to index
    %100 = memref.load %arg3[%99] : memref<686xf32, #tpu.memory_space<smem>>
    %101 = vector.extract_strided_slice %4 {offsets = [0, 0, 5], sizes = [1, 16, 16], strides = [1, 1, 1]} : vector<2x22x22xf32> to vector<1x16x16xf32>
    %102 = vector.shape_cast %101 : vector<1x16x16xf32> to vector<16x16xf32>
    %103 = vector.broadcast %100 : f32 to vector<16x16xf32>
    %104 = arith.mulf %103, %102 : vector<16x16xf32>
    %105 = arith.addf %96, %104 : vector<16x16xf32>
    %c10_i32_21 = arith.constant 10 : i32
    %106 = arith.addi %5, %c10_i32_21 : i32
    %c1_i32_22 = arith.constant 1 : i32
    %107 = arith.addi %106, %c1_i32_22 : i32
    %108 = arith.index_cast %107 : i32 to index
    %109 = memref.load %arg3[%108] : memref<686xf32, #tpu.memory_space<smem>>
    %110 = vector.extract_strided_slice %4 {offsets = [1, 0, 5], sizes = [1, 16, 16], strides = [1, 1, 1]} : vector<2x22x22xf32> to vector<1x16x16xf32>
    %111 = vector.shape_cast %110 : vector<1x16x16xf32> to vector<16x16xf32>
    %112 = vector.broadcast %109 : f32 to vector<16x16xf32>
    %113 = arith.mulf %112, %111 : vector<16x16xf32>
    %114 = arith.addf %105, %113 : vector<16x16xf32>
    %c12_i32 = arith.constant 12 : i32
    %115 = arith.addi %5, %c12_i32 : i32
    %c0_i32_23 = arith.constant 0 : i32
    %116 = arith.addi %115, %c0_i32_23 : i32
    %117 = arith.index_cast %116 : i32 to index
    %118 = memref.load %arg3[%117] : memref<686xf32, #tpu.memory_space<smem>>
    %119 = vector.extract_strided_slice %4 {offsets = [0, 0, 6], sizes = [1, 16, 16], strides = [1, 1, 1]} : vector<2x22x22xf32> to vector<1x16x16xf32>
    %120 = vector.shape_cast %119 : vector<1x16x16xf32> to vector<16x16xf32>
    %121 = vector.broadcast %118 : f32 to vector<16x16xf32>
    %122 = arith.mulf %121, %120 : vector<16x16xf32>
    %123 = arith.addf %114, %122 : vector<16x16xf32>
    %c12_i32_24 = arith.constant 12 : i32
    %124 = arith.addi %5, %c12_i32_24 : i32
    %c1_i32_25 = arith.constant 1 : i32
    %125 = arith.addi %124, %c1_i32_25 : i32
    %126 = arith.index_cast %125 : i32 to index
    %127 = memref.load %arg3[%126] : memref<686xf32, #tpu.memory_space<smem>>
    %128 = vector.extract_strided_slice %4 {offsets = [1, 0, 6], sizes = [1, 16, 16], strides = [1, 1, 1]} : vector<2x22x22xf32> to vector<1x16x16xf32>
    %129 = vector.shape_cast %128 : vector<1x16x16xf32> to vector<16x16xf32>
    %130 = vector.broadcast %127 : f32 to vector<16x16xf32>
    %131 = arith.mulf %130, %129 : vector<16x16xf32>
    %132 = arith.addf %123, %131 : vector<16x16xf32>
    %c14_i32 = arith.constant 14 : i32
    %133 = arith.addi %5, %c14_i32 : i32
    %c0_i32_26 = arith.constant 0 : i32
    %134 = arith.addi %133, %c0_i32_26 : i32
    %135 = arith.index_cast %134 : i32 to index
    %136 = memref.load %arg3[%135] : memref<686xf32, #tpu.memory_space<smem>>
    %137 = vector.extract_strided_slice %4 {offsets = [0, 1, 0], sizes = [1, 16, 16], strides = [1, 1, 1]} : vector<2x22x22xf32> to vector<1x16x16xf32>
    %138 = vector.shape_cast %137 : vector<1x16x16xf32> to vector<16x16xf32>
    %139 = vector.broadcast %136 : f32 to vector<16x16xf32>
    %140 = arith.mulf %139, %138 : vector<16x16xf32>
    %141 = arith.addf %132, %140 : vector<16x16xf32>
    %c14_i32_27 = arith.constant 14 : i32
    %142 = arith.addi %5, %c14_i32_27 : i32
    %c1_i32_28 = arith.constant 1 : i32
    %143 = arith.addi %142, %c1_i32_28 : i32
    %144 = arith.index_cast %143 : i32 to index
    %145 = memref.load %arg3[%144] : memref<686xf32, #tpu.memory_space<smem>>
    %146 = vector.extract_strided_slice %4 {offsets = [1, 1, 0], sizes = [1, 16, 16], strides = [1, 1, 1]} : vector<2x22x22xf32> to vector<1x16x16xf32>
    %147 = vector.shape_cast %146 : vector<1x16x16xf32> to vector<16x16xf32>
    %148 = vector.broadcast %145 : f32 to vector<16x16xf32>
    %149 = arith.mulf %148, %147 : vector<16x16xf32>
    %150 = arith.addf %141, %149 : vector<16x16xf32>
    %c16_i32 = arith.constant 16 : i32
    %151 = arith.addi %5, %c16_i32 : i32
    %c0_i32_29 = arith.constant 0 : i32
    %152 = arith.addi %151, %c0_i32_29 : i32
    %153 = arith.index_cast %152 : i32 to index
    %154 = memref.load %arg3[%153] : memref<686xf32, #tpu.memory_space<smem>>
    %155 = vector.extract_strided_slice %4 {offsets = [0, 1, 1], sizes = [1, 16, 16], strides = [1, 1, 1]} : vector<2x22x22xf32> to vector<1x16x16xf32>
    %156 = vector.shape_cast %155 : vector<1x16x16xf32> to vector<16x16xf32>
    %157 = vector.broadcast %154 : f32 to vector<16x16xf32>
    %158 = arith.mulf %157, %156 : vector<16x16xf32>
    %159 = arith.addf %150, %158 : vector<16x16xf32>
    %c16_i32_30 = arith.constant 16 : i32
    %160 = arith.addi %5, %c16_i32_30 : i32
    %c1_i32_31 = arith.constant 1 : i32
    %161 = arith.addi %160, %c1_i32_31 : i32
    %162 = arith.index_cast %161 : i32 to index
    %163 = memref.load %arg3[%162] : memref<686xf32, #tpu.memory_space<smem>>
    %164 = vector.extract_strided_slice %4 {offsets = [1, 1, 1], sizes = [1, 16, 16], strides = [1, 1, 1]} : vector<2x22x22xf32> to vector<1x16x16xf32>
    %165 = vector.shape_cast %164 : vector<1x16x16xf32> to vector<16x16xf32>
    %166 = vector.broadcast %163 : f32 to vector<16x16xf32>
    %167 = arith.mulf %166, %165 : vector<16x16xf32>
    %168 = arith.addf %159, %167 : vector<16x16xf32>
    %c18_i32 = arith.constant 18 : i32
    %169 = arith.addi %5, %c18_i32 : i32
    %c0_i32_32 = arith.constant 0 : i32
    %170 = arith.addi %169, %c0_i32_32 : i32
    %171 = arith.index_cast %170 : i32 to index
    %172 = memref.load %arg3[%171] : memref<686xf32, #tpu.memory_space<smem>>
    %173 = vector.extract_strided_slice %4 {offsets = [0, 1, 2], sizes = [1, 16, 16], strides = [1, 1, 1]} : vector<2x22x22xf32> to vector<1x16x16xf32>
    %174 = vector.shape_cast %173 : vector<1x16x16xf32> to vector<16x16xf32>
    %175 = vector.broadcast %172 : f32 to vector<16x16xf32>
    %176 = arith.mulf %175, %174 : vector<16x16xf32>
    %177 = arith.addf %168, %176 : vector<16x16xf32>
    %c18_i32_33 = arith.constant 18 : i32
    %178 = arith.addi %5, %c18_i32_33 : i32
    %c1_i32_34 = arith.constant 1 : i32
    %179 = arith.addi %178, %c1_i32_34 : i32
    %180 = arith.index_cast %179 : i32 to index
    %181 = memref.load %arg3[%180] : memref<686xf32, #tpu.memory_space<smem>>
    %182 = vector.extract_strided_slice %4 {offsets = [1, 1, 2], sizes = [1, 16, 16], strides = [1, 1, 1]} : vector<2x22x22xf32> to vector<1x16x16xf32>
    %183 = vector.shape_cast %182 : vector<1x16x16xf32> to vector<16x16xf32>
    %184 = vector.broadcast %181 : f32 to vector<16x16xf32>
    %185 = arith.mulf %184, %183 : vector<16x16xf32>
    %186 = arith.addf %177, %185 : vector<16x16xf32>
    %c20_i32 = arith.constant 20 : i32
    %187 = arith.addi %5, %c20_i32 : i32
    %c0_i32_35 = arith.constant 0 : i32
    %188 = arith.addi %187, %c0_i32_35 : i32
    %189 = arith.index_cast %188 : i32 to index
    %190 = memref.load %arg3[%189] : memref<686xf32, #tpu.memory_space<smem>>
    %191 = vector.extract_strided_slice %4 {offsets = [0, 1, 3], sizes = [1, 16, 16], strides = [1, 1, 1]} : vector<2x22x22xf32> to vector<1x16x16xf32>
    %192 = vector.shape_cast %191 : vector<1x16x16xf32> to vector<16x16xf32>
    %193 = vector.broadcast %190 : f32 to vector<16x16xf32>
    %194 = arith.mulf %193, %192 : vector<16x16xf32>
    %195 = arith.addf %186, %194 : vector<16x16xf32>
    %c20_i32_36 = arith.constant 20 : i32
    %196 = arith.addi %5, %c20_i32_36 : i32
    %c1_i32_37 = arith.constant 1 : i32
    %197 = arith.addi %196, %c1_i32_37 : i32
    %198 = arith.index_cast %197 : i32 to index
    %199 = memref.load %arg3[%198] : memref<686xf32, #tpu.memory_space<smem>>
    %200 = vector.extract_strided_slice %4 {offsets = [1, 1, 3], sizes = [1, 16, 16], strides = [1, 1, 1]} : vector<2x22x22xf32> to vector<1x16x16xf32>
    %201 = vector.shape_cast %200 : vector<1x16x16xf32> to vector<16x16xf32>
    %202 = vector.broadcast %199 : f32 to vector<16x16xf32>
    %203 = arith.mulf %202, %201 : vector<16x16xf32>
    %204 = arith.addf %195, %203 : vector<16x16xf32>
    %c22_i32 = arith.constant 22 : i32
    %205 = arith.addi %5, %c22_i32 : i32
    %c0_i32_38 = arith.constant 0 : i32
    %206 = arith.addi %205, %c0_i32_38 : i32
    %207 = arith.index_cast %206 : i32 to index
    %208 = memref.load %arg3[%207] : memref<686xf32, #tpu.memory_space<smem>>
    %209 = vector.extract_strided_slice %4 {offsets = [0, 1, 4], sizes = [1, 16, 16], strides = [1, 1, 1]} : vector<2x22x22xf32> to vector<1x16x16xf32>
    %210 = vector.shape_cast %209 : vector<1x16x16xf32> to vector<16x16xf32>
    %211 = vector.broadcast %208 : f32 to vector<16x16xf32>
    %212 = arith.mulf %211, %210 : vector<16x16xf32>
    %213 = arith.addf %204, %212 : vector<16x16xf32>
    %c22_i32_39 = arith.constant 22 : i32
    %214 = arith.addi %5, %c22_i32_39 : i32
    %c1_i32_40 = arith.constant 1 : i32
    %215 = arith.addi %214, %c1_i32_40 : i32
    %216 = arith.index_cast %215 : i32 to index
    %217 = memref.load %arg3[%216] : memref<686xf32, #tpu.memory_space<smem>>
    %218 = vector.extract_strided_slice %4 {offsets = [1, 1, 4], sizes = [1, 16, 16], strides = [1, 1, 1]} : vector<2x22x22xf32> to vector<1x16x16xf32>
    %219 = vector.shape_cast %218 : vector<1x16x16xf32> to vector<16x16xf32>
    %220 = vector.broadcast %217 : f32 to vector<16x16xf32>
    %221 = arith.mulf %220, %219 : vector<16x16xf32>
    %222 = arith.addf %213, %221 : vector<16x16xf32>
    %c24_i32 = arith.constant 24 : i32
    %223 = arith.addi %5, %c24_i32 : i32
    %c0_i32_41 = arith.constant 0 : i32
    %224 = arith.addi %223, %c0_i32_41 : i32
    %225 = arith.index_cast %224 : i32 to index
    %226 = memref.load %arg3[%225] : memref<686xf32, #tpu.memory_space<smem>>
    %227 = vector.extract_strided_slice %4 {offsets = [0, 1, 5], sizes = [1, 16, 16], strides = [1, 1, 1]} : vector<2x22x22xf32> to vector<1x16x16xf32>
    %228 = vector.shape_cast %227 : vector<1x16x16xf32> to vector<16x16xf32>
    %229 = vector.broadcast %226 : f32 to vector<16x16xf32>
    %230 = arith.mulf %229, %228 : vector<16x16xf32>
    %231 = arith.addf %222, %230 : vector<16x16xf32>
    %c24_i32_42 = arith.constant 24 : i32
    %232 = arith.addi %5, %c24_i32_42 : i32
    %c1_i32_43 = arith.constant 1 : i32
    %233 = arith.addi %232, %c1_i32_43 : i32
    %234 = arith.index_cast %233 : i32 to index
    %235 = memref.load %arg3[%234] : memref<686xf32, #tpu.memory_space<smem>>
    %236 = vector.extract_strided_slice %4 {offsets = [1, 1, 5], sizes = [1, 16, 16], strides = [1, 1, 1]} : vector<2x22x22xf32> to vector<1x16x16xf32>
    %237 = vector.shape_cast %236 : vector<1x16x16xf32> to vector<16x16xf32>
    %238 = vector.broadcast %235 : f32 to vector<16x16xf32>
    %239 = arith.mulf %238, %237 : vector<16x16xf32>
    %240 = arith.addf %231, %239 : vector<16x16xf32>
    %c26_i32 = arith.constant 26 : i32
    %241 = arith.addi %5, %c26_i32 : i32
    %c0_i32_44 = arith.constant 0 : i32
    %242 = arith.addi %241, %c0_i32_44 : i32
    %243 = arith.index_cast %242 : i32 to index
    %244 = memref.load %arg3[%243] : memref<686xf32, #tpu.memory_space<smem>>
    %245 = vector.extract_strided_slice %4 {offsets = [0, 1, 6], sizes = [1, 16, 16], strides = [1, 1, 1]} : vector<2x22x22xf32> to vector<1x16x16xf32>
    %246 = vector.shape_cast %245 : vector<1x16x16xf32> to vector<16x16xf32>
    %247 = vector.broadcast %244 : f32 to vector<16x16xf32>
    %248 = arith.mulf %247, %246 : vector<16x16xf32>
    %249 = arith.addf %240, %248 : vector<16x16xf32>
    %c26_i32_45 = arith.constant 26 : i32
    %250 = arith.addi %5, %c26_i32_45 : i32
    %c1_i32_46 = arith.constant 1 : i32
    %251 = arith.addi %250, %c1_i32_46 : i32
    %252 = arith.index_cast %251 : i32 to index
    %253 = memref.load %arg3[%252] : memref<686xf32, #tpu.memory_space<smem>>
    %254 = vector.extract_strided_slice %4 {offsets = [1, 1, 6], sizes = [1, 16, 16], strides = [1, 1, 1]} : vector<2x22x22xf32> to vector<1x16x16xf32>
    %255 = vector.shape_cast %254 : vector<1x16x16xf32> to vector<16x16xf32>
    %256 = vector.broadcast %253 : f32 to vector<16x16xf32>
    %257 = arith.mulf %256, %255 : vector<16x16xf32>
    %258 = arith.addf %249, %257 : vector<16x16xf32>
    %c28_i32 = arith.constant 28 : i32
    %259 = arith.addi %5, %c28_i32 : i32
    %c0_i32_47 = arith.constant 0 : i32
    %260 = arith.addi %259, %c0_i32_47 : i32
    %261 = arith.index_cast %260 : i32 to index
    %262 = memref.load %arg3[%261] : memref<686xf32, #tpu.memory_space<smem>>
    %263 = vector.extract_strided_slice %4 {offsets = [0, 2, 0], sizes = [1, 16, 16], strides = [1, 1, 1]} : vector<2x22x22xf32> to vector<1x16x16xf32>
    %264 = vector.shape_cast %263 : vector<1x16x16xf32> to vector<16x16xf32>
    %265 = vector.broadcast %262 : f32 to vector<16x16xf32>
    %266 = arith.mulf %265, %264 : vector<16x16xf32>
    %267 = arith.addf %258, %266 : vector<16x16xf32>
    %c28_i32_48 = arith.constant 28 : i32
    %268 = arith.addi %5, %c28_i32_48 : i32
    %c1_i32_49 = arith.constant 1 : i32
    %269 = arith.addi %268, %c1_i32_49 : i32
    %270 = arith.index_cast %269 : i32 to index
    %271 = memref.load %arg3[%270] : memref<686xf32, #tpu.memory_space<smem>>
    %272 = vector.extract_strided_slice %4 {offsets = [1, 2, 0], sizes = [1, 16, 16], strides = [1, 1, 1]} : vector<2x22x22xf32> to vector<1x16x16xf32>
    %273 = vector.shape_cast %272 : vector<1x16x16xf32> to vector<16x16xf32>
    %274 = vector.broadcast %271 : f32 to vector<16x16xf32>
    %275 = arith.mulf %274, %273 : vector<16x16xf32>
    %276 = arith.addf %267, %275 : vector<16x16xf32>
    %c30_i32 = arith.constant 30 : i32
    %277 = arith.addi %5, %c30_i32 : i32
    %c0_i32_50 = arith.constant 0 : i32
    %278 = arith.addi %277, %c0_i32_50 : i32
    %279 = arith.index_cast %278 : i32 to index
    %280 = memref.load %arg3[%279] : memref<686xf32, #tpu.memory_space<smem>>
    %281 = vector.extract_strided_slice %4 {offsets = [0, 2, 1], sizes = [1, 16, 16], strides = [1, 1, 1]} : vector<2x22x22xf32> to vector<1x16x16xf32>
    %282 = vector.shape_cast %281 : vector<1x16x16xf32> to vector<16x16xf32>
    %283 = vector.broadcast %280 : f32 to vector<16x16xf32>
    %284 = arith.mulf %283, %282 : vector<16x16xf32>
    %285 = arith.addf %276, %284 : vector<16x16xf32>
    %c30_i32_51 = arith.constant 30 : i32
    %286 = arith.addi %5, %c30_i32_51 : i32
    %c1_i32_52 = arith.constant 1 : i32
    %287 = arith.addi %286, %c1_i32_52 : i32
    %288 = arith.index_cast %287 : i32 to index
    %289 = memref.load %arg3[%288] : memref<686xf32, #tpu.memory_space<smem>>
    %290 = vector.extract_strided_slice %4 {offsets = [1, 2, 1], sizes = [1, 16, 16], strides = [1, 1, 1]} : vector<2x22x22xf32> to vector<1x16x16xf32>
    %291 = vector.shape_cast %290 : vector<1x16x16xf32> to vector<16x16xf32>
    %292 = vector.broadcast %289 : f32 to vector<16x16xf32>
    %293 = arith.mulf %292, %291 : vector<16x16xf32>
    %294 = arith.addf %285, %293 : vector<16x16xf32>
    %c32_i32 = arith.constant 32 : i32
    %295 = arith.addi %5, %c32_i32 : i32
    %c0_i32_53 = arith.constant 0 : i32
    %296 = arith.addi %295, %c0_i32_53 : i32
    %297 = arith.index_cast %296 : i32 to index
    %298 = memref.load %arg3[%297] : memref<686xf32, #tpu.memory_space<smem>>
    %299 = vector.extract_strided_slice %4 {offsets = [0, 2, 2], sizes = [1, 16, 16], strides = [1, 1, 1]} : vector<2x22x22xf32> to vector<1x16x16xf32>
    %300 = vector.shape_cast %299 : vector<1x16x16xf32> to vector<16x16xf32>
    %301 = vector.broadcast %298 : f32 to vector<16x16xf32>
    %302 = arith.mulf %301, %300 : vector<16x16xf32>
    %303 = arith.addf %294, %302 : vector<16x16xf32>
    %c32_i32_54 = arith.constant 32 : i32
    %304 = arith.addi %5, %c32_i32_54 : i32
    %c1_i32_55 = arith.constant 1 : i32
    %305 = arith.addi %304, %c1_i32_55 : i32
    %306 = arith.index_cast %305 : i32 to index
    %307 = memref.load %arg3[%306] : memref<686xf32, #tpu.memory_space<smem>>
    %308 = vector.extract_strided_slice %4 {offsets = [1, 2, 2], sizes = [1, 16, 16], strides = [1, 1, 1]} : vector<2x22x22xf32> to vector<1x16x16xf32>
    %309 = vector.shape_cast %308 : vector<1x16x16xf32> to vector<16x16xf32>
    %310 = vector.broadcast %307 : f32 to vector<16x16xf32>
    %311 = arith.mulf %310, %309 : vector<16x16xf32>
    %312 = arith.addf %303, %311 : vector<16x16xf32>
    %c34_i32 = arith.constant 34 : i32
    %313 = arith.addi %5, %c34_i32 : i32
    %c0_i32_56 = arith.constant 0 : i32
    %314 = arith.addi %313, %c0_i32_56 : i32
    %315 = arith.index_cast %314 : i32 to index
    %316 = memref.load %arg3[%315] : memref<686xf32, #tpu.memory_space<smem>>
    %317 = vector.extract_strided_slice %4 {offsets = [0, 2, 3], sizes = [1, 16, 16], strides = [1, 1, 1]} : vector<2x22x22xf32> to vector<1x16x16xf32>
    %318 = vector.shape_cast %317 : vector<1x16x16xf32> to vector<16x16xf32>
    %319 = vector.broadcast %316 : f32 to vector<16x16xf32>
    %320 = arith.mulf %319, %318 : vector<16x16xf32>
    %321 = arith.addf %312, %320 : vector<16x16xf32>
    %c34_i32_57 = arith.constant 34 : i32
    %322 = arith.addi %5, %c34_i32_57 : i32
    %c1_i32_58 = arith.constant 1 : i32
    %323 = arith.addi %322, %c1_i32_58 : i32
    %324 = arith.index_cast %323 : i32 to index
    %325 = memref.load %arg3[%324] : memref<686xf32, #tpu.memory_space<smem>>
    %326 = vector.extract_strided_slice %4 {offsets = [1, 2, 3], sizes = [1, 16, 16], strides = [1, 1, 1]} : vector<2x22x22xf32> to vector<1x16x16xf32>
    %327 = vector.shape_cast %326 : vector<1x16x16xf32> to vector<16x16xf32>
    %328 = vector.broadcast %325 : f32 to vector<16x16xf32>
    %329 = arith.mulf %328, %327 : vector<16x16xf32>
    %330 = arith.addf %321, %329 : vector<16x16xf32>
    %c36_i32 = arith.constant 36 : i32
    %331 = arith.addi %5, %c36_i32 : i32
    %c0_i32_59 = arith.constant 0 : i32
    %332 = arith.addi %331, %c0_i32_59 : i32
    %333 = arith.index_cast %332 : i32 to index
    %334 = memref.load %arg3[%333] : memref<686xf32, #tpu.memory_space<smem>>
    %335 = vector.extract_strided_slice %4 {offsets = [0, 2, 4], sizes = [1, 16, 16], strides = [1, 1, 1]} : vector<2x22x22xf32> to vector<1x16x16xf32>
    %336 = vector.shape_cast %335 : vector<1x16x16xf32> to vector<16x16xf32>
    %337 = vector.broadcast %334 : f32 to vector<16x16xf32>
    %338 = arith.mulf %337, %336 : vector<16x16xf32>
    %339 = arith.addf %330, %338 : vector<16x16xf32>
    %c36_i32_60 = arith.constant 36 : i32
    %340 = arith.addi %5, %c36_i32_60 : i32
    %c1_i32_61 = arith.constant 1 : i32
    %341 = arith.addi %340, %c1_i32_61 : i32
    %342 = arith.index_cast %341 : i32 to index
    %343 = memref.load %arg3[%342] : memref<686xf32, #tpu.memory_space<smem>>
    %344 = vector.extract_strided_slice %4 {offsets = [1, 2, 4], sizes = [1, 16, 16], strides = [1, 1, 1]} : vector<2x22x22xf32> to vector<1x16x16xf32>
    %345 = vector.shape_cast %344 : vector<1x16x16xf32> to vector<16x16xf32>
    %346 = vector.broadcast %343 : f32 to vector<16x16xf32>
    %347 = arith.mulf %346, %345 : vector<16x16xf32>
    %348 = arith.addf %339, %347 : vector<16x16xf32>
    %c38_i32 = arith.constant 38 : i32
    %349 = arith.addi %5, %c38_i32 : i32
    %c0_i32_62 = arith.constant 0 : i32
    %350 = arith.addi %349, %c0_i32_62 : i32
    %351 = arith.index_cast %350 : i32 to index
    %352 = memref.load %arg3[%351] : memref<686xf32, #tpu.memory_space<smem>>
    %353 = vector.extract_strided_slice %4 {offsets = [0, 2, 5], sizes = [1, 16, 16], strides = [1, 1, 1]} : vector<2x22x22xf32> to vector<1x16x16xf32>
    %354 = vector.shape_cast %353 : vector<1x16x16xf32> to vector<16x16xf32>
    %355 = vector.broadcast %352 : f32 to vector<16x16xf32>
    %356 = arith.mulf %355, %354 : vector<16x16xf32>
    %357 = arith.addf %348, %356 : vector<16x16xf32>
    %c38_i32_63 = arith.constant 38 : i32
    %358 = arith.addi %5, %c38_i32_63 : i32
    %c1_i32_64 = arith.constant 1 : i32
    %359 = arith.addi %358, %c1_i32_64 : i32
    %360 = arith.index_cast %359 : i32 to index
    %361 = memref.load %arg3[%360] : memref<686xf32, #tpu.memory_space<smem>>
    %362 = vector.extract_strided_slice %4 {offsets = [1, 2, 5], sizes = [1, 16, 16], strides = [1, 1, 1]} : vector<2x22x22xf32> to vector<1x16x16xf32>
    %363 = vector.shape_cast %362 : vector<1x16x16xf32> to vector<16x16xf32>
    %364 = vector.broadcast %361 : f32 to vector<16x16xf32>
    %365 = arith.mulf %364, %363 : vector<16x16xf32>
    %366 = arith.addf %357, %365 : vector<16x16xf32>
    %c40_i32 = arith.constant 40 : i32
    %367 = arith.addi %5, %c40_i32 : i32
    %c0_i32_65 = arith.constant 0 : i32
    %368 = arith.addi %367, %c0_i32_65 : i32
    %369 = arith.index_cast %368 : i32 to index
    %370 = memref.load %arg3[%369] : memref<686xf32, #tpu.memory_space<smem>>
    %371 = vector.extract_strided_slice %4 {offsets = [0, 2, 6], sizes = [1, 16, 16], strides = [1, 1, 1]} : vector<2x22x22xf32> to vector<1x16x16xf32>
    %372 = vector.shape_cast %371 : vector<1x16x16xf32> to vector<16x16xf32>
    %373 = vector.broadcast %370 : f32 to vector<16x16xf32>
    %374 = arith.mulf %373, %372 : vector<16x16xf32>
    %375 = arith.addf %366, %374 : vector<16x16xf32>
    %c40_i32_66 = arith.constant 40 : i32
    %376 = arith.addi %5, %c40_i32_66 : i32
    %c1_i32_67 = arith.constant 1 : i32
    %377 = arith.addi %376, %c1_i32_67 : i32
    %378 = arith.index_cast %377 : i32 to index
    %379 = memref.load %arg3[%378] : memref<686xf32, #tpu.memory_space<smem>>
    %380 = vector.extract_strided_slice %4 {offsets = [1, 2, 6], sizes = [1, 16, 16], strides = [1, 1, 1]} : vector<2x22x22xf32> to vector<1x16x16xf32>
    %381 = vector.shape_cast %380 : vector<1x16x16xf32> to vector<16x16xf32>
    %382 = vector.broadcast %379 : f32 to vector<16x16xf32>
    %383 = arith.mulf %382, %381 : vector<16x16xf32>
    %384 = arith.addf %375, %383 : vector<16x16xf32>
    %c42_i32 = arith.constant 42 : i32
    %385 = arith.addi %5, %c42_i32 : i32
    %c0_i32_68 = arith.constant 0 : i32
    %386 = arith.addi %385, %c0_i32_68 : i32
    %387 = arith.index_cast %386 : i32 to index
    %388 = memref.load %arg3[%387] : memref<686xf32, #tpu.memory_space<smem>>
    %389 = vector.extract_strided_slice %4 {offsets = [0, 3, 0], sizes = [1, 16, 16], strides = [1, 1, 1]} : vector<2x22x22xf32> to vector<1x16x16xf32>
    %390 = vector.shape_cast %389 : vector<1x16x16xf32> to vector<16x16xf32>
    %391 = vector.broadcast %388 : f32 to vector<16x16xf32>
    %392 = arith.mulf %391, %390 : vector<16x16xf32>
    %393 = arith.addf %384, %392 : vector<16x16xf32>
    %c42_i32_69 = arith.constant 42 : i32
    %394 = arith.addi %5, %c42_i32_69 : i32
    %c1_i32_70 = arith.constant 1 : i32
    %395 = arith.addi %394, %c1_i32_70 : i32
    %396 = arith.index_cast %395 : i32 to index
    %397 = memref.load %arg3[%396] : memref<686xf32, #tpu.memory_space<smem>>
    %398 = vector.extract_strided_slice %4 {offsets = [1, 3, 0], sizes = [1, 16, 16], strides = [1, 1, 1]} : vector<2x22x22xf32> to vector<1x16x16xf32>
    %399 = vector.shape_cast %398 : vector<1x16x16xf32> to vector<16x16xf32>
    %400 = vector.broadcast %397 : f32 to vector<16x16xf32>
    %401 = arith.mulf %400, %399 : vector<16x16xf32>
    %402 = arith.addf %393, %401 : vector<16x16xf32>
    %c44_i32 = arith.constant 44 : i32
    %403 = arith.addi %5, %c44_i32 : i32
    %c0_i32_71 = arith.constant 0 : i32
    %404 = arith.addi %403, %c0_i32_71 : i32
    %405 = arith.index_cast %404 : i32 to index
    %406 = memref.load %arg3[%405] : memref<686xf32, #tpu.memory_space<smem>>
    %407 = vector.extract_strided_slice %4 {offsets = [0, 3, 1], sizes = [1, 16, 16], strides = [1, 1, 1]} : vector<2x22x22xf32> to vector<1x16x16xf32>
    %408 = vector.shape_cast %407 : vector<1x16x16xf32> to vector<16x16xf32>
    %409 = vector.broadcast %406 : f32 to vector<16x16xf32>
    %410 = arith.mulf %409, %408 : vector<16x16xf32>
    %411 = arith.addf %402, %410 : vector<16x16xf32>
    %c44_i32_72 = arith.constant 44 : i32
    %412 = arith.addi %5, %c44_i32_72 : i32
    %c1_i32_73 = arith.constant 1 : i32
    %413 = arith.addi %412, %c1_i32_73 : i32
    %414 = arith.index_cast %413 : i32 to index
    %415 = memref.load %arg3[%414] : memref<686xf32, #tpu.memory_space<smem>>
    %416 = vector.extract_strided_slice %4 {offsets = [1, 3, 1], sizes = [1, 16, 16], strides = [1, 1, 1]} : vector<2x22x22xf32> to vector<1x16x16xf32>
    %417 = vector.shape_cast %416 : vector<1x16x16xf32> to vector<16x16xf32>
    %418 = vector.broadcast %415 : f32 to vector<16x16xf32>
    %419 = arith.mulf %418, %417 : vector<16x16xf32>
    %420 = arith.addf %411, %419 : vector<16x16xf32>
    %c46_i32 = arith.constant 46 : i32
    %421 = arith.addi %5, %c46_i32 : i32
    %c0_i32_74 = arith.constant 0 : i32
    %422 = arith.addi %421, %c0_i32_74 : i32
    %423 = arith.index_cast %422 : i32 to index
    %424 = memref.load %arg3[%423] : memref<686xf32, #tpu.memory_space<smem>>
    %425 = vector.extract_strided_slice %4 {offsets = [0, 3, 2], sizes = [1, 16, 16], strides = [1, 1, 1]} : vector<2x22x22xf32> to vector<1x16x16xf32>
    %426 = vector.shape_cast %425 : vector<1x16x16xf32> to vector<16x16xf32>
    %427 = vector.broadcast %424 : f32 to vector<16x16xf32>
    %428 = arith.mulf %427, %426 : vector<16x16xf32>
    %429 = arith.addf %420, %428 : vector<16x16xf32>
    %c46_i32_75 = arith.constant 46 : i32
    %430 = arith.addi %5, %c46_i32_75 : i32
    %c1_i32_76 = arith.constant 1 : i32
    %431 = arith.addi %430, %c1_i32_76 : i32
    %432 = arith.index_cast %431 : i32 to index
    %433 = memref.load %arg3[%432] : memref<686xf32, #tpu.memory_space<smem>>
    %434 = vector.extract_strided_slice %4 {offsets = [1, 3, 2], sizes = [1, 16, 16], strides = [1, 1, 1]} : vector<2x22x22xf32> to vector<1x16x16xf32>
    %435 = vector.shape_cast %434 : vector<1x16x16xf32> to vector<16x16xf32>
    %436 = vector.broadcast %433 : f32 to vector<16x16xf32>
    %437 = arith.mulf %436, %435 : vector<16x16xf32>
    %438 = arith.addf %429, %437 : vector<16x16xf32>
    %c48_i32 = arith.constant 48 : i32
    %439 = arith.addi %5, %c48_i32 : i32
    %c0_i32_77 = arith.constant 0 : i32
    %440 = arith.addi %439, %c0_i32_77 : i32
    %441 = arith.index_cast %440 : i32 to index
    %442 = memref.load %arg3[%441] : memref<686xf32, #tpu.memory_space<smem>>
    %443 = vector.extract_strided_slice %4 {offsets = [0, 3, 3], sizes = [1, 16, 16], strides = [1, 1, 1]} : vector<2x22x22xf32> to vector<1x16x16xf32>
    %444 = vector.shape_cast %443 : vector<1x16x16xf32> to vector<16x16xf32>
    %445 = vector.broadcast %442 : f32 to vector<16x16xf32>
    %446 = arith.mulf %445, %444 : vector<16x16xf32>
    %447 = arith.addf %438, %446 : vector<16x16xf32>
    %c48_i32_78 = arith.constant 48 : i32
    %448 = arith.addi %5, %c48_i32_78 : i32
    %c1_i32_79 = arith.constant 1 : i32
    %449 = arith.addi %448, %c1_i32_79 : i32
    %450 = arith.index_cast %449 : i32 to index
    %451 = memref.load %arg3[%450] : memref<686xf32, #tpu.memory_space<smem>>
    %452 = vector.extract_strided_slice %4 {offsets = [1, 3, 3], sizes = [1, 16, 16], strides = [1, 1, 1]} : vector<2x22x22xf32> to vector<1x16x16xf32>
    %453 = vector.shape_cast %452 : vector<1x16x16xf32> to vector<16x16xf32>
    %454 = vector.broadcast %451 : f32 to vector<16x16xf32>
    %455 = arith.mulf %454, %453 : vector<16x16xf32>
    %456 = arith.addf %447, %455 : vector<16x16xf32>
    %c50_i32 = arith.constant 50 : i32
    %457 = arith.addi %5, %c50_i32 : i32
    %c0_i32_80 = arith.constant 0 : i32
    %458 = arith.addi %457, %c0_i32_80 : i32
    %459 = arith.index_cast %458 : i32 to index
    %460 = memref.load %arg3[%459] : memref<686xf32, #tpu.memory_space<smem>>
    %461 = vector.extract_strided_slice %4 {offsets = [0, 3, 4], sizes = [1, 16, 16], strides = [1, 1, 1]} : vector<2x22x22xf32> to vector<1x16x16xf32>
    %462 = vector.shape_cast %461 : vector<1x16x16xf32> to vector<16x16xf32>
    %463 = vector.broadcast %460 : f32 to vector<16x16xf32>
    %464 = arith.mulf %463, %462 : vector<16x16xf32>
    %465 = arith.addf %456, %464 : vector<16x16xf32>
    %c50_i32_81 = arith.constant 50 : i32
    %466 = arith.addi %5, %c50_i32_81 : i32
    %c1_i32_82 = arith.constant 1 : i32
    %467 = arith.addi %466, %c1_i32_82 : i32
    %468 = arith.index_cast %467 : i32 to index
    %469 = memref.load %arg3[%468] : memref<686xf32, #tpu.memory_space<smem>>
    %470 = vector.extract_strided_slice %4 {offsets = [1, 3, 4], sizes = [1, 16, 16], strides = [1, 1, 1]} : vector<2x22x22xf32> to vector<1x16x16xf32>
    %471 = vector.shape_cast %470 : vector<1x16x16xf32> to vector<16x16xf32>
    %472 = vector.broadcast %469 : f32 to vector<16x16xf32>
    %473 = arith.mulf %472, %471 : vector<16x16xf32>
    %474 = arith.addf %465, %473 : vector<16x16xf32>
    %c52_i32 = arith.constant 52 : i32
    %475 = arith.addi %5, %c52_i32 : i32
    %c0_i32_83 = arith.constant 0 : i32
    %476 = arith.addi %475, %c0_i32_83 : i32
    %477 = arith.index_cast %476 : i32 to index
    %478 = memref.load %arg3[%477] : memref<686xf32, #tpu.memory_space<smem>>
    %479 = vector.extract_strided_slice %4 {offsets = [0, 3, 5], sizes = [1, 16, 16], strides = [1, 1, 1]} : vector<2x22x22xf32> to vector<1x16x16xf32>
    %480 = vector.shape_cast %479 : vector<1x16x16xf32> to vector<16x16xf32>
    %481 = vector.broadcast %478 : f32 to vector<16x16xf32>
    %482 = arith.mulf %481, %480 : vector<16x16xf32>
    %483 = arith.addf %474, %482 : vector<16x16xf32>
    %c52_i32_84 = arith.constant 52 : i32
    %484 = arith.addi %5, %c52_i32_84 : i32
    %c1_i32_85 = arith.constant 1 : i32
    %485 = arith.addi %484, %c1_i32_85 : i32
    %486 = arith.index_cast %485 : i32 to index
    %487 = memref.load %arg3[%486] : memref<686xf32, #tpu.memory_space<smem>>
    %488 = vector.extract_strided_slice %4 {offsets = [1, 3, 5], sizes = [1, 16, 16], strides = [1, 1, 1]} : vector<2x22x22xf32> to vector<1x16x16xf32>
    %489 = vector.shape_cast %488 : vector<1x16x16xf32> to vector<16x16xf32>
    %490 = vector.broadcast %487 : f32 to vector<16x16xf32>
    %491 = arith.mulf %490, %489 : vector<16x16xf32>
    %492 = arith.addf %483, %491 : vector<16x16xf32>
    %c54_i32 = arith.constant 54 : i32
    %493 = arith.addi %5, %c54_i32 : i32
    %c0_i32_86 = arith.constant 0 : i32
    %494 = arith.addi %493, %c0_i32_86 : i32
    %495 = arith.index_cast %494 : i32 to index
    %496 = memref.load %arg3[%495] : memref<686xf32, #tpu.memory_space<smem>>
    %497 = vector.extract_strided_slice %4 {offsets = [0, 3, 6], sizes = [1, 16, 16], strides = [1, 1, 1]} : vector<2x22x22xf32> to vector<1x16x16xf32>
    %498 = vector.shape_cast %497 : vector<1x16x16xf32> to vector<16x16xf32>
    %499 = vector.broadcast %496 : f32 to vector<16x16xf32>
    %500 = arith.mulf %499, %498 : vector<16x16xf32>
    %501 = arith.addf %492, %500 : vector<16x16xf32>
    %c54_i32_87 = arith.constant 54 : i32
    %502 = arith.addi %5, %c54_i32_87 : i32
    %c1_i32_88 = arith.constant 1 : i32
    %503 = arith.addi %502, %c1_i32_88 : i32
    %504 = arith.index_cast %503 : i32 to index
    %505 = memref.load %arg3[%504] : memref<686xf32, #tpu.memory_space<smem>>
    %506 = vector.extract_strided_slice %4 {offsets = [1, 3, 6], sizes = [1, 16, 16], strides = [1, 1, 1]} : vector<2x22x22xf32> to vector<1x16x16xf32>
    %507 = vector.shape_cast %506 : vector<1x16x16xf32> to vector<16x16xf32>
    %508 = vector.broadcast %505 : f32 to vector<16x16xf32>
    %509 = arith.mulf %508, %507 : vector<16x16xf32>
    %510 = arith.addf %501, %509 : vector<16x16xf32>
    %c56_i32 = arith.constant 56 : i32
    %511 = arith.addi %5, %c56_i32 : i32
    %c0_i32_89 = arith.constant 0 : i32
    %512 = arith.addi %511, %c0_i32_89 : i32
    %513 = arith.index_cast %512 : i32 to index
    %514 = memref.load %arg3[%513] : memref<686xf32, #tpu.memory_space<smem>>
    %515 = vector.extract_strided_slice %4 {offsets = [0, 4, 0], sizes = [1, 16, 16], strides = [1, 1, 1]} : vector<2x22x22xf32> to vector<1x16x16xf32>
    %516 = vector.shape_cast %515 : vector<1x16x16xf32> to vector<16x16xf32>
    %517 = vector.broadcast %514 : f32 to vector<16x16xf32>
    %518 = arith.mulf %517, %516 : vector<16x16xf32>
    %519 = arith.addf %510, %518 : vector<16x16xf32>
    %c56_i32_90 = arith.constant 56 : i32
    %520 = arith.addi %5, %c56_i32_90 : i32
    %c1_i32_91 = arith.constant 1 : i32
    %521 = arith.addi %520, %c1_i32_91 : i32
    %522 = arith.index_cast %521 : i32 to index
    %523 = memref.load %arg3[%522] : memref<686xf32, #tpu.memory_space<smem>>
    %524 = vector.extract_strided_slice %4 {offsets = [1, 4, 0], sizes = [1, 16, 16], strides = [1, 1, 1]} : vector<2x22x22xf32> to vector<1x16x16xf32>
    %525 = vector.shape_cast %524 : vector<1x16x16xf32> to vector<16x16xf32>
    %526 = vector.broadcast %523 : f32 to vector<16x16xf32>
    %527 = arith.mulf %526, %525 : vector<16x16xf32>
    %528 = arith.addf %519, %527 : vector<16x16xf32>
    %c58_i32 = arith.constant 58 : i32
    %529 = arith.addi %5, %c58_i32 : i32
    %c0_i32_92 = arith.constant 0 : i32
    %530 = arith.addi %529, %c0_i32_92 : i32
    %531 = arith.index_cast %530 : i32 to index
    %532 = memref.load %arg3[%531] : memref<686xf32, #tpu.memory_space<smem>>
    %533 = vector.extract_strided_slice %4 {offsets = [0, 4, 1], sizes = [1, 16, 16], strides = [1, 1, 1]} : vector<2x22x22xf32> to vector<1x16x16xf32>
    %534 = vector.shape_cast %533 : vector<1x16x16xf32> to vector<16x16xf32>
    %535 = vector.broadcast %532 : f32 to vector<16x16xf32>
    %536 = arith.mulf %535, %534 : vector<16x16xf32>
    %537 = arith.addf %528, %536 : vector<16x16xf32>
    %c58_i32_93 = arith.constant 58 : i32
    %538 = arith.addi %5, %c58_i32_93 : i32
    %c1_i32_94 = arith.constant 1 : i32
    %539 = arith.addi %538, %c1_i32_94 : i32
    %540 = arith.index_cast %539 : i32 to index
    %541 = memref.load %arg3[%540] : memref<686xf32, #tpu.memory_space<smem>>
    %542 = vector.extract_strided_slice %4 {offsets = [1, 4, 1], sizes = [1, 16, 16], strides = [1, 1, 1]} : vector<2x22x22xf32> to vector<1x16x16xf32>
    %543 = vector.shape_cast %542 : vector<1x16x16xf32> to vector<16x16xf32>
    %544 = vector.broadcast %541 : f32 to vector<16x16xf32>
    %545 = arith.mulf %544, %543 : vector<16x16xf32>
    %546 = arith.addf %537, %545 : vector<16x16xf32>
    %c60_i32 = arith.constant 60 : i32
    %547 = arith.addi %5, %c60_i32 : i32
    %c0_i32_95 = arith.constant 0 : i32
    %548 = arith.addi %547, %c0_i32_95 : i32
    %549 = arith.index_cast %548 : i32 to index
    %550 = memref.load %arg3[%549] : memref<686xf32, #tpu.memory_space<smem>>
    %551 = vector.extract_strided_slice %4 {offsets = [0, 4, 2], sizes = [1, 16, 16], strides = [1, 1, 1]} : vector<2x22x22xf32> to vector<1x16x16xf32>
    %552 = vector.shape_cast %551 : vector<1x16x16xf32> to vector<16x16xf32>
    %553 = vector.broadcast %550 : f32 to vector<16x16xf32>
    %554 = arith.mulf %553, %552 : vector<16x16xf32>
    %555 = arith.addf %546, %554 : vector<16x16xf32>
    %c60_i32_96 = arith.constant 60 : i32
    %556 = arith.addi %5, %c60_i32_96 : i32
    %c1_i32_97 = arith.constant 1 : i32
    %557 = arith.addi %556, %c1_i32_97 : i32
    %558 = arith.index_cast %557 : i32 to index
    %559 = memref.load %arg3[%558] : memref<686xf32, #tpu.memory_space<smem>>
    %560 = vector.extract_strided_slice %4 {offsets = [1, 4, 2], sizes = [1, 16, 16], strides = [1, 1, 1]} : vector<2x22x22xf32> to vector<1x16x16xf32>
    %561 = vector.shape_cast %560 : vector<1x16x16xf32> to vector<16x16xf32>
    %562 = vector.broadcast %559 : f32 to vector<16x16xf32>
    %563 = arith.mulf %562, %561 : vector<16x16xf32>
    %564 = arith.addf %555, %563 : vector<16x16xf32>
    %c62_i32 = arith.constant 62 : i32
    %565 = arith.addi %5, %c62_i32 : i32
    %c0_i32_98 = arith.constant 0 : i32
    %566 = arith.addi %565, %c0_i32_98 : i32
    %567 = arith.index_cast %566 : i32 to index
    %568 = memref.load %arg3[%567] : memref<686xf32, #tpu.memory_space<smem>>
    %569 = vector.extract_strided_slice %4 {offsets = [0, 4, 3], sizes = [1, 16, 16], strides = [1, 1, 1]} : vector<2x22x22xf32> to vector<1x16x16xf32>
    %570 = vector.shape_cast %569 : vector<1x16x16xf32> to vector<16x16xf32>
    %571 = vector.broadcast %568 : f32 to vector<16x16xf32>
    %572 = arith.mulf %571, %570 : vector<16x16xf32>
    %573 = arith.addf %564, %572 : vector<16x16xf32>
    %c62_i32_99 = arith.constant 62 : i32
    %574 = arith.addi %5, %c62_i32_99 : i32
    %c1_i32_100 = arith.constant 1 : i32
    %575 = arith.addi %574, %c1_i32_100 : i32
    %576 = arith.index_cast %575 : i32 to index
    %577 = memref.load %arg3[%576] : memref<686xf32, #tpu.memory_space<smem>>
    %578 = vector.extract_strided_slice %4 {offsets = [1, 4, 3], sizes = [1, 16, 16], strides = [1, 1, 1]} : vector<2x22x22xf32> to vector<1x16x16xf32>
    %579 = vector.shape_cast %578 : vector<1x16x16xf32> to vector<16x16xf32>
    %580 = vector.broadcast %577 : f32 to vector<16x16xf32>
    %581 = arith.mulf %580, %579 : vector<16x16xf32>
    %582 = arith.addf %573, %581 : vector<16x16xf32>
    %c64_i32 = arith.constant 64 : i32
    %583 = arith.addi %5, %c64_i32 : i32
    %c0_i32_101 = arith.constant 0 : i32
    %584 = arith.addi %583, %c0_i32_101 : i32
    %585 = arith.index_cast %584 : i32 to index
    %586 = memref.load %arg3[%585] : memref<686xf32, #tpu.memory_space<smem>>
    %587 = vector.extract_strided_slice %4 {offsets = [0, 4, 4], sizes = [1, 16, 16], strides = [1, 1, 1]} : vector<2x22x22xf32> to vector<1x16x16xf32>
    %588 = vector.shape_cast %587 : vector<1x16x16xf32> to vector<16x16xf32>
    %589 = vector.broadcast %586 : f32 to vector<16x16xf32>
    %590 = arith.mulf %589, %588 : vector<16x16xf32>
    %591 = arith.addf %582, %590 : vector<16x16xf32>
    %c64_i32_102 = arith.constant 64 : i32
    %592 = arith.addi %5, %c64_i32_102 : i32
    %c1_i32_103 = arith.constant 1 : i32
    %593 = arith.addi %592, %c1_i32_103 : i32
    %594 = arith.index_cast %593 : i32 to index
    %595 = memref.load %arg3[%594] : memref<686xf32, #tpu.memory_space<smem>>
    %596 = vector.extract_strided_slice %4 {offsets = [1, 4, 4], sizes = [1, 16, 16], strides = [1, 1, 1]} : vector<2x22x22xf32> to vector<1x16x16xf32>
    %597 = vector.shape_cast %596 : vector<1x16x16xf32> to vector<16x16xf32>
    %598 = vector.broadcast %595 : f32 to vector<16x16xf32>
    %599 = arith.mulf %598, %597 : vector<16x16xf32>
    %600 = arith.addf %591, %599 : vector<16x16xf32>
    %c66_i32 = arith.constant 66 : i32
    %601 = arith.addi %5, %c66_i32 : i32
    %c0_i32_104 = arith.constant 0 : i32
    %602 = arith.addi %601, %c0_i32_104 : i32
    %603 = arith.index_cast %602 : i32 to index
    %604 = memref.load %arg3[%603] : memref<686xf32, #tpu.memory_space<smem>>
    %605 = vector.extract_strided_slice %4 {offsets = [0, 4, 5], sizes = [1, 16, 16], strides = [1, 1, 1]} : vector<2x22x22xf32> to vector<1x16x16xf32>
    %606 = vector.shape_cast %605 : vector<1x16x16xf32> to vector<16x16xf32>
    %607 = vector.broadcast %604 : f32 to vector<16x16xf32>
    %608 = arith.mulf %607, %606 : vector<16x16xf32>
    %609 = arith.addf %600, %608 : vector<16x16xf32>
    %c66_i32_105 = arith.constant 66 : i32
    %610 = arith.addi %5, %c66_i32_105 : i32
    %c1_i32_106 = arith.constant 1 : i32
    %611 = arith.addi %610, %c1_i32_106 : i32
    %612 = arith.index_cast %611 : i32 to index
    %613 = memref.load %arg3[%612] : memref<686xf32, #tpu.memory_space<smem>>
    %614 = vector.extract_strided_slice %4 {offsets = [1, 4, 5], sizes = [1, 16, 16], strides = [1, 1, 1]} : vector<2x22x22xf32> to vector<1x16x16xf32>
    %615 = vector.shape_cast %614 : vector<1x16x16xf32> to vector<16x16xf32>
    %616 = vector.broadcast %613 : f32 to vector<16x16xf32>
    %617 = arith.mulf %616, %615 : vector<16x16xf32>
    %618 = arith.addf %609, %617 : vector<16x16xf32>
    %c68_i32 = arith.constant 68 : i32
    %619 = arith.addi %5, %c68_i32 : i32
    %c0_i32_107 = arith.constant 0 : i32
    %620 = arith.addi %619, %c0_i32_107 : i32
    %621 = arith.index_cast %620 : i32 to index
    %622 = memref.load %arg3[%621] : memref<686xf32, #tpu.memory_space<smem>>
    %623 = vector.extract_strided_slice %4 {offsets = [0, 4, 6], sizes = [1, 16, 16], strides = [1, 1, 1]} : vector<2x22x22xf32> to vector<1x16x16xf32>
    %624 = vector.shape_cast %623 : vector<1x16x16xf32> to vector<16x16xf32>
    %625 = vector.broadcast %622 : f32 to vector<16x16xf32>
    %626 = arith.mulf %625, %624 : vector<16x16xf32>
    %627 = arith.addf %618, %626 : vector<16x16xf32>
    %c68_i32_108 = arith.constant 68 : i32
    %628 = arith.addi %5, %c68_i32_108 : i32
    %c1_i32_109 = arith.constant 1 : i32
    %629 = arith.addi %628, %c1_i32_109 : i32
    %630 = arith.index_cast %629 : i32 to index
    %631 = memref.load %arg3[%630] : memref<686xf32, #tpu.memory_space<smem>>
    %632 = vector.extract_strided_slice %4 {offsets = [1, 4, 6], sizes = [1, 16, 16], strides = [1, 1, 1]} : vector<2x22x22xf32> to vector<1x16x16xf32>
    %633 = vector.shape_cast %632 : vector<1x16x16xf32> to vector<16x16xf32>
    %634 = vector.broadcast %631 : f32 to vector<16x16xf32>
    %635 = arith.mulf %634, %633 : vector<16x16xf32>
    %636 = arith.addf %627, %635 : vector<16x16xf32>
    %c70_i32 = arith.constant 70 : i32
    %637 = arith.addi %5, %c70_i32 : i32
    %c0_i32_110 = arith.constant 0 : i32
    %638 = arith.addi %637, %c0_i32_110 : i32
    %639 = arith.index_cast %638 : i32 to index
    %640 = memref.load %arg3[%639] : memref<686xf32, #tpu.memory_space<smem>>
    %641 = vector.extract_strided_slice %4 {offsets = [0, 5, 0], sizes = [1, 16, 16], strides = [1, 1, 1]} : vector<2x22x22xf32> to vector<1x16x16xf32>
    %642 = vector.shape_cast %641 : vector<1x16x16xf32> to vector<16x16xf32>
    %643 = vector.broadcast %640 : f32 to vector<16x16xf32>
    %644 = arith.mulf %643, %642 : vector<16x16xf32>
    %645 = arith.addf %636, %644 : vector<16x16xf32>
    %c70_i32_111 = arith.constant 70 : i32
    %646 = arith.addi %5, %c70_i32_111 : i32
    %c1_i32_112 = arith.constant 1 : i32
    %647 = arith.addi %646, %c1_i32_112 : i32
    %648 = arith.index_cast %647 : i32 to index
    %649 = memref.load %arg3[%648] : memref<686xf32, #tpu.memory_space<smem>>
    %650 = vector.extract_strided_slice %4 {offsets = [1, 5, 0], sizes = [1, 16, 16], strides = [1, 1, 1]} : vector<2x22x22xf32> to vector<1x16x16xf32>
    %651 = vector.shape_cast %650 : vector<1x16x16xf32> to vector<16x16xf32>
    %652 = vector.broadcast %649 : f32 to vector<16x16xf32>
    %653 = arith.mulf %652, %651 : vector<16x16xf32>
    %654 = arith.addf %645, %653 : vector<16x16xf32>
    %c72_i32 = arith.constant 72 : i32
    %655 = arith.addi %5, %c72_i32 : i32
    %c0_i32_113 = arith.constant 0 : i32
    %656 = arith.addi %655, %c0_i32_113 : i32
    %657 = arith.index_cast %656 : i32 to index
    %658 = memref.load %arg3[%657] : memref<686xf32, #tpu.memory_space<smem>>
    %659 = vector.extract_strided_slice %4 {offsets = [0, 5, 1], sizes = [1, 16, 16], strides = [1, 1, 1]} : vector<2x22x22xf32> to vector<1x16x16xf32>
    %660 = vector.shape_cast %659 : vector<1x16x16xf32> to vector<16x16xf32>
    %661 = vector.broadcast %658 : f32 to vector<16x16xf32>
    %662 = arith.mulf %661, %660 : vector<16x16xf32>
    %663 = arith.addf %654, %662 : vector<16x16xf32>
    %c72_i32_114 = arith.constant 72 : i32
    %664 = arith.addi %5, %c72_i32_114 : i32
    %c1_i32_115 = arith.constant 1 : i32
    %665 = arith.addi %664, %c1_i32_115 : i32
    %666 = arith.index_cast %665 : i32 to index
    %667 = memref.load %arg3[%666] : memref<686xf32, #tpu.memory_space<smem>>
    %668 = vector.extract_strided_slice %4 {offsets = [1, 5, 1], sizes = [1, 16, 16], strides = [1, 1, 1]} : vector<2x22x22xf32> to vector<1x16x16xf32>
    %669 = vector.shape_cast %668 : vector<1x16x16xf32> to vector<16x16xf32>
    %670 = vector.broadcast %667 : f32 to vector<16x16xf32>
    %671 = arith.mulf %670, %669 : vector<16x16xf32>
    %672 = arith.addf %663, %671 : vector<16x16xf32>
    %c74_i32 = arith.constant 74 : i32
    %673 = arith.addi %5, %c74_i32 : i32
    %c0_i32_116 = arith.constant 0 : i32
    %674 = arith.addi %673, %c0_i32_116 : i32
    %675 = arith.index_cast %674 : i32 to index
    %676 = memref.load %arg3[%675] : memref<686xf32, #tpu.memory_space<smem>>
    %677 = vector.extract_strided_slice %4 {offsets = [0, 5, 2], sizes = [1, 16, 16], strides = [1, 1, 1]} : vector<2x22x22xf32> to vector<1x16x16xf32>
    %678 = vector.shape_cast %677 : vector<1x16x16xf32> to vector<16x16xf32>
    %679 = vector.broadcast %676 : f32 to vector<16x16xf32>
    %680 = arith.mulf %679, %678 : vector<16x16xf32>
    %681 = arith.addf %672, %680 : vector<16x16xf32>
    %c74_i32_117 = arith.constant 74 : i32
    %682 = arith.addi %5, %c74_i32_117 : i32
    %c1_i32_118 = arith.constant 1 : i32
    %683 = arith.addi %682, %c1_i32_118 : i32
    %684 = arith.index_cast %683 : i32 to index
    %685 = memref.load %arg3[%684] : memref<686xf32, #tpu.memory_space<smem>>
    %686 = vector.extract_strided_slice %4 {offsets = [1, 5, 2], sizes = [1, 16, 16], strides = [1, 1, 1]} : vector<2x22x22xf32> to vector<1x16x16xf32>
    %687 = vector.shape_cast %686 : vector<1x16x16xf32> to vector<16x16xf32>
    %688 = vector.broadcast %685 : f32 to vector<16x16xf32>
    %689 = arith.mulf %688, %687 : vector<16x16xf32>
    %690 = arith.addf %681, %689 : vector<16x16xf32>
    %c76_i32 = arith.constant 76 : i32
    %691 = arith.addi %5, %c76_i32 : i32
    %c0_i32_119 = arith.constant 0 : i32
    %692 = arith.addi %691, %c0_i32_119 : i32
    %693 = arith.index_cast %692 : i32 to index
    %694 = memref.load %arg3[%693] : memref<686xf32, #tpu.memory_space<smem>>
    %695 = vector.extract_strided_slice %4 {offsets = [0, 5, 3], sizes = [1, 16, 16], strides = [1, 1, 1]} : vector<2x22x22xf32> to vector<1x16x16xf32>
    %696 = vector.shape_cast %695 : vector<1x16x16xf32> to vector<16x16xf32>
    %697 = vector.broadcast %694 : f32 to vector<16x16xf32>
    %698 = arith.mulf %697, %696 : vector<16x16xf32>
    %699 = arith.addf %690, %698 : vector<16x16xf32>
    %c76_i32_120 = arith.constant 76 : i32
    %700 = arith.addi %5, %c76_i32_120 : i32
    %c1_i32_121 = arith.constant 1 : i32
    %701 = arith.addi %700, %c1_i32_121 : i32
    %702 = arith.index_cast %701 : i32 to index
    %703 = memref.load %arg3[%702] : memref<686xf32, #tpu.memory_space<smem>>
    %704 = vector.extract_strided_slice %4 {offsets = [1, 5, 3], sizes = [1, 16, 16], strides = [1, 1, 1]} : vector<2x22x22xf32> to vector<1x16x16xf32>
    %705 = vector.shape_cast %704 : vector<1x16x16xf32> to vector<16x16xf32>
    %706 = vector.broadcast %703 : f32 to vector<16x16xf32>
    %707 = arith.mulf %706, %705 : vector<16x16xf32>
    %708 = arith.addf %699, %707 : vector<16x16xf32>
    %c78_i32 = arith.constant 78 : i32
    %709 = arith.addi %5, %c78_i32 : i32
    %c0_i32_122 = arith.constant 0 : i32
    %710 = arith.addi %709, %c0_i32_122 : i32
    %711 = arith.index_cast %710 : i32 to index
    %712 = memref.load %arg3[%711] : memref<686xf32, #tpu.memory_space<smem>>
    %713 = vector.extract_strided_slice %4 {offsets = [0, 5, 4], sizes = [1, 16, 16], strides = [1, 1, 1]} : vector<2x22x22xf32> to vector<1x16x16xf32>
    %714 = vector.shape_cast %713 : vector<1x16x16xf32> to vector<16x16xf32>
    %715 = vector.broadcast %712 : f32 to vector<16x16xf32>
    %716 = arith.mulf %715, %714 : vector<16x16xf32>
    %717 = arith.addf %708, %716 : vector<16x16xf32>
    %c78_i32_123 = arith.constant 78 : i32
    %718 = arith.addi %5, %c78_i32_123 : i32
    %c1_i32_124 = arith.constant 1 : i32
    %719 = arith.addi %718, %c1_i32_124 : i32
    %720 = arith.index_cast %719 : i32 to index
    %721 = memref.load %arg3[%720] : memref<686xf32, #tpu.memory_space<smem>>
    %722 = vector.extract_strided_slice %4 {offsets = [1, 5, 4], sizes = [1, 16, 16], strides = [1, 1, 1]} : vector<2x22x22xf32> to vector<1x16x16xf32>
    %723 = vector.shape_cast %722 : vector<1x16x16xf32> to vector<16x16xf32>
    %724 = vector.broadcast %721 : f32 to vector<16x16xf32>
    %725 = arith.mulf %724, %723 : vector<16x16xf32>
    %726 = arith.addf %717, %725 : vector<16x16xf32>
    %c80_i32 = arith.constant 80 : i32
    %727 = arith.addi %5, %c80_i32 : i32
    %c0_i32_125 = arith.constant 0 : i32
    %728 = arith.addi %727, %c0_i32_125 : i32
    %729 = arith.index_cast %728 : i32 to index
    %730 = memref.load %arg3[%729] : memref<686xf32, #tpu.memory_space<smem>>
    %731 = vector.extract_strided_slice %4 {offsets = [0, 5, 5], sizes = [1, 16, 16], strides = [1, 1, 1]} : vector<2x22x22xf32> to vector<1x16x16xf32>
    %732 = vector.shape_cast %731 : vector<1x16x16xf32> to vector<16x16xf32>
    %733 = vector.broadcast %730 : f32 to vector<16x16xf32>
    %734 = arith.mulf %733, %732 : vector<16x16xf32>
    %735 = arith.addf %726, %734 : vector<16x16xf32>
    %c80_i32_126 = arith.constant 80 : i32
    %736 = arith.addi %5, %c80_i32_126 : i32
    %c1_i32_127 = arith.constant 1 : i32
    %737 = arith.addi %736, %c1_i32_127 : i32
    %738 = arith.index_cast %737 : i32 to index
    %739 = memref.load %arg3[%738] : memref<686xf32, #tpu.memory_space<smem>>
    %740 = vector.extract_strided_slice %4 {offsets = [1, 5, 5], sizes = [1, 16, 16], strides = [1, 1, 1]} : vector<2x22x22xf32> to vector<1x16x16xf32>
    %741 = vector.shape_cast %740 : vector<1x16x16xf32> to vector<16x16xf32>
    %742 = vector.broadcast %739 : f32 to vector<16x16xf32>
    %743 = arith.mulf %742, %741 : vector<16x16xf32>
    %744 = arith.addf %735, %743 : vector<16x16xf32>
    %c82_i32 = arith.constant 82 : i32
    %745 = arith.addi %5, %c82_i32 : i32
    %c0_i32_128 = arith.constant 0 : i32
    %746 = arith.addi %745, %c0_i32_128 : i32
    %747 = arith.index_cast %746 : i32 to index
    %748 = memref.load %arg3[%747] : memref<686xf32, #tpu.memory_space<smem>>
    %749 = vector.extract_strided_slice %4 {offsets = [0, 5, 6], sizes = [1, 16, 16], strides = [1, 1, 1]} : vector<2x22x22xf32> to vector<1x16x16xf32>
    %750 = vector.shape_cast %749 : vector<1x16x16xf32> to vector<16x16xf32>
    %751 = vector.broadcast %748 : f32 to vector<16x16xf32>
    %752 = arith.mulf %751, %750 : vector<16x16xf32>
    %753 = arith.addf %744, %752 : vector<16x16xf32>
    %c82_i32_129 = arith.constant 82 : i32
    %754 = arith.addi %5, %c82_i32_129 : i32
    %c1_i32_130 = arith.constant 1 : i32
    %755 = arith.addi %754, %c1_i32_130 : i32
    %756 = arith.index_cast %755 : i32 to index
    %757 = memref.load %arg3[%756] : memref<686xf32, #tpu.memory_space<smem>>
    %758 = vector.extract_strided_slice %4 {offsets = [1, 5, 6], sizes = [1, 16, 16], strides = [1, 1, 1]} : vector<2x22x22xf32> to vector<1x16x16xf32>
    %759 = vector.shape_cast %758 : vector<1x16x16xf32> to vector<16x16xf32>
    %760 = vector.broadcast %757 : f32 to vector<16x16xf32>
    %761 = arith.mulf %760, %759 : vector<16x16xf32>
    %762 = arith.addf %753, %761 : vector<16x16xf32>
    %c84_i32 = arith.constant 84 : i32
    %763 = arith.addi %5, %c84_i32 : i32
    %c0_i32_131 = arith.constant 0 : i32
    %764 = arith.addi %763, %c0_i32_131 : i32
    %765 = arith.index_cast %764 : i32 to index
    %766 = memref.load %arg3[%765] : memref<686xf32, #tpu.memory_space<smem>>
    %767 = vector.extract_strided_slice %4 {offsets = [0, 6, 0], sizes = [1, 16, 16], strides = [1, 1, 1]} : vector<2x22x22xf32> to vector<1x16x16xf32>
    %768 = vector.shape_cast %767 : vector<1x16x16xf32> to vector<16x16xf32>
    %769 = vector.broadcast %766 : f32 to vector<16x16xf32>
    %770 = arith.mulf %769, %768 : vector<16x16xf32>
    %771 = arith.addf %762, %770 : vector<16x16xf32>
    %c84_i32_132 = arith.constant 84 : i32
    %772 = arith.addi %5, %c84_i32_132 : i32
    %c1_i32_133 = arith.constant 1 : i32
    %773 = arith.addi %772, %c1_i32_133 : i32
    %774 = arith.index_cast %773 : i32 to index
    %775 = memref.load %arg3[%774] : memref<686xf32, #tpu.memory_space<smem>>
    %776 = vector.extract_strided_slice %4 {offsets = [1, 6, 0], sizes = [1, 16, 16], strides = [1, 1, 1]} : vector<2x22x22xf32> to vector<1x16x16xf32>
    %777 = vector.shape_cast %776 : vector<1x16x16xf32> to vector<16x16xf32>
    %778 = vector.broadcast %775 : f32 to vector<16x16xf32>
    %779 = arith.mulf %778, %777 : vector<16x16xf32>
    %780 = arith.addf %771, %779 : vector<16x16xf32>
    %c86_i32 = arith.constant 86 : i32
    %781 = arith.addi %5, %c86_i32 : i32
    %c0_i32_134 = arith.constant 0 : i32
    %782 = arith.addi %781, %c0_i32_134 : i32
    %783 = arith.index_cast %782 : i32 to index
    %784 = memref.load %arg3[%783] : memref<686xf32, #tpu.memory_space<smem>>
    %785 = vector.extract_strided_slice %4 {offsets = [0, 6, 1], sizes = [1, 16, 16], strides = [1, 1, 1]} : vector<2x22x22xf32> to vector<1x16x16xf32>
    %786 = vector.shape_cast %785 : vector<1x16x16xf32> to vector<16x16xf32>
    %787 = vector.broadcast %784 : f32 to vector<16x16xf32>
    %788 = arith.mulf %787, %786 : vector<16x16xf32>
    %789 = arith.addf %780, %788 : vector<16x16xf32>
    %c86_i32_135 = arith.constant 86 : i32
    %790 = arith.addi %5, %c86_i32_135 : i32
    %c1_i32_136 = arith.constant 1 : i32
    %791 = arith.addi %790, %c1_i32_136 : i32
    %792 = arith.index_cast %791 : i32 to index
    %793 = memref.load %arg3[%792] : memref<686xf32, #tpu.memory_space<smem>>
    %794 = vector.extract_strided_slice %4 {offsets = [1, 6, 1], sizes = [1, 16, 16], strides = [1, 1, 1]} : vector<2x22x22xf32> to vector<1x16x16xf32>
    %795 = vector.shape_cast %794 : vector<1x16x16xf32> to vector<16x16xf32>
    %796 = vector.broadcast %793 : f32 to vector<16x16xf32>
    %797 = arith.mulf %796, %795 : vector<16x16xf32>
    %798 = arith.addf %789, %797 : vector<16x16xf32>
    %c88_i32 = arith.constant 88 : i32
    %799 = arith.addi %5, %c88_i32 : i32
    %c0_i32_137 = arith.constant 0 : i32
    %800 = arith.addi %799, %c0_i32_137 : i32
    %801 = arith.index_cast %800 : i32 to index
    %802 = memref.load %arg3[%801] : memref<686xf32, #tpu.memory_space<smem>>
    %803 = vector.extract_strided_slice %4 {offsets = [0, 6, 2], sizes = [1, 16, 16], strides = [1, 1, 1]} : vector<2x22x22xf32> to vector<1x16x16xf32>
    %804 = vector.shape_cast %803 : vector<1x16x16xf32> to vector<16x16xf32>
    %805 = vector.broadcast %802 : f32 to vector<16x16xf32>
    %806 = arith.mulf %805, %804 : vector<16x16xf32>
    %807 = arith.addf %798, %806 : vector<16x16xf32>
    %c88_i32_138 = arith.constant 88 : i32
    %808 = arith.addi %5, %c88_i32_138 : i32
    %c1_i32_139 = arith.constant 1 : i32
    %809 = arith.addi %808, %c1_i32_139 : i32
    %810 = arith.index_cast %809 : i32 to index
    %811 = memref.load %arg3[%810] : memref<686xf32, #tpu.memory_space<smem>>
    %812 = vector.extract_strided_slice %4 {offsets = [1, 6, 2], sizes = [1, 16, 16], strides = [1, 1, 1]} : vector<2x22x22xf32> to vector<1x16x16xf32>
    %813 = vector.shape_cast %812 : vector<1x16x16xf32> to vector<16x16xf32>
    %814 = vector.broadcast %811 : f32 to vector<16x16xf32>
    %815 = arith.mulf %814, %813 : vector<16x16xf32>
    %816 = arith.addf %807, %815 : vector<16x16xf32>
    %c90_i32 = arith.constant 90 : i32
    %817 = arith.addi %5, %c90_i32 : i32
    %c0_i32_140 = arith.constant 0 : i32
    %818 = arith.addi %817, %c0_i32_140 : i32
    %819 = arith.index_cast %818 : i32 to index
    %820 = memref.load %arg3[%819] : memref<686xf32, #tpu.memory_space<smem>>
    %821 = vector.extract_strided_slice %4 {offsets = [0, 6, 3], sizes = [1, 16, 16], strides = [1, 1, 1]} : vector<2x22x22xf32> to vector<1x16x16xf32>
    %822 = vector.shape_cast %821 : vector<1x16x16xf32> to vector<16x16xf32>
    %823 = vector.broadcast %820 : f32 to vector<16x16xf32>
    %824 = arith.mulf %823, %822 : vector<16x16xf32>
    %825 = arith.addf %816, %824 : vector<16x16xf32>
    %c90_i32_141 = arith.constant 90 : i32
    %826 = arith.addi %5, %c90_i32_141 : i32
    %c1_i32_142 = arith.constant 1 : i32
    %827 = arith.addi %826, %c1_i32_142 : i32
    %828 = arith.index_cast %827 : i32 to index
    %829 = memref.load %arg3[%828] : memref<686xf32, #tpu.memory_space<smem>>
    %830 = vector.extract_strided_slice %4 {offsets = [1, 6, 3], sizes = [1, 16, 16], strides = [1, 1, 1]} : vector<2x22x22xf32> to vector<1x16x16xf32>
    %831 = vector.shape_cast %830 : vector<1x16x16xf32> to vector<16x16xf32>
    %832 = vector.broadcast %829 : f32 to vector<16x16xf32>
    %833 = arith.mulf %832, %831 : vector<16x16xf32>
    %834 = arith.addf %825, %833 : vector<16x16xf32>
    %c92_i32 = arith.constant 92 : i32
    %835 = arith.addi %5, %c92_i32 : i32
    %c0_i32_143 = arith.constant 0 : i32
    %836 = arith.addi %835, %c0_i32_143 : i32
    %837 = arith.index_cast %836 : i32 to index
    %838 = memref.load %arg3[%837] : memref<686xf32, #tpu.memory_space<smem>>
    %839 = vector.extract_strided_slice %4 {offsets = [0, 6, 4], sizes = [1, 16, 16], strides = [1, 1, 1]} : vector<2x22x22xf32> to vector<1x16x16xf32>
    %840 = vector.shape_cast %839 : vector<1x16x16xf32> to vector<16x16xf32>
    %841 = vector.broadcast %838 : f32 to vector<16x16xf32>
    %842 = arith.mulf %841, %840 : vector<16x16xf32>
    %843 = arith.addf %834, %842 : vector<16x16xf32>
    %c92_i32_144 = arith.constant 92 : i32
    %844 = arith.addi %5, %c92_i32_144 : i32
    %c1_i32_145 = arith.constant 1 : i32
    %845 = arith.addi %844, %c1_i32_145 : i32
    %846 = arith.index_cast %845 : i32 to index
    %847 = memref.load %arg3[%846] : memref<686xf32, #tpu.memory_space<smem>>
    %848 = vector.extract_strided_slice %4 {offsets = [1, 6, 4], sizes = [1, 16, 16], strides = [1, 1, 1]} : vector<2x22x22xf32> to vector<1x16x16xf32>
    %849 = vector.shape_cast %848 : vector<1x16x16xf32> to vector<16x16xf32>
    %850 = vector.broadcast %847 : f32 to vector<16x16xf32>
    %851 = arith.mulf %850, %849 : vector<16x16xf32>
    %852 = arith.addf %843, %851 : vector<16x16xf32>
    %c94_i32 = arith.constant 94 : i32
    %853 = arith.addi %5, %c94_i32 : i32
    %c0_i32_146 = arith.constant 0 : i32
    %854 = arith.addi %853, %c0_i32_146 : i32
    %855 = arith.index_cast %854 : i32 to index
    %856 = memref.load %arg3[%855] : memref<686xf32, #tpu.memory_space<smem>>
    %857 = vector.extract_strided_slice %4 {offsets = [0, 6, 5], sizes = [1, 16, 16], strides = [1, 1, 1]} : vector<2x22x22xf32> to vector<1x16x16xf32>
    %858 = vector.shape_cast %857 : vector<1x16x16xf32> to vector<16x16xf32>
    %859 = vector.broadcast %856 : f32 to vector<16x16xf32>
    %860 = arith.mulf %859, %858 : vector<16x16xf32>
    %861 = arith.addf %852, %860 : vector<16x16xf32>
    %c94_i32_147 = arith.constant 94 : i32
    %862 = arith.addi %5, %c94_i32_147 : i32
    %c1_i32_148 = arith.constant 1 : i32
    %863 = arith.addi %862, %c1_i32_148 : i32
    %864 = arith.index_cast %863 : i32 to index
    %865 = memref.load %arg3[%864] : memref<686xf32, #tpu.memory_space<smem>>
    %866 = vector.extract_strided_slice %4 {offsets = [1, 6, 5], sizes = [1, 16, 16], strides = [1, 1, 1]} : vector<2x22x22xf32> to vector<1x16x16xf32>
    %867 = vector.shape_cast %866 : vector<1x16x16xf32> to vector<16x16xf32>
    %868 = vector.broadcast %865 : f32 to vector<16x16xf32>
    %869 = arith.mulf %868, %867 : vector<16x16xf32>
    %870 = arith.addf %861, %869 : vector<16x16xf32>
    %c96_i32 = arith.constant 96 : i32
    %871 = arith.addi %5, %c96_i32 : i32
    %c0_i32_149 = arith.constant 0 : i32
    %872 = arith.addi %871, %c0_i32_149 : i32
    %873 = arith.index_cast %872 : i32 to index
    %874 = memref.load %arg3[%873] : memref<686xf32, #tpu.memory_space<smem>>
    %875 = vector.extract_strided_slice %4 {offsets = [0, 6, 6], sizes = [1, 16, 16], strides = [1, 1, 1]} : vector<2x22x22xf32> to vector<1x16x16xf32>
    %876 = vector.shape_cast %875 : vector<1x16x16xf32> to vector<16x16xf32>
    %877 = vector.broadcast %874 : f32 to vector<16x16xf32>
    %878 = arith.mulf %877, %876 : vector<16x16xf32>
    %879 = arith.addf %870, %878 : vector<16x16xf32>
    %c96_i32_150 = arith.constant 96 : i32
    %880 = arith.addi %5, %c96_i32_150 : i32
    %c1_i32_151 = arith.constant 1 : i32
    %881 = arith.addi %880, %c1_i32_151 : i32
    %882 = arith.index_cast %881 : i32 to index
    %883 = memref.load %arg3[%882] : memref<686xf32, #tpu.memory_space<smem>>
    %884 = vector.extract_strided_slice %4 {offsets = [1, 6, 6], sizes = [1, 16, 16], strides = [1, 1, 1]} : vector<2x22x22xf32> to vector<1x16x16xf32>
    %885 = vector.shape_cast %884 : vector<1x16x16xf32> to vector<16x16xf32>
    %886 = vector.broadcast %883 : f32 to vector<16x16xf32>
    %887 = arith.mulf %886, %885 : vector<16x16xf32>
    %888 = arith.addf %879, %887 : vector<16x16xf32>
    %c0_152 = arith.constant 0 : index
    %c0_153 = arith.constant 0 : index
    %889 = vector.load %arg6[%c0_152, %c0_153] : memref<16x16xf32, #tpu.memory_space<vmem>>, vector<16x16xf32>
    %890 = arith.addf %889, %888 : vector<16x16xf32>
    %c0_154 = arith.constant 0 : index
    %c0_155 = arith.constant 0 : index
    %891 = vector.load %arg6[%c0_154, %c0_155] : memref<16x16xf32, #tpu.memory_space<vmem>>, vector<16x16xf32>
    tpu.vector_store %arg6[%c0_154, %c0_155], %890 {strides = array<i32>} : memref<16x16xf32, #tpu.memory_space<vmem>>, vector<16x16xf32>,
    %c6_i32_156 = arith.constant 6 : i32
    %892 = arith.cmpi eq, %arg2, %c6_i32_156 : i32
    %893 = arith.extui %892 : i1 to i32
    %c0_i32_157 = arith.constant 0 : i32
    %894 = arith.cmpi ne, %893, %c0_i32_157 : i32
    scf.if %894 {
      %c0_158 = arith.constant 0 : index
      %c0_159 = arith.constant 0 : index
      %895 = vector.load %arg6[%c0_158, %c0_159] : memref<16x16xf32, #tpu.memory_space<vmem>>, vector<16x16xf32>
      %896 = arith.negf %895 : vector<16x16xf32>
      %897 = math.exp %896 : vector<16x16xf32>
      %cst_160 = arith.constant 1.000000e+00 : f32
      %898 = vector.broadcast %cst_160 : f32 to vector<16x16xf32>
      %899 = arith.addf %898, %897 : vector<16x16xf32>
      %900 = arith.divf %898, %899 : vector<16x16xf32>
      %901 = arith.mulf %895, %900 : vector<16x16xf32>
      %c0_161 = arith.constant 0 : index
      %c0_162 = arith.constant 0 : index
      %c0_163 = arith.constant 0 : index
      %c0_164 = arith.constant 0 : index
      %902 = vector.load %arg5[%c0_161, %c0_162, %c0_163, %c0_164] : memref<1x1x16x16xf32, #tpu.memory_space<vmem>>, vector<1x1x16x16xf32>
      %903 = vector.shape_cast %902 : vector<1x1x16x16xf32> to vector<16x16xf32>
      %904 = vector.shape_cast %901 : vector<16x16xf32> to vector<1x1x16x16xf32>
      tpu.vector_store %arg5[%c0_161, %c0_162, %c0_163, %c0_164], %904 {strides = array<i32>} : memref<1x1x16x16xf32, #tpu.memory_space<vmem>>, vector<1x1x16x16xf32>,
    } else {
    }
    return
  }
  func.func @transform_0(%arg0: i32, %arg1: i32, %arg2: i32) -> i32 {
    %c0_i32 = arith.constant 0 : i32
    %c0_i32_0 = arith.constant 0 : i32
    return %c0_i32 : i32
  }
  func.func @transform_1(%arg0: i32, %arg1: i32, %arg2: i32) -> (i32, i32, i32, i32, i32) {
    %0 = arith.addi %arg1, %arg2 : i32
    %c0_i32 = arith.constant 0 : i32
    %c0_i32_0 = arith.constant 0 : i32
    %c0_i32_1 = arith.constant 0 : i32
    %c0_i32_2 = arith.constant 0 : i32
    return %arg0, %c0_i32, %0, %c0_i32_0, %c0_i32_1 : i32, i32, i32, i32, i32
  }
  func.func @transform_2(%arg0: i32, %arg1: i32, %arg2: i32) -> (i32, i32, i32, i32) {
    %c0_i32 = arith.constant 0 : i32
    %c0_i32_0 = arith.constant 0 : i32
    %c0_i32_1 = arith.constant 0 : i32
    return %arg0, %arg1, %c0_i32, %c0_i32_0 : i32, i32, i32, i32
  }
}

</mosaic_0001>

<bundles_post_ra>
// kernel: spatial_attention_3d.2
= control target key start
LH: loop header
LB: loop body
LE: loop exit
PB: predicated region body
PF: predicated region fallthrough
CT: control target
= control target key end

     0   :  { %s386_s6 = smov 0   ;;  %s388_s7 = smov 0   ;;  %s447_s0 = inlined_call_operand.vmem [shape: f32[2,4,32,128], index: 0, kind: input, shape index: {}]   ;;  %s448_s1 = inlined_call_operand.vmem [shape: f32[2,2,32,128], index: 1, kind: output, shape index: {}]  }
   0x1   :  { %s390_s8 = smov 0  }
   0x2 LB: > { %s23_s9 = sadd.s32 1, %s370_s7  ;;  %p303_p0 = scmp.ge.s32.totalorder %s374_s8, 1  ;;  %s374_s8 = sphi %s390_s8, %s11_s8   ;;  %s370_s7 = sphi %s388_s7, %s450_s7   ;;  %s366_s6 = sphi %s386_s6, %s449_s6  }
   0x3   : > { %p25_p1 = scmp.ge.s32.totalorder %s23_s9, 2  ;;  %p108_p2 = scmp.lt.s32.totalorder %s374_s8, 3 }
   0x5   : > { %s452_s9 = smov (%p25_p1, %s23_s9), 0  ;;  %p109_p3 = pnand %p303_p0, %p108_p2 }
   0x6   : > { %p137_p4 = scmp.lt.s32.totalorder (!%p109_p3), %s366_s6, 1 }
   0x7   : > { %112 = sbr.rel (%p109_p3) target bundleno = 31 (0x1f), region = 24 }
   0xc   : > { %s454_s6 = smov (!%p137_p4, %s366_s6), 1 }
   0xd   : > { %s326_s10 = sshll.u32 %s454_s6, 7  ;;  %s327_s14 = sshll.u32 %s454_s6, 6 }
   0xe   : > { %s407_s13 = scalar_lea.vmem %s447_s0, %s326_s10  ;;  %s423_s17 = scalar_lea.vmem %s448_s1, %s327_s14 }
   0xf   : > { %v156_v0 = vld [vmem:[%s407_s13] sm:$0xff]  ;;  %v157_v4 = vld [vmem:[%s407_s13 + $0x8] sm:$0xff]  ;;  %v158_v10 = vld [vmem:[%s407_s13 + $0x10] sm:$0xff] }
  0x10   : > { %v308_v1 = vld [vmem:[%s407_s13 + $0x20] sm:$0xff]  ;;  %v309_v5 = vld [vmem:[%s407_s13 + $0x28] sm:$0xff]  ;;  %v310_v14 = vld [vmem:[%s407_s13 + $0x30] sm:$0xff] }
  0x11   : > { %v312_v2 = vld [vmem:[%s407_s13 + $0x40] sm:$0xff]  ;;  %v165_v3 = vadd.f32 %v308_v1, %v156_v0  ;;  %v169_v6 = vmax.f32 %v156_v0, %v308_v1  ;;  %v166_v8 = vadd.f32 %v309_v5, %v157_v4  ;;  %v313_v9 = vld [vmem:[%s407_s13 + $0x48] sm:$0xff]  ;;  %v170_v11 = vmax.f32 %v157_v4, %v309_v5  ;;  %v314_v15 = vld [vmem:[%s407_s13 + $0x50] sm:$0xff] }
  0x12   : > { %v316_v7 = vld [vmem:[%s407_s13 + $0x60] sm:$0xff]  ;;  %v317_v13 = vld [vmem:[%s407_s13 + $0x68] sm:$0xff]  ;;  %v167_v18 = vadd.f32 %v310_v14, %v158_v10  ;;  %v159_v19 = vld [vmem:[%s407_s13 + $0x18] sm:$0xff]  ;;  %v171_v23 = vmax.f32 %v158_v10, %v310_v14 }
  0x13   : > { %v178_v12 = vadd.f32 %v312_v2, %v165_v3  ;;  %v182_v16 = vmax.f32 %v169_v6, %v312_v2  ;;  %v179_v17 = vadd.f32 %v313_v9, %v166_v8  ;;  %v311_v20 = vld [vmem:[%s407_s13 + $0x38] sm:$0xff]  ;;  %v183_v22 = vmax.f32 %v170_v11, %v313_v9  ;;  %v318_v25 = vld [vmem:[%s407_s13 + $0x70] sm:$0xff] }
  0x14   : > { %v315_v21 = vld [vmem:[%s407_s13 + $0x58] sm:$0xff]  ;;  %v168_v26 = vadd.f32 %v311_v20, %v159_v19  ;;  %v172_v28 = vmax.f32 %v159_v19, %v311_v20  ;;  %v180_v30 = vadd.f32 %v314_v15, %v167_v18  ;;  %v184_v33 = vmax.f32 %v171_v23, %v314_v15 }
  0x15   : > { %v191_v24 = vadd.f32 %v316_v7, %v178_v12  ;;  %v195_v27 = vmax.f32 %v182_v16, %v316_v7  ;;  %v192_v29 = vadd.f32 %v317_v13, %v179_v17  ;;  %v319_v31 = vld [vmem:[%s407_s13 + $0x78] sm:$0xff]  ;;  %v196_v32 = vmax.f32 %v183_v22, %v317_v13 }
  0x16   : > { %v181_v35 = vadd.f32 %v315_v21, %v168_v26  ;;  %v185_v36 = vmax.f32 %v172_v28, %v315_v21  ;;  %v193_v38 = vadd.f32 %v318_v25, %v180_v30  ;;  %v197_v39 = vmax.f32 %v184_v33, %v318_v25 }
  0x17   : > { %v199_v34 = vmul.f32 0.25, %v191_v24  ;;  %320 = vst [vmem:[%s423_s17 + $0x20] sm:$0xff] %v195_v27  ;;  %v200_v37 = vmul.f32 0.25, %v192_v29 }
  0x18   : > { %321 = vst [vmem:[%s423_s17 + $0x28] sm:$0xff] %v196_v32  ;;  %v194_v40 = vadd.f32 %v319_v31, %v181_v35  ;;  %v201_v41 = vmul.f32 0.25, %v193_v38  ;;  %v198_v42 = vmax.f32 %v185_v36, %v319_v31 }
  0x19   : > { %203 = vst [vmem:[%s423_s17] sm:$0xff] %v199_v34 }
  0x1a   : > { %204 = vst [vmem:[%s423_s17 + $0x8] sm:$0xff] %v200_v37  ;;  %v202_v43 = vmul.f32 0.25, %v194_v40 }
  0x1b   : > { %322 = vst [vmem:[%s423_s17 + $0x30] sm:$0xff] %v197_v39 }
  0x1c   : > { %205 = vst [vmem:[%s423_s17 + $0x10] sm:$0xff] %v201_v41 }
  0x1d   : > { %206 = vst [vmem:[%s423_s17 + $0x18] sm:$0xff] %v202_v43 }
  0x1e   : > { %323 = vst [vmem:[%s423_s17 + $0x38] sm:$0xff] %v198_v42 }
  0x1f PF: > { %s11_s8 = sadd.s32 1, %s374_s8   ;;  %s449_s6 = smov %s370_s7 }
  0x20   : > { %p8_p5 = scmp.ge.s32.totalorder %s11_s8, 4   ;;  %s450_s7 = smov %s452_s9 }
  0x22   :  { %10 = sbr.rel (!%p8_p5) target bundleno = 2 (0x2), region = 58 }

// kernel: spatial_attention_3d.3
= control target key start
LH: loop header
LB: loop body
LE: loop exit
PB: predicated region body
PF: predicated region fallthrough
CT: control target
= control target key end

     0   :  { %s3983_s0 = inlined_call_operand.vmem [shape: f32[686], index: 0, kind: input, shape index: {}]   ;;  %s3984_s1 = inlined_call_operand.vmem [shape: f32[2,2,22,22,22], index: 1, kind: input, shape index: {}]   ;;  %s3985_s2 = inlined_call_operand.hbm [shape: f32[2,16,16,16], index: 2, kind: output, shape index: {}]  }
   0x1   :  { %4003 = sst [smem:[#allocation15_spill]] %s3983_s0 }
   0x2   :  { %7 = vsyncpa [#allocation5], 0 }
   0x3   :  { %8 = vsyncpa [#allocation4], 0 }
   0x4   :  { %10 = vsyncpa [#allocation4 + $0x1], 0  ;;  %s2769_s9 = smov 0   ;;  %s2771_s10 = smov 0  }
   0x5   :  { %s2773_s11 = smov 0   ;;  %s2775_s12 = smov 0  }
   0x6   :  { %s2777_s13 = smov 0   ;;  %s2779_s14 = smov 0  }
   0x7   :  { %s2781_s15 = smov 0   ;;  %s2783_s16 = smov 0  }
   0x8   :  { %s2785_s17 = smov 0   ;;  %s2787_s18 = smov 0  }
   0x9   :  { %s2789_s19 = smov 0   ;;  %s2791_s20 = smov 0  }
   0xa LB: > { %4004 = sst [smem:[#allocation10_spill]] %s2730_s17  ;;  %s3986_s21 = sadd.s32 4294967295, %s2742_s20   ;;  %s2742_s20 = sphi %s2791_s20, %s16_s20   ;;  %s2738_s19 = sphi %s2789_s19, %s4033_s19   ;;  %s2734_s18 = sphi %s2787_s18, %s4025_s18   ;;  %s2730_s17 = sphi %s2785_s17, %s4024_s17   ;;  %s2726_s16 = sphi %s2783_s16, %s4032_s16   ;;  %s2722_s15 = sphi %s2781_s15, %s4023_s15   ;;  %s2718_s14 = sphi %s2779_s14, %s4022_s14   ;;  %s2714_s13 = sphi %s2777_s13, %s4031_s13   ;;  %s2710_s12 = sphi %s2775_s12, %s4030_s12   ;;  %s2706_s11 = sphi %s2773_s11, %s4029_s11   ;;  %s2702_s10 = sphi %s2771_s10, %s4028_s10   ;;  %s2698_s9 = sphi %s2769_s9, %s4027_s9  }
   0xb   : > { %4005 = sst [smem:[#allocation11_spill]] %s2734_s18  ;;  %s2432_s22 = sadd.s32 4294967294, %s2742_s20  }
   0xc   : > { %s28_s23 = sadd.s32 1, %s2730_s17  ;;  %s31_s24 = sadd.s32 1, %s2734_s18 }
   0xd   : > { %p29_p0 = scmp.ge.s32.totalorder %s28_s23, 7  ;;  %s35_s25 = sadd.s32 1, %s2738_s19 }
   0xe   : > { %s2836_s26 = sadd.s32 %s2730_s17, %s2734_s18  ;;  %s67_s27 = sadd.s32 1, %s2714_s13 }
   0xf   : > { %s4035_s23 = smov (%p29_p0, %s28_s23), 0  ;;  %s4037_s24 = smov (!%p29_p0, %s31_s24), %s2734_s18 }
  0x10   : > { %4006 = sst [smem:[#allocation12_spill]] %s4035_s23  ;;  %p74_p1 = scmp.ne.s32.totalorder %s2714_s13, %s2710_s12 }
  0x11   : > { %p75_p2 = scmp.eq.s32.totalorder %s2742_s20, 0  ;;  %p33_p3 = scmp.ge.s32.totalorder %s4037_s24, 16 }
  0x12   : > { %s95_s28 = sadd.s32 1, %s2706_s11  ;;  %p105_p5 = scmp.ne.s32.totalorder %s2706_s11, %s2702_s10 }
  0x13   : > { %p2846_p4 = por %p75_p2, %p74_p1  ;;  %s4039_s24 = smov (%p33_p3, %s4037_s24), 0 }
  0x14   : > { %4008 = sst [smem:[#allocation13_spill]] %s4039_s24  ;;  %s4041_s25 = smov (!%p33_p3, %s35_s25), %s2738_s19 }
  0x15   : > { %s61_s30 = sadd.s32 %s4039_s24, %s4035_s23  ;;  %s91_s3 = ssub.s32 %s2734_s18, %s4039_s24 }
  0x16   : > { %p37_p6 = scmp.ge.s32.totalorder %s4041_s25, 2  ;;  %s63_s4 = ssub.s32 %s2836_s26, %s61_s30 }
  0x17   : > { %p106_p7 = scmp.eq.s32.totalorder %s3986_s21, 223  ;;  %p111_p8 = scmp.ne.s32.totalorder %s2702_s10, %s2698_s9 }
  0x18   : > { %s4043_s25 = smov (%p37_p6, %s4041_s25), 0  ;;  %p112_p10 = scmp.eq.s32.totalorder %s2432_s22, 223 }
  0x19   : > { %4009 = sst [smem:[#allocation14_spill]] %s4043_s25  ;;  %p2866_p9 = por %p106_p7, %p105_p5 }
  0x1a   : > { %s62_s6 = ssub.s32 %s2738_s19, %s4043_s25  ;;  %p2433_p11 = scmp.ge.s32.totalorder %s2742_s20, 1 }
  0x1b   : > { %s64_s7 = sor.u32 %s63_s4, %s62_s6  ;;  %s92_s8 = sor.u32 %s91_s3, %s62_s6 }
  0x1c   : > { %p65_p12 = scmp.eq.s32.totalorder %s64_s7, 0  ;;  %p93_p13 = scmp.eq.s32.totalorder %s92_s8, 0 }
  0x1d   : > { %p2873_p0 = por %p112_p10, %p111_p8  ;;  %p119_p1 = scmp.lt.s32.totalorder %s2742_s20, 225 }
  0x1e   : > { %s2879_s21 = scalar_select %p65_p12, %s2714_s13, %s67_s27  }
  0x1f   : > { %s2882_s24 = scalar_select %p93_p13, %s2706_s11, %s95_s28  }
  0x20   : > { %p2884_p2 = pnand %p2433_p11, %p119_p1  ;;  %s4013_s22 = sadd.s32 4294967295, %s2742_s20  }
  0x21   : > { %p2890_p3 = scmp.eq.s32.totalorder %s4013_s22, 0  ;;  %s4015_s0 = sld [smem:[#allocation15_spill]] }
  0x22   : > { %p2460_p5 = pneg %p2884_p2  ;;  %s2744_s27 = smov [#allocation3]  }
  0x23   : > { %p2435_p7 = scmp.ge.s32.totalorder %s2742_s20, 224 }
  0x24   : > { %p2461_p6 = pnand %p2890_p3, %p2460_p5 }
  0x25   : > { %138 = sbr.rel (%p2435_p7) target bundleno = 57 (0x39), region = 20 }
  0x27   : > { %s131_s7 = sshll.u32 %s4015_s0, 4  ;;  %s132_s7 = int_to_ptr.vmem [resolvable:$true] %s131_s7 }
  0x28   : > { %2463 = dma.vmem_to_smem (!%p2461_p6), %s132_s7, 96, %s2744_s27, [#allocation5]  }
  0x2a   : > { %141 = sbr.rel (!%p2846_p4) target bundleno = 57 (0x39), region = 24  ;;  %s143_s28 = sand.u32 (%p2846_p4), 1, %s2714_s13  }
  0x2b   : > { %s2451_s8 = smul.u32 (%p2846_p4), 3, %s2836_s26 }
  0x2c   : > { %s2450_s22 = smul.u32 (%p2846_p4), 48, %s143_s28 }
  0x2d   : > { %s2452_s3 = smul.u32 (%p2846_p4), 132, %s2738_s19 }
  0x2e   : > { %s145_s7 = scalar_lea.vmem (%p2846_p4), [#allocation6], %s2450_s22 }
  0x2f   : > { %s149_s6 = sadd.s32 %s2452_s3, %s2451_s8 }
  0x30   : > { %s2436_s0 = sshll.u32 %s149_s6, 3 }
  0x31   : > { %s151_s17 = scalar_lea.vmem %s3984_s1, %s2436_s0 }
  0x32   : > { %v190_v0 = vld [vmem:[%s151_s17] sm:$0xff]  ;;  %v192_v1 = vld [vmem:[%s151_s17 + $0x8] sm:$0xff]  ;;  %v194_v2 = vld [vmem:[%s151_s17 + $0x10] sm:$0xff] }
  0x33   : > { %191 = vst [vmem:[%s145_s7] sm:$0xff] %v190_v0  ;;  %v196_v3 = vld [vmem:[%s151_s17 + $0x210] sm:$0xff]  ;;  %v198_v4 = vld [vmem:[%s151_s17 + $0x218] sm:$0xff]  ;;  %v200_v5 = vld [vmem:[%s151_s17 + $0x220] sm:$0xff] }
  0x34   : > { %193 = vst [vmem:[%s145_s7 + $0x8] sm:$0xff] %v192_v1 }
  0x35   : > { %195 = vst [vmem:[%s145_s7 + $0x10] sm:$0xff] %v194_v2 }
  0x36   : > { %197 = vst [vmem:[%s145_s7 + $0x18] sm:$0xff] %v196_v3 }
  0x37   : > { %199 = vst [vmem:[%s145_s7 + $0x20] sm:$0xff] %v198_v4 }
  0x38   : > { %201 = vst [vmem:[%s145_s7 + $0x28] sm:$0xff] %v200_v5 }
  0x39 PF: > { %210 = sbr.rel (%p2884_p2) target bundleno = 709 (0x2c5), region = 62 }
  0x3e   : > { %2689 = dma.done.wait (%p2890_p3), [#allocation5], 96  }
  0x3f   : > { %2691 = vsyncadd (%p2890_p3), [#allocation5], 4294967200  ;;  %s218_s0 = sand.u32 1, %s2710_s12  }
  0x40   : > { %s2453_s18 = smul.u32 48, %s218_s0 }
  0x42   : > { %s2917_s25 = scalar_lea.vmem [#allocation6], %s2453_s18 }
  0x43   : > { %224 = sfence }
  0x44   : > { %s3992_s17 = sand.u32 1, %s2702_s10   ;;  %p2440_p4 = scmp.ne.s32.totalorder %s2718_s14, 0 }
  0x45   : > { %s2439_s26 = sshll.u32 %s3992_s17, 4 }
  0x46   : > { %s2922_s29 = scalar_lea.vmem [#allocation7], %s2439_s26  ;;  %244 = sbr.rel (%p2440_p4) target bundleno = 78 (0x4e), region = 74 }
  0x4b   : > { %vm245_vm0 = vcmask 130048   ;;  %v2745_v6 = vmov 0.0  }
  0x4c   : > { %246 = vst.msk [vmem:[#allocation2] sm:$0xff] %vm245_vm0, %v2745_v6 }
  0x4d   : > { %247 = vst.msk [vmem:[#allocation2 + $0x8] sm:$0xff] %vm245_vm0, %v2745_v6 }
  0x4e PF: > { %s2926_s12 = smul.u32 98, %s2718_s14  ;;  %v2932_v7 = vld [vmem:[%s2917_s25 + $0x18] sm:$0xff]  ;;  %v2935_v8 = vld [vmem:[%s2917_s25] sm:$0xff]  ;;  %s3997_s6 = smov 127   ;;  %v2946_v14 = vld [vmem:[%s2917_s25 + $0x8] sm:$0xff]  ;;  %vm457_vm1 = vcmask 1046528  }
  0x4f   : > { %v2942_v13 = vld [vmem:[%s2917_s25 + $0x20] sm:$0xff]  ;;  %s3995_s18 = smov 126   ;;  %v3000_v44 = vld [vmem:[%s2917_s25 + $0x10] sm:$0x3f]  ;;  %v3014_v58 = vld [vmem:[%s2917_s25 + $0x28] sm:$0x3f] }
  0x50   : > { %s283_s23 = sadd.s32 3, %s2926_s12  ;;  %s268_s4 = sadd.s32 2, %s2926_s12  ;;  %vm758_vm2 = vcmask 1045504   ;;  %vm1059_vm3 = vcmask 1044480   ;;  %vm1360_vm4 = vcmask 1043456   ;;  %vm1661_vm5 = vcmask 1042432  }
  0x51   : > { %s284_s27 = sld [smem:[#allocation3 + %s283_s23]]  ;;  %s298_s8 = sadd.s32 4, %s2926_s12  ;;  %vm1962_vm6 = vcmask 1041408   ;;  %vm2258_vm7 = vcmask 130048  }
  0x52   : > { %s269_s28 = sld [smem:[#allocation3 + %s268_s4]]  ;;  %s313_s3 = sadd.s32 5, %s2926_s12 }
  0x53   : > { %s299_s22 = sld [smem:[#allocation3 + %s298_s8]]  ;;  %s328_s0 = sadd.s32 6, %s2926_s12 }
  0x54   : > { %s314_s7 = sld [smem:[#allocation3 + %s313_s3]]  ;;  %s343_s26 = sadd.s32 7, %s2926_s12 }
  0x55   : > { %s329_s23 = sld [smem:[#allocation3 + %s328_s0]]  ;;  %s373_s8 = sadd.s32 9, %s2926_s12 }
  0x56   : > { %s344_s4 = sld [smem:[#allocation3 + %s343_s26]]  ;;  %s388_s3 = sadd.s32 10, %s2926_s12 }
  0x57   : > { %v285_v9 = vstv %s284_s27  ;;  %s358_s27 = sadd.s32 8, %s2926_s12  ;;  %s389_s0 = sld [smem:[#allocation3 + %s388_s3]] }
  0x58   : > { %v286_v10 = vmul.f32 %v285_v9, %v2932_v7  ;;  %v270_v11 = vstv %s269_s28  ;;  %v287_v17 = vmul.f32 %v285_v9, %v2942_v13  ;;  %s359_s28 = sld [smem:[#allocation3 + %s358_s27]]  ;;  %s403_s26 = sadd.s32 11, %s2926_s12 }
  0x59   : > { %v271_v12 = vmul.f32 %v270_v11, %v2935_v8  ;;  %v300_v15 = vstv %s299_s22  ;;  %v272_v18 = vmul.f32 %v270_v11, %v2946_v14  ;;  %s3993_s22 = smov 125   ;;  %s418_s27 = sadd.s32 12, %s2926_s12 }
  0x5a   : > { %290 = vrot.lane.b32.xlu1 %v286_v10, %s3997_s6  ;;  %v301_v16 = vmul.f32 %v300_v15, %v2935_v8  ;;  %v315_v19 = vstv %s314_s7  ;;  %v302_v20 = vmul.f32 %v300_v15, %v2946_v14  ;;  %s374_s7 = sld [smem:[#allocation3 + %s373_s8]]  ;;  %s485_s8 = sadd.s32 16, %s2926_s12 }
  0x5b   : > { %275 = vrot.lane.b32.xlu0 %v271_v12, %s3997_s6  ;;  %v317_v21 = vmul.f32 %v315_v19, %v2942_v13  ;;  %v316_v22 = vmul.f32 %v315_v19, %v2932_v7  ;;  %v330_v23 = vstv %s329_s23  ;;  %s2749_s23 = smov 124   ;;  %s4001_s3 = smov 123  }
  0x5c   : > { %305 = vrot.lane.b32.xlu2 %v301_v16, %s3995_s18  ;;  %v345_v24 = vstv %s344_s4  ;;  %v331_v25 = vmul.f32 %v330_v23, %v2935_v8  ;;  %v332_v27 = vmul.f32 %v330_v23, %v2946_v14  ;;  %s404_s4 = sld [smem:[#allocation3 + %s403_s26]]  ;;  %s507_s17 = sadd.s32 17, %s2926_s12 }
  0x5d   : > { %v346_v26 = vmul.f32 %v345_v24, %v2932_v7  ;;  %v347_v29 = vmul.f32 %v345_v24, %v2942_v13  ;;  %v390_v33 = vstv %s389_s0  ;;  %s486_s26 = sld [smem:[#allocation3 + %s485_s8]]  ;;  %s573_s8 = sadd.s32 20, %s2926_s12 }
  0x5e   : > { %v360_v28 = vstv %s359_s28  ;;  %v391_v35 = vmul.f32 %v390_v33, %v2935_v8  ;;  %s433_s28 = sadd.s32 13, %s2926_s12  ;;  %v392_v38 = vmul.f32 %v390_v33, %v2946_v14  ;;  %p2441_p8 = scmp.ne.s32.totalorder %s2718_s14, 6 }
  0x5f   : > { %v362_v30 = vmul.f32 %v360_v28, %v2946_v14  ;;  %v361_v31 = vmul.f32 %v360_v28, %v2935_v8  ;;  %s2987_s0 = sld [smem:[#allocation3 + %s433_s28]]  ;;  %s3999_s28 = smov 122  }
  0x60   : > { %v375_v32 = vstv %s374_s7  ;;  %s419_s7 = sld [smem:[#allocation3 + %s418_s27]] }
  0x61   : > { %v376_v34 = vmul.f32 %v375_v32, %v2932_v7  ;;  %v377_v36 = vmul.f32 %v375_v32, %v2942_v13 }
  0x62   : > { %292 = vrot.lane.b32.xlu1 %v287_v17, %s3997_s6  ;;  %v405_v37 = vstv %s404_s4  ;;  %s508_s4 = sld [smem:[#allocation3 + %s507_s17]]  ;;  %s551_s17 = sadd.s32 19, %s2926_s12 }
  0x63   : > { %277 = vrot.lane.b32.xlu0 %v272_v18, %s3997_s6  ;;  %v407_v39 = vmul.f32 %v405_v37, %v2942_v13  ;;  %v406_v40 = vmul.f32 %v405_v37, %v2932_v7  ;;  %v487_v45 = vstv %s486_s26 }
  0x64   : > { %307 = vrot.lane.b32.xlu2 %v302_v20, %s3995_s18  ;;  %v489_v48 = vmul.f32 %v487_v45, %v2946_v14  ;;  %v490_v49 = vmul.f32 %v487_v45, %v3000_v44  ;;  %v488_v50 = vmul.f32 %v487_v45, %v2935_v8 }
  0x65   : > { %v435_v42 = vstv %s2987_s0  ;;  %s574_s0 = sld [smem:[#allocation3 + %s573_s8]] }
  0x66   : > { %v420_v41 = vstv %s419_s7  ;;  %v436_v46 = vmul.f32 %v435_v42, %v2932_v7  ;;  %v495_v51 = vrot.slane %v489_v48, 1  ;;  %v497_v52 = vrot.slane %v490_v49, 1  ;;  %s595_s7 = sadd.s32 21, %s2926_s12 }
  0x67   : > { %v421_v43 = vmul.f32 %v420_v41, %v2935_v8  ;;  %v422_v47 = vmul.f32 %v420_v41, %v2946_v14  ;;  %v437_v54 = vmul.f32 %v435_v42, %v2942_v13  ;;  %v494_v55 = vrot.slane %v488_v50, 1  ;;  %s596_s26 = sld [smem:[#allocation3 + %s595_s7]] }
  0x68   : > { %v509_v53 = vstv %s508_s4  ;;  %v498_v60 = vsel %vm457_vm1, %v495_v51, %v497_v52  ;;  %s617_s4 = sadd.s32 22, %s2926_s12 }
  0x69   : > { %v510_v57 = vmul.f32 %v509_v53, %v2932_v7  ;;  %v511_v59 = vmul.f32 %v509_v53, %v2942_v13  ;;  %v496_v63 = vsel %vm457_vm1, %v494_v55, %v495_v51  ;;  %v512_v0 = vmul.f32 %v509_v53, %v3014_v58 }
  0x6a   : > { %322 = vrot.lane.b32.xlu1 %v317_v21, %s3995_s18 }
  0x6b   : > { %320 = vrot.lane.b32.xlu0 %v316_v22, %s3995_s18  ;;  %v516_v1 = vrot.slane %v510_v57, 1  ;;  %v517_v2 = vrot.slane %v511_v59, 1  ;;  %v519_v5 = vrot.slane %v512_v0, 1  ;;  %v575_v21 = vstv %s574_s0  ;;  %s4016_s0 = smov 125  }
  0x6c   : > { %335 = vrot.lane.b32.xlu2 %v331_v25, %s3993_s22  ;;  %v576_v25 = vmul.f32 %v575_v21, %v2935_v8 }
  0x6d   : > { %v518_v9 = vsel %vm457_vm1, %v516_v1, %v517_v2  ;;  %v520_v16 = vsel %vm457_vm1, %v517_v2, %v519_v5  ;;  %v597_v23 = vstv %s596_s26  ;;  %s683_s26 = sadd.s32 25, %s2926_s12 }
  0x6e   : > { %v598_v28 = vmul.f32 %v597_v23, %v2932_v7  ;;  %v582_v32 = vrot.slane %v576_v25, 1 }
  0x72   : > { %350 = vrot.lane.b32.xlu1 %v346_v26, %s3993_s22  ;;  %v577_v26 = vmul.f32 %v575_v21, %v2946_v14 }
  0x73   : > { %337 = vrot.lane.b32.xlu0 %v332_v27, %s3993_s22 }
  0x74   : > { %352 = vrot.lane.b32.xlu2 %v347_v29, %s3993_s22  ;;  %s529_s22 = sadd.s32 18, %s2926_s12  ;;  %v599_v29 = vmul.f32 %v597_v23, %v2942_v13  ;;  %v583_v33 = vrot.slane %v577_v26, 1 }
  0x75   : > { %s530_s27 = sld [smem:[#allocation3 + %s529_s22]] }
  0x76   : > { %s552_s22 = sld [smem:[#allocation3 + %s551_s17]]  ;;  %s639_s17 = sadd.s32 23, %s2926_s12 }
  0x77   : > { %s640_s8 = sld [smem:[#allocation3 + %s639_s17]]  ;;  %s727_s17 = sadd.s32 27, %s2926_s12 }
  0x7a   : > { %367 = vrot.lane.b32.xlu1 %v362_v30, %s2749_s23 }
  0x7b   : > { %365 = vrot.lane.b32.xlu0 %v361_v31, %s2749_s23  ;;  %v531_v56 = vstv %s530_s27  ;;  %s618_s27 = sld [smem:[#allocation3 + %s617_s4]]  ;;  %v578_v31 = vmul.f32 %v575_v21, %v3000_v44 }
  0x7c   : > { %380 = vrot.lane.b32.xlu2 %v376_v34, %s2749_s23  ;;  %v532_v61 = vmul.f32 %v531_v56, %v2935_v8  ;;  %v533_v62 = vmul.f32 %v531_v56, %v2946_v14  ;;  %v553_v6 = vstv %s552_s22  ;;  %v534_v10 = vmul.f32 %v531_v56, %v3000_v44  ;;  %s661_s22 = sadd.s32 24, %s2926_s12  ;;  %s684_s4 = sld [smem:[#allocation3 + %s683_s26]] }
  0x7d   : > { %v555_v12 = vmul.f32 %v553_v6, %v2942_v13  ;;  %v556_v15 = vmul.f32 %v553_v6, %v3014_v58  ;;  %v554_v17 = vmul.f32 %v553_v6, %v2932_v7  ;;  %v604_v34 = vrot.slane %v598_v28, 1  ;;  %s662_s7 = sld [smem:[#allocation3 + %s661_s22]] }
  0x7e   : > { %v538_v3 = vrot.slane %v532_v61, 1  ;;  %v539_v4 = vrot.slane %v533_v62, 1  ;;  %v541_v18 = vrot.slane %v534_v10, 1  ;;  %v641_v49 = vstv %s640_s8  ;;  %s728_s8 = sld [smem:[#allocation3 + %s727_s17]] }
  0x7f   : > { %v561_v19 = vrot.slane %v555_v12, 1  ;;  %v563_v20 = vrot.slane %v556_v15, 1  ;;  %v560_v22 = vrot.slane %v554_v17, 1  ;;  %v642_v53 = vmul.f32 %v641_v49, %v2932_v7 }
  0x80   : > { %v540_v11 = vsel %vm457_vm1, %v538_v3, %v539_v4  ;;  %v542_v24 = vsel %vm457_vm1, %v539_v4, %v541_v18 }
  0x81   : > { %v564_v27 = vsel %vm457_vm1, %v561_v19, %v563_v20  ;;  %v562_v30 = vsel %vm457_vm1, %v560_v22, %v561_v19  ;;  %v619_v37 = vstv %s618_s27  ;;  %s705_s27 = sadd.s32 26, %s2926_s12  ;;  %v648_v61 = vrot.slane %v642_v53, 1 }
  0x82   : > { %395 = vrot.lane.b32.xlu1 %v391_v35, %s4001_s3  ;;  %v605_v35 = vrot.slane %v599_v29, 1  ;;  %v621_v41 = vmul.f32 %v619_v37, %v2946_v14  ;;  %v622_v42 = vmul.f32 %v619_v37, %v3000_v44  ;;  %v620_v45 = vmul.f32 %v619_v37, %v2935_v8  ;;  %s706_s22 = sld [smem:[#allocation3 + %s705_s27]]  ;;  %s830_s27 = sadd.s32 32, %s2926_s12 }
  0x83   : > { %382 = vrot.lane.b32.xlu0 %v377_v36, %s2749_s23  ;;  %v585_v36 = vrot.slane %v578_v31, 1  ;;  %v663_v51 = vstv %s662_s7  ;;  %v685_v3 = vstv %s684_s4  ;;  %s786_s7 = sadd.s32 30, %s2926_s12  ;;  %s808_s4 = sadd.s32 31, %s2926_s12 }
  0x84   : > { %397 = vrot.lane.b32.xlu2 %v392_v38, %s4001_s3  ;;  %v584_v38 = vsel %vm457_vm1, %v582_v32, %v583_v33  ;;  %v629_v48 = vrot.slane %v622_v42, 1  ;;  %v626_v50 = vrot.slane %v620_v45, 1  ;;  %v664_v56 = vmul.f32 %v663_v51, %v2935_v8  ;;  %s787_s26 = sld [smem:[#allocation3 + %s786_s7]] }
  0x85   : > { %v665_v57 = vmul.f32 %v663_v51, %v2946_v14  ;;  %v666_v5 = vmul.f32 %v663_v51, %v3000_v44  ;;  %v688_v10 = vmul.f32 %v685_v3, %v3014_v58  ;;  %v686_v12 = vmul.f32 %v685_v3, %v2932_v7  ;;  %s809_s17 = sld [smem:[#allocation3 + %s808_s4]] }
  0x86   : > { %v670_v0 = vrot.slane %v664_v56, 1  ;;  %v729_v21 = vstv %s728_s8  ;;  %s261_s8 = sadd.s32 1, %s2926_s12  ;;  %s3119_s7 = sld [smem:[#allocation3 + %s2926_s12]] }
  0x87   : > { %v671_v1 = vrot.slane %v665_v57, 1  ;;  %v673_v15 = vrot.slane %v666_v5, 1  ;;  %v695_v18 = vrot.slane %v688_v10, 1  ;;  %v692_v20 = vrot.slane %v686_v12, 1  ;;  %s3124_s4 = sld [smem:[#allocation3 + %s261_s8]] }
  0x88   : > { %v707_v19 = vstv %s706_s22  ;;  %v730_v26 = vmul.f32 %v729_v21, %v2932_v7  ;;  %s831_s22 = sld [smem:[#allocation3 + %s830_s27]] }
  0x89   : > { %v672_v6 = vsel %vm457_vm1, %v670_v0, %v671_v1  ;;  %v674_v22 = vsel %vm457_vm1, %v671_v1, %v673_v15  ;;  %v710_v29 = vmul.f32 %v707_v19, %v3000_v44 }
  0x8a   : > { %412 = vrot.lane.b32.xlu1 %v407_v39, %s4001_s3  ;;  %v600_v39 = vmul.f32 %v597_v23, %v3014_v58  ;;  %v708_v23 = vmul.f32 %v707_v19, %v2935_v8  ;;  %v788_v37 = vstv %s787_s26  ;;  %s852_s26 = sadd.s32 33, %s2926_s12 }
  0x8b   : > { %410 = vrot.lane.b32.xlu0 %v406_v40, %s4001_s3  ;;  %v606_v40 = vsel %vm457_vm1, %v604_v34, %v605_v35  ;;  %v790_v42 = vmul.f32 %v788_v37, %v2946_v14  ;;  %v789_v45 = vmul.f32 %v788_v37, %v2935_v8  ;;  %s853_s27 = sld [smem:[#allocation3 + %s852_s26]] }
  0x8c   : > { %425 = vrot.lane.b32.xlu2 %v421_v43, %s3999_s28  ;;  %v586_v43 = vsel %vm457_vm1, %v583_v33, %v585_v36  ;;  %v736_v33 = vrot.slane %v730_v26, 1  ;;  %v717_v36 = vrot.slane %v710_v29, 1 }
  0x8d   : > { %v795_v51 = vrot.slane %v789_v45, 2  ;;  %v263_v5 = vstv %s3124_s4 }
  0x91   : > { %v854_v15 = vstv %s853_s27  ;;  %s962_s27 = sadd.s32 38, %s2926_s12 }
  0x92   : > { %440 = vrot.lane.b32.xlu1 %v436_v46, %s3999_s28  ;;  %v607_v46 = vrot.slane %v600_v39, 1  ;;  %v732_v39 = vmul.f32 %v729_v21, %v3014_v58  ;;  %v855_v26 = vmul.f32 %v854_v15, %v2932_v7 }
  0x93   : > { %427 = vrot.lane.b32.xlu0 %v422_v47, %s3999_s28  ;;  %v627_v47 = vrot.slane %v621_v41, 1 }
  0x94   : > { %442 = vrot.lane.b32.xlu2 %v437_v54, %s3999_s28  ;;  %v608_v52 = vsel %vm457_vm1, %v605_v35, %v607_v46  ;;  %v643_v54 = vmul.f32 %v641_v49, %v2942_v13 }
  0x95   : > { %v630_v55 = vsel %vm457_vm1, %v627_v47, %v629_v48  ;;  %v628_v59 = vsel %vm457_vm1, %v626_v50, %v627_v47  ;;  %v739_v47 = vrot.slane %v732_v39, 1 }
  0x9a   : > { %501 = vrot.lane.b32.xlu1 %v498_v60, %s3997_s6  ;;  %v644_v60 = vmul.f32 %v641_v49, %v3014_v58  ;;  %v796_v49 = vrot.slane %v790_v42, 2 }
  0x9b   : > { %499 = vrot.lane.b32.xlu0 %v496_v63, %s3997_s6  ;;  %v649_v63 = vrot.slane %v643_v54, 1  ;;  %v832_v54 = vstv %s831_s22  ;;  %s896_s22 = sadd.s32 35, %s2926_s12 }
  0x9c   : > { %521 = vrot.lane.b32.xlu2 %v518_v9, %s3997_s6  ;;  %v651_v2 = vrot.slane %v644_v60, 1  ;;  %v687_v9 = vmul.f32 %v685_v3, %v2942_v13  ;;  %v797_v0 = vsel %vm758_vm2, %v795_v51, %v796_v49  ;;  %s897_s26 = sld [smem:[#allocation3 + %s896_s22]] }
  0x9d   : > { %v650_v4 = vsel %vm457_vm1, %v648_v61, %v649_v63  ;;  %v833_v61 = vmul.f32 %v832_v54, %v2935_v8  ;;  %s3187_s22 = sld [smem:[#allocation3 + %s962_s27]] }
  0x9e   : > { %v693_v17 = vrot.slane %v687_v9, 1 }
  0x9f   : > { %v839_v9 = vrot.slane %v833_v61, 2 }
  0xa0   : > { %v696_v25 = vsel %vm457_vm1, %v693_v17, %v695_v18  ;;  %v694_v28 = vsel %vm457_vm1, %v692_v20, %v693_v17  ;;  %v835_v18 = vmul.f32 %v832_v54, %v3000_v44 }
  0xa2   : > { %543 = vrot.lane.b32.xlu1 %v540_v11, %s3995_s18  ;;  %v652_v11 = vsel %vm457_vm1, %v649_v63, %v651_v2  ;;  %v834_v63 = vmul.f32 %v832_v54, %v2946_v14  ;;  %v898_v39 = vstv %s897_s26  ;;  %s448_s26 = sadd.s32 14, %s2926_s12 }
  0xa3   : > { %523 = vrot.lane.b32.xlu0 %v520_v16, %s3997_s6  ;;  %v900_v51 = vmul.f32 %v898_v39, %v2942_v13  ;;  %s3203_s27 = sld [smem:[#allocation3 + %s448_s26]] }
  0xa4   : > { %545 = vrot.lane.b32.xlu2 %v542_v24, %s3995_s18  ;;  %v709_v24 = vmul.f32 %v707_v19, %v2946_v14  ;;  %v840_v10 = vrot.slane %v834_v63, 2  ;;  %v264_v19 = vmul.f32 %v263_v5, %v2932_v7 }
  0xa5   : > { %v906_v63 = vrot.slane %v900_v51, 2 }
  0xa6   : > { %v715_v32 = vrot.slane %v709_v24, 1  ;;  %v857_v24 = vmul.f32 %v854_v15, %v3014_v58 }
  0xa8   : > { %v718_v46 = vsel %vm457_vm1, %v715_v32, %v717_v36 }
  0xaa   : > { %567 = vrot.lane.b32.xlu1 %v564_v27, %s3995_s18  ;;  %v731_v27 = vmul.f32 %v729_v21, %v2942_v13 }
  0xab   : > { %565 = vrot.lane.b32.xlu0 %v562_v30, %s3995_s18  ;;  %v714_v30 = vrot.slane %v708_v23, 1  ;;  %v856_v23 = vmul.f32 %v854_v15, %v2942_v13 }
  0xac   : > { %587 = vrot.lane.b32.xlu2 %v584_v38, %s4016_s0  ;;  %v737_v34 = vrot.slane %v731_v27, 1  ;;  %v842_v27 = vrot.slane %v835_v18, 2 }
  0xad   : > { %v716_v38 = vsel %vm457_vm1, %v714_v30, %v715_v32  ;;  %v265_v32 = vmul.f32 %v263_v5, %v2942_v13 }
  0xae   : > { %v738_v41 = vsel %vm457_vm1, %v736_v33, %v737_v34  ;;  %v862_v33 = vrot.slane %v856_v23, 2  ;;  %v964_v23 = vstv %s3187_s22  ;;  %s1006_s22 = sadd.s32 40, %s2926_s12 }
  0xaf   : > { %s3238_s26 = sld [smem:[#allocation3 + %s1006_s22]] }
  0xb2   : > { %609 = vrot.lane.b32.xlu1 %v606_v40, %s4016_s0 }
  0xb3   : > { %589 = vrot.lane.b32.xlu0 %v586_v43, %s4016_s0  ;;  %v791_v43 = vmul.f32 %v788_v37, %v3000_v44 }
  0xb4   : > { %611 = vrot.lane.b32.xlu2 %v608_v52, %s4016_s0  ;;  %v810_v52 = vstv %s809_s17  ;;  %s874_s17 = sadd.s32 34, %s2926_s12 }
  0xb5   : > { %v798_v50 = vrot.slane %v791_v43, 2  ;;  %v811_v56 = vmul.f32 %v810_v52, %v2932_v7  ;;  %v813_v1 = vmul.f32 %v810_v52, %v3014_v58  ;;  %s875_s8 = sld [smem:[#allocation3 + %s874_s17]]  ;;  %s940_s17 = sadd.s32 37, %s2926_s12 }
  0xb6   : > { %v3072_v62 = vpop.permute.xlu2 %305 }
  0xb7   : > { %v799_v60 = vsel %vm758_vm2, %v796_v49, %v798_v50  ;;  %v817_v2 = vrot.slane %v811_v56, 2  ;;  %v820_v12 = vrot.slane %v813_v1, 2  ;;  %v899_v50 = vmul.f32 %v898_v39, %v2932_v7 }
  0xb9   : > { %v905_v61 = vrot.slane %v899_v50, 2 }
  0xba   : > { %633 = vrot.lane.b32.xlu1 %v630_v55, %s2749_s23  ;;  %v740_v55 = vsel %vm457_vm1, %v737_v34, %v739_v47  ;;  %v864_v34 = vrot.slane %v857_v24, 2 }
  0xbb   : > { %631 = vrot.lane.b32.xlu0 %v628_v59, %s2749_s23  ;;  %v812_v59 = vmul.f32 %v810_v52, %v2942_v13  ;;  %v876_v36 = vstv %s875_s8  ;;  %s941_s8 = sld [smem:[#allocation3 + %s940_s17]] }
  0xbc   : > { %653 = vrot.lane.b32.xlu2 %v650_v4, %s2749_s23  ;;  %v256_v4 = vstv %s3119_s7  ;;  %s918_s7 = sadd.s32 36, %s2926_s12  ;;  %v877_v42 = vmul.f32 %v876_v36, %v2935_v8  ;;  %v878_v47 = vmul.f32 %v876_v36, %v2946_v14  ;;  %v865_v49 = vsel %vm758_vm2, %v862_v33, %v864_v34 }
  0xbd   : > { %v257_v20 = vmul.f32 %v256_v4, %v2935_v8  ;;  %v258_v30 = vmul.f32 %v256_v4, %v2946_v14  ;;  %s919_s4 = sld [smem:[#allocation3 + %s918_s7]]  ;;  %v879_v54 = vmul.f32 %v876_v36, %v3000_v44  ;;  %s467_s7 = sadd.s32 15, %s2926_s12 }
  0xbe   : > { %v3085_v16 = vpop.permute.xlu2 %307  ;;  %s3209_s17 = sld [smem:[#allocation3 + %s467_s7]] }
  0xc1   : > { %v942_v24 = vstv %s941_s8  ;;  %s1028_s8 = sadd.s32 41, %s2926_s12 }
  0xc2   : > { %675 = vrot.lane.b32.xlu1 %v672_v6, %s4001_s3  ;;  %v818_v6 = vrot.slane %v812_v59, 2  ;;  %v944_v34 = vmul.f32 %v942_v24, %v2942_v13  ;;  %s3240_s7 = sld [smem:[#allocation3 + %s1028_s8]] }
  0xc3   : > { %655 = vrot.lane.b32.xlu0 %v652_v11, %s2749_s23 }
  0xc4   : > { %677 = vrot.lane.b32.xlu2 %v674_v22, %s4001_s3  ;;  %v819_v17 = vsel %vm758_vm2, %v817_v2, %v818_v6  ;;  %v841_v22 = vsel %vm758_vm2, %v839_v9, %v840_v10  ;;  %v469_v51 = vstv %s3209_s17  ;;  %s1131_s17 = sadd.s32 46, %s2926_s12 }
  0xc5   : > { %s1132_s8 = sld [smem:[#allocation3 + %s1131_s17]] }
  0xc6   : > { %v3100_v31 = vpop.permute.xlu2 %335 }
  0xca   : > { %699 = vrot.lane.b32.xlu1 %v696_v25, %s4001_s3  ;;  %v821_v25 = vsel %vm758_vm2, %v818_v6, %v820_v12  ;;  %v907_v12 = vsel %vm758_vm2, %v905_v61, %v906_v63 }
  0xcb   : > { %697 = vrot.lane.b32.xlu0 %v694_v28, %s4001_s3  ;;  %v266_v28 = vadd.f32 %v264_v19, %v257_v20 }
  0xcc   : > { %v3105_v35 = vpop.permute.xlu1 %290  ;;  %719 = vrot.lane.b32.xlu2 %v716_v38, %s3999_s28  ;;  %v861_v38 = vrot.slane %v855_v26, 2 }
  0xcd   : > { %v3109_v40 = vpop.permute.xlu0 %275 }
  0xce   : > { %v3121_v48 = vpop.permute.xlu2 %352  ;;  %v281_v43 = vadd.f32 %v3109_v40, %v266_v28  ;;  %v863_v52 = vsel %vm758_vm2, %v861_v38, %v862_v33  ;;  %v943_v28 = vmul.f32 %v942_v24, %v2932_v7  ;;  %v965_v33 = vmul.f32 %v964_v23, %v2935_v8 }
  0xcf   : > { %v966_v38 = vmul.f32 %v964_v23, %v2946_v14 }
  0xd0   : > { %v296_v40 = vadd.f32 %v3105_v35, %v281_v43  ;;  %v886_v35 = vrot.slane %v879_v54, 2 }
  0xd1   : > { %v972_v50 = vrot.slane %v966_v38, 2 }
  0xd2   : > { %741 = vrot.lane.b32.xlu1 %v738_v41, %s3999_s28  ;;  %v843_v41 = vsel %vm758_vm2, %v840_v10, %v842_v27  ;;  %v311_v4 = vadd.f32 %v3072_v62, %v296_v40 }
  0xd3   : > { %721 = vrot.lane.b32.xlu0 %v718_v46, %s3999_s28  ;;  %v267_v46 = vadd.f32 %v265_v32, %v258_v30 }
  0xd4   : > { %v3128_v53 = vpop.permute.xlu1 %292  ;;  %743 = vrot.lane.b32.xlu2 %v740_v55, %s3999_s28  ;;  %v883_v55 = vrot.slane %v877_v42, 2 }
  0xd5   : > { %v3132_v57 = vpop.permute.xlu0 %277 }
  0xd6   : > { %v3142_v3 = vpop.permute.xlu2 %380  ;;  %v282_v59 = vadd.f32 %v3132_v57, %v267_v46  ;;  %v901_v57 = vmul.f32 %v898_v39, %v3014_v58  ;;  %v950_v46 = vrot.slane %v944_v34, 2 }
  0xd8   : > { %v297_v6 = vadd.f32 %v3128_v53, %v282_v59  ;;  %v908_v62 = vrot.slane %v901_v57, 2  ;;  %v967_v59 = vmul.f32 %v964_v23, %v3000_v44 }
  0xda   : > { %802 = vrot.lane.b32.xlu1 %v799_v60, %s3997_s6  ;;  %v884_v60 = vrot.slane %v878_v47, 2  ;;  %v312_v19 = vadd.f32 %v3085_v16, %v297_v6  ;;  %v909_v16 = vsel %vm758_vm2, %v906_v63, %v908_v62  ;;  %v450_v47 = vstv %s3203_s27  ;;  %s1109_s27 = sadd.s32 45, %s2926_s12 }
  0xdb   : > { %800 = vrot.lane.b32.xlu0 %v797_v0, %s3997_s6  ;;  %v920_v0 = vstv %s919_s4  ;;  %s984_s4 = sadd.s32 39, %s2926_s12  ;;  %v452_v63 = vmul.f32 %v450_v47, %v2946_v14  ;;  %s1110_s22 = sld [smem:[#allocation3 + %s1109_s27]] }
  0xdc   : > { %v3149_v11 = vpop.permute.xlu1 %322  ;;  %822 = vrot.lane.b32.xlu2 %v819_v17, %s3997_s6  ;;  %v885_v2 = vsel %vm758_vm2, %v883_v55, %v884_v60  ;;  %v922_v9 = vmul.f32 %v920_v0, %v2946_v14  ;;  %v923_v15 = vmul.f32 %v920_v0, %v3000_v44  ;;  %v887_v17 = vsel %vm758_vm2, %v884_v60, %v886_v35 }
  0xdd   : > { %v321_v21 = vpop.permute.xlu0 %320  ;;  %v921_v18 = vmul.f32 %v920_v0, %v2935_v8  ;;  %v470_v35 = vmul.f32 %v469_v51, %v2932_v7 }
  0xde   : > { %v3162_v29 = vpop.permute.xlu2 %397  ;;  %v326_v10 = vadd.f32 %v321_v21, %v311_v4  ;;  %v928_v20 = vrot.slane %v922_v9, 2 }
  0xdf   : > { %v927_v27 = vrot.slane %v921_v18, 2  ;;  %v472_v18 = vmul.f32 %v469_v51, %v3014_v58 }
  0xe0   : > { %v341_v21 = vadd.f32 %v3100_v31, %v326_v10  ;;  %v974_v10 = vrot.slane %v967_v59, 2 }
  0xe1   : > { %v929_v39 = vsel %vm758_vm2, %v927_v27, %v928_v20  ;;  %v479_v34 = vrot.slane %v472_v18, 1  ;;  %v1111_v18 = vstv %s1110_s22  ;;  %s1219_s22 = sadd.s32 50, %s2926_s12 }
  0xe2   : > { %844 = vrot.lane.b32.xlu1 %v841_v22, %s3995_s18  ;;  %v930_v22 = vrot.slane %v923_v15, 2  ;;  %v459_v15 = vrot.slane %v452_v63, 1 }
  0xe3   : > { %824 = vrot.lane.b32.xlu0 %v821_v25, %s3997_s6  ;;  %v327_v25 = vadd.f32 %v3149_v11, %v312_v19 }
  0xe4   : > { %v3168_v37 = vpop.permute.xlu1 %350  ;;  %846 = vrot.lane.b32.xlu2 %v843_v41, %s3995_s18  ;;  %v931_v11 = vsel %vm758_vm2, %v928_v20, %v930_v22  ;;  %v949_v41 = vrot.slane %v943_v28, 2  ;;  %v476_v20 = vrot.slane %v470_v35, 1  ;;  %v1030_v28 = vstv %s3240_s7 }
  0xe5   : > { %v338_v45 = vpop.permute.xlu0 %337  ;;  %v356_v30 = vadd.f32 %v3168_v37, %v341_v21  ;;  %v945_v37 = vmul.f32 %v942_v24, %v3014_v58  ;;  %v1033_v63 = vmul.f32 %v1030_v28, %v3014_v58 }
  0xe6   : > { %v3183_v56 = vpop.permute.xlu2 %425  ;;  %v342_v32 = vadd.f32 %v338_v45, %v327_v25  ;;  %v971_v45 = vrot.slane %v965_v33, 2 }
  0xe7   : > { %v952_v40 = vrot.slane %v945_v37, 2  ;;  %v1031_v37 = vmul.f32 %v1030_v28, %v2932_v7 }
  0xe8   : > { %v357_v43 = vadd.f32 %v3121_v48, %v342_v32  ;;  %v951_v48 = vsel %vm758_vm2, %v949_v41, %v950_v46  ;;  %v973_v4 = vsel %vm758_vm2, %v971_v45, %v972_v50  ;;  %v1032_v41 = vmul.f32 %v1030_v28, %v2942_v13 }
  0xe9   : > { %v953_v9 = vsel %vm758_vm2, %v950_v46, %v952_v40 }
  0xea   : > { %868 = vrot.lane.b32.xlu1 %v865_v49, %s3995_s18  ;;  %v1038_v40 = vrot.slane %v1032_v41, 2 }
  0xeb   : > { %866 = vrot.lane.b32.xlu0 %v863_v52, %s3995_s18  ;;  %s3214_s18 = sld [smem:[#allocation3 + %s984_s4]] }
  0xec   : > { %v368_v1 = vpop.permute.xlu1 %367  ;;  %888 = vrot.lane.b32.xlu2 %v885_v2, %s4016_s0 }
  0xed   : > { %v366_v5 = vpop.permute.xlu0 %365  ;;  %v372_v54 = vadd.f32 %v368_v1, %v357_v43  ;;  %v453_v1 = vmul.f32 %v450_v47, %v3000_v44 }
  0xee   : > { %v3205_v53 = vpop.permute.xlu2 %442  ;;  %v371_v36 = vadd.f32 %v366_v5, %v356_v30  ;;  %v975_v30 = vsel %vm758_vm2, %v972_v50, %v974_v10  ;;  %v1040_v10 = vrot.slane %v1033_v63, 2 }
  0xef   : > { %v461_v21 = vrot.slane %v453_v1, 1 }
  0xf0   : > { %v386_v49 = vadd.f32 %v3142_v3, %v371_v36  ;;  %v451_v3 = vmul.f32 %v450_v47, %v2935_v8 }
  0xf1   : > { %v986_v52 = vstv %s3214_s18  ;;  %s1087_s18 = sadd.s32 44, %s2926_s12 }
  0xf2   : > { %910 = vrot.lane.b32.xlu1 %v907_v12, %s4016_s0  ;;  %v988_v2 = vmul.f32 %v986_v52, %v2942_v13  ;;  %v989_v5 = vmul.f32 %v986_v52, %v3014_v58  ;;  %v987_v6 = vmul.f32 %v986_v52, %v2932_v7  ;;  %v458_v12 = vrot.slane %v451_v3, 1  ;;  %s3264_s4 = sld [smem:[#allocation3 + %s1087_s18]]  ;;  %s1175_s18 = sadd.s32 48, %s2926_s12 }
  0xf3   : > { %890 = vrot.lane.b32.xlu0 %v887_v17, %s4016_s0  ;;  %v471_v17 = vmul.f32 %v469_v51, %v2942_v13  ;;  %s1176_s27 = sld [smem:[#allocation3 + %s1175_s18]]  ;;  %s1263_s18 = sadd.s32 52, %s2926_s12 }
  0xf4   : > { %v396_v26 = vpop.permute.xlu1 %395  ;;  %912 = vrot.lane.b32.xlu2 %v909_v16, %s4016_s0  ;;  %v994_v22 = vrot.slane %v988_v2, 2  ;;  %v996_v24 = vrot.slane %v989_v5, 2  ;;  %v993_v25 = vrot.slane %v987_v6, 2 }
  0xf5   : > { %v383_v31 = vpop.permute.xlu0 %382  ;;  %v401_v60 = vadd.f32 %v396_v26, %v386_v49  ;;  %v1008_v26 = vstv %s3238_s26  ;;  %v477_v32 = vrot.slane %v471_v17, 1  ;;  %s1153_s26 = sadd.s32 47, %s2926_s12 }
  0xf6   : > { %v3228_v42 = vpop.permute.xlu2 %521  ;;  %v387_v0 = vadd.f32 %v383_v31, %v372_v54  ;;  %v460_v31 = vsel %vm457_vm1, %v458_v12, %v459_v15  ;;  %v1010_v38 = vmul.f32 %v1008_v26, %v2946_v14  ;;  %v1011_v43 = vmul.f32 %v1008_v26, %v3000_v44  ;;  %s1154_s7 = sld [smem:[#allocation3 + %s1153_s26]] }
  0xf7   : > { %v995_v47 = vsel %vm758_vm2, %v993_v25, %v994_v22  ;;  %v478_v50 = vsel %vm457_vm1, %v476_v20, %v477_v32  ;;  %v480_v51 = vsel %vm457_vm1, %v477_v32, %v479_v34  ;;  %v1133_v20 = vstv %s1132_s8  ;;  %s4017_s8 = smov 126   ;;  %s1220_s26 = sld [smem:[#allocation3 + %s1219_s22]] }
  0xf8   : > { %v402_v19 = vadd.f32 %v3162_v29, %v387_v0  ;;  %v1009_v29 = vmul.f32 %v1008_v26, %v2935_v8  ;;  %v1016_v54 = vrot.slane %v1010_v38, 2  ;;  %v1113_v26 = vmul.f32 %v1111_v18, %v2942_v13  ;;  %s768_s22 = sadd.s32 29, %s2926_s12 }
  0xf9   : > { %v1114_v32 = vmul.f32 %v1111_v18, %v3014_v58 }
  0xfa   : > { %934 = vrot.lane.b32.xlu1 %v931_v11, %s2749_s23  ;;  %v462_v11 = vsel %vm457_vm1, %v459_v15, %v461_v21  ;;  %v1015_v49 = vrot.slane %v1009_v29, 2  ;;  %v3304_v21 = vld [vmem:[%s2917_s25 + $0x18] sm:$0xff]  ;;  %v1119_v13 = vrot.slane %v1113_v26, 3 }
  0xfb   : > { %932 = vrot.lane.b32.xlu0 %v929_v39, %s2749_s23  ;;  %v997_v39 = vsel %vm758_vm2, %v994_v22, %v996_v24  ;;  %v1112_v22 = vmul.f32 %v3304_v21, %v1111_v18 }
  0xfc   : > { %v413_v55 = vpop.permute.xlu1 %412  ;;  %954 = vrot.lane.b32.xlu2 %v951_v48, %s2749_s23  ;;  %v1089_v48 = vstv %s3264_s4  ;;  %v1017_v3 = vsel %vm758_vm2, %v1015_v49, %v1016_v54  ;;  %s1197_s4 = sadd.s32 49, %s2926_s12 }
  0xfd   : > { %v411_v61 = vpop.permute.xlu0 %410  ;;  %v417_v27 = vadd.f32 %v413_v55, %v402_v19  ;;  %v1037_v55 = vrot.slane %v1031_v37, 2  ;;  %s1198_s17 = sld [smem:[#allocation3 + %s1197_s4]] }
  0xfe   : > { %v416_v57 = vadd.f32 %v411_v61, %v401_v60  ;;  %v3257_v62 = vpop.permute.xlu2 %545 }
  0xff   : > { %v1039_v2 = vsel %vm758_vm2, %v1037_v55, %v1038_v40 }
 0x100   : > { %v431_v23 = vadd.f32 %v3183_v56, %v416_v57  ;;  %v1091_v57 = vmul.f32 %v1089_v48, %v2946_v14 }
 0x102   : > { %976 = vrot.lane.b32.xlu1 %v973_v4, %s4001_s3  ;;  %v1092_v4 = vmul.f32 %v1089_v48, %v3000_v44  ;;  %v1097_v15 = vrot.slane %v1091_v57, 3 }
 0x103   : > { %956 = vrot.lane.b32.xlu0 %v953_v9, %s2749_s23  ;;  %v1090_v9 = vmul.f32 %v1089_v48, %v2935_v8  ;;  %v1041_v8 = vsel %vm758_vm2, %v1038_v40, %v1040_v10  ;;  %v1177_v48 = vstv %s1176_s27  ;;  %s1264_s27 = sld [smem:[#allocation3 + %s1263_s18]] }
 0x104   : > { %v441_v16 = vpop.permute.xlu1 %440  ;;  %978 = vrot.lane.b32.xlu2 %v975_v30, %s4001_s3  ;;  %v1099_v17 = vrot.slane %v1092_v4, 3  ;;  %v1135_v30 = vmul.f32 %v1133_v20, %v2946_v14  ;;  %v1180_v10 = vmul.f32 %v1177_v48, %v3000_v44  ;;  %s3379_s18 = sld [smem:[#allocation3 + %s768_s22]] }
 0x105   : > { %v446_v33 = vadd.f32 %v441_v16, %v431_v23  ;;  %v428_v56 = vpop.permute.xlu0 %427  ;;  %v3310_v16 = vld [vmem:[%s2917_s25] sm:$0xff] }
 0x106   : > { %v432_v36 = vadd.f32 %v428_v56, %v417_v27  ;;  %v3282_v52 = vpop.permute.xlu2 %587  ;;  %v1100_v27 = vsel %vm1059_vm3, %v1097_v15, %v1099_v17  ;;  %v1134_v28 = vmul.f32 %v3310_v16, %v1133_v20  ;;  %v1141_v34 = vrot.slane %v1135_v30, 3 }
 0x107   : > { %v465_v45 = vadd.f32 %v460_v31, %v446_v33  ;;  %v1118_v33 = vrot.slane %v1112_v22, 3 }
 0x108   : > { %v447_v46 = vadd.f32 %v3205_v53, %v432_v36  ;;  %v1018_v53 = vrot.slane %v1011_v43, 2  ;;  %v1140_v14 = vrot.slane %v1134_v28, 3  ;;  %v3365_v28 = vld [vmem:[%s2917_s25 + $0x10] sm:$0x3f] }
 0x109   : > { %v483_v59 = vadd.f32 %v478_v50, %v465_v45  ;;  %v1120_v38 = vsel %vm1059_vm3, %v1118_v33, %v1119_v13 }
 0x10a   : > { %v466_v7 = vadd.f32 %v462_v11, %v447_v46  ;;  %1000 = vrot.lane.b32.xlu1 %v997_v39, %s4001_s3  ;;  %v1019_v6 = vsel %vm758_vm2, %v1016_v54, %v1018_v53  ;;  %v1155_v11 = vstv %s1154_s7  ;;  %v1136_v39 = vmul.f32 %v1133_v20, %v3000_v44  ;;  %v3328_v46 = vld [vmem:[%s2917_s25 + $0x20] sm:$0xff]  ;;  %s1241_s7 = sadd.s32 51, %s2926_s12 }
 0x10b   : > { %998 = vrot.lane.b32.xlu0 %v995_v47, %s4001_s3  ;;  %v1142_v45 = vsel %vm1059_vm3, %v1140_v14, %v1141_v34  ;;  %v1157_v47 = vmul.f32 %v3328_v46, %v1155_v11  ;;  %v1158_v49 = vmul.f32 %v1155_v11, %v3014_v58  ;;  %s1242_s4 = sld [smem:[#allocation3 + %s1241_s7]]  ;;  %v1187_v20 = vrot.slane %v1180_v10, 3 }
 0x10c   : > { %v484_v60 = vadd.f32 %v480_v51, %v466_v7  ;;  %v502_v61 = vpop.permute.xlu1 %501  ;;  %1020 = vrot.lane.b32.xlu2 %v1017_v3, %s3999_s28  ;;  %v1156_v7 = vmul.f32 %v3304_v21, %v1155_v11  ;;  %v1143_v54 = vrot.slane %v1136_v39, 3  ;;  %v1178_v3 = vmul.f32 %v3310_v16, %v1177_v48 }
 0x10d   : > { %v500_v0 = vpop.permute.xlu0 %499  ;;  %v1163_v40 = vrot.slane %v1157_v47, 3  ;;  %v1165_v53 = vrot.slane %v1158_v49, 3 }
 0x10e   : > { %v506_v35 = vadd.f32 %v502_v61, %v484_v60  ;;  %v505_v1 = vadd.f32 %v500_v0, %v483_v59  ;;  %v3297_v12 = vpop.permute.xlu2 %611  ;;  %v1162_v60 = vrot.slane %v1156_v7, 3  ;;  %v1199_v61 = vstv %s1198_s17  ;;  %s749_s17 = sadd.s32 28, %s2926_s12 }
 0x10f   : > { %v1166_v57 = vsel %vm1059_vm3, %v1163_v40, %v1165_v53  ;;  %v1200_v4 = vmul.f32 %v3304_v21, %v1199_v61  ;;  %v1202_v22 = vmul.f32 %v1199_v61, %v3014_v58  ;;  %s750_s7 = sld [smem:[#allocation3 + %s749_s17]] }
 0x110   : > { %v527_v5 = vadd.f32 %v3228_v42, %v505_v1  ;;  %v1096_v42 = vrot.slane %v1090_v9, 3  ;;  %v3344_v1 = vld [vmem:[%s2917_s25 + $0x8] sm:$0xff]  ;;  %v1164_v9 = vsel %vm1059_vm3, %v1162_v60, %v1163_v40 }
 0x112   : > { %1042 = vrot.lane.b32.xlu1 %v1039_v2, %s3999_s28  ;;  %v1098_v31 = vsel %vm1059_vm3, %v1096_v42, %v1097_v15  ;;  %v1179_v2 = vmul.f32 %v3344_v1, %v1177_v48  ;;  %v1184_v15 = vrot.slane %v1178_v3, 3 }
 0x113   : > { %1022 = vrot.lane.b32.xlu0 %v1019_v6, %s3999_s28 }
 0x114   : > { %v544_v19 = vpop.permute.xlu1 %543  ;;  %1044 = vrot.lane.b32.xlu2 %v1041_v8, %s3999_s28  ;;  %v1185_v18 = vrot.slane %v1179_v2, 3  ;;  %v1221_v8 = vstv %s1220_s26  ;;  %s1285_s26 = sadd.s32 53, %s2926_s12 }
 0x115   : > { %v549_v23 = vadd.f32 %v544_v19, %v527_v5  ;;  %v524_v24 = vpop.permute.xlu0 %523  ;;  %v1201_v5 = vmul.f32 %v3328_v46, %v1199_v61  ;;  %v1206_v19 = vrot.slane %v1200_v4, 3  ;;  %v1224_v30 = vmul.f32 %v3365_v28, %v1221_v8 }
 0x116   : > { %v528_v25 = vadd.f32 %v524_v24, %v506_v35  ;;  %v3319_v56 = vpop.permute.xlu2 %653  ;;  %v1186_v44 = vsel %vm1059_vm3, %v1184_v15, %v1185_v18  ;;  %v1222_v58 = vmul.f32 %v3310_v16, %v1221_v8 }
 0x117   : > { %v1207_v42 = vrot.slane %v1201_v5, 3  ;;  %v1231_v14 = vrot.slane %v1224_v30, 3 }
 0x118   : > { %v550_v29 = vadd.f32 %v3257_v62, %v528_v25  ;;  %v1121_v62 = vrot.slane %v1114_v32, 3  ;;  %v1209_v32 = vrot.slane %v1202_v22, 3 }
 0x119   : > { %v1208_v26 = vsel %vm1059_vm3, %v1206_v19, %v1207_v42 }
 0x11a   : > { %1103 = vrot.lane.b32.xlu1 %v1100_v27, %s3997_s6  ;;  %v1122_v51 = vsel %vm1059_vm3, %v1119_v13, %v1121_v62  ;;  %v1223_v27 = vmul.f32 %v3344_v1, %v1221_v8  ;;  %v1265_v62 = vstv %s1264_s27  ;;  %v1210_v11 = vsel %vm1059_vm3, %v1207_v42, %v1209_v32  ;;  %s1329_s27 = sadd.s32 55, %s2926_s12 }
 0x11b   : > { %1101 = vrot.lane.b32.xlu0 %v1098_v31, %s3997_s6  ;;  %v1188_v31 = vsel %vm1059_vm3, %v1185_v18, %v1187_v20  ;;  %v1266_v47 = vmul.f32 %v3310_v16, %v1265_v62  ;;  %v1267_v49 = vmul.f32 %v3344_v1, %v1265_v62  ;;  %s3403_s22 = sld [smem:[#allocation3 + %s1329_s27]] }
 0x11c   : > { %v568_v36 = vpop.permute.xlu1 %567  ;;  %1123 = vrot.lane.b32.xlu2 %v1120_v38, %s3997_s6  ;;  %v1229_v13 = vrot.slane %v1223_v27, 3 }
 0x11d   : > { %v572_v37 = vadd.f32 %v568_v36, %v550_v29  ;;  %v566_v41 = vpop.permute.xlu0 %565  ;;  %v1228_v36 = vrot.slane %v1222_v58, 3  ;;  %v1272_v60 = vrot.slane %v1266_v47, 3  ;;  %v1273_v61 = vrot.slane %v1267_v49, 3 }
 0x11e   : > { %v571_v43 = vadd.f32 %v566_v41, %v549_v23  ;;  %v3336_v55 = vpop.permute.xlu2 %677 }
 0x11f   : > { %v1274_v10 = vsel %vm1059_vm3, %v1272_v60, %v1273_v61 }
 0x120   : > { %v593_v50 = vadd.f32 %v3282_v52, %v571_v43  ;;  %v1144_v52 = vsel %vm1059_vm3, %v1141_v34, %v1143_v54  ;;  %v1243_v34 = vstv %s1242_s4  ;;  %v1230_v54 = vsel %vm1059_vm3, %v1228_v36, %v1229_v13  ;;  %s1307_s4 = sadd.s32 54, %s2926_s12 }
 0x121   : > { %v1244_v38 = vmul.f32 %v3304_v21, %v1243_v34  ;;  %v1245_v43 = vmul.f32 %v3328_v46, %v1243_v34  ;;  %s3400_s17 = sld [smem:[#allocation3 + %s1307_s4]]  ;;  %v1331_v32 = vstv %s3403_s22 }
 0x122   : > { %1145 = vrot.lane.b32.xlu1 %v1142_v45, %s4017_s8  ;;  %v1232_v45 = vsel %vm1059_vm3, %v1229_v13, %v1231_v14 }
 0x123   : > { %1125 = vrot.lane.b32.xlu0 %v1122_v51, %s3997_s6  ;;  %s1286_s6 = sld [smem:[#allocation3 + %s1285_s26]]  ;;  %v1250_v40 = vrot.slane %v1244_v38, 3  ;;  %v1251_v48 = vrot.slane %v1245_v43, 3  ;;  %v1332_v43 = vmul.f32 %v3304_v21, %v1331_v32 }
 0x124   : > { %v610_v59 = vpop.permute.xlu1 %609  ;;  %1147 = vrot.lane.b32.xlu2 %v1144_v52, %s4017_s8 }
 0x125   : > { %v615_v63 = vadd.f32 %v610_v59, %v593_v50  ;;  %v590_v0 = vpop.permute.xlu0 %589  ;;  %v3388_v50 = vld [vmem:[%s2917_s25 + $0x28] sm:$0x3f]  ;;  %v751_v59 = vstv %s750_s7  ;;  %s1410_s7 = sadd.s32 59, %s2926_s12 }
 0x126   : > { %v594_v35 = vadd.f32 %v590_v0, %v572_v37  ;;  %v3355_v17 = vpop.permute.xlu2 %719  ;;  %v1246_v51 = vmul.f32 %v3388_v50, %v1243_v34  ;;  %v1252_v0 = vsel %vm1059_vm3, %v1250_v40, %v1251_v48  ;;  %v752_v4 = vmul.f32 %v3310_v16, %v751_v59  ;;  %s1411_s4 = sld [smem:[#allocation3 + %s1410_s7]]  ;;  %s4018_s7 = smov 127  }
 0x127   : > { %v753_v5 = vmul.f32 %v3344_v1, %v751_v59 }
 0x128   : > { %v616_v6 = vadd.f32 %v3297_v12, %v594_v35  ;;  %v1253_v52 = vrot.slane %v1246_v51, 3  ;;  %v1268_v35 = vmul.f32 %v3365_v28, %v1265_v62 }
 0x129   : > { %v760_v22 = vrot.slane %v753_v5, 2 }
 0x12a   : > { %1169 = vrot.lane.b32.xlu1 %v1166_v57, %s4017_s8  ;;  %v1275_v8 = vrot.slane %v1268_v35, 3 }
 0x12b   : > { %1167 = vrot.lane.b32.xlu0 %v1164_v9, %s4017_s8  ;;  %v754_v9 = vmul.f32 %v3365_v28, %v751_v59 }
 0x12c   : > { %v634_v12 = vpop.permute.xlu1 %633  ;;  %1189 = vrot.lane.b32.xlu2 %v1186_v44, %s4016_s0  ;;  %v759_v44 = vrot.slane %v752_v4, 2  ;;  %v1276_v13 = vsel %vm1059_vm3, %v1273_v61, %v1275_v8 }
 0x12d   : > { %v638_v23 = vadd.f32 %v634_v12, %v616_v6  ;;  %v632_v24 = vpop.permute.xlu0 %631  ;;  %v1254_v12 = vsel %vm1059_vm3, %v1251_v48, %v1253_v52  ;;  %v1338_v52 = vrot.slane %v1332_v43, 3 }
 0x12e   : > { %v637_v25 = vadd.f32 %v632_v24, %v615_v63  ;;  %v3374_v33 = vpop.permute.xlu2 %743  ;;  %v1287_v63 = vstv %s1286_s6  ;;  %s1388_s6 = sadd.s32 58, %s2926_s12  ;;  %v761_v34 = vsel %vm758_vm2, %v759_v44, %v760_v22 }
 0x12f   : > { %v1289_v18 = vmul.f32 %v3328_v46, %v1287_v63  ;;  %v1290_v19 = vmul.f32 %v3388_v50, %v1287_v63  ;;  %v1288_v20 = vmul.f32 %v3304_v21, %v1287_v63  ;;  %s3426_s26 = sld [smem:[#allocation3 + %s1388_s6]]  ;;  %s1476_s6 = sadd.s32 62, %s2926_s12 }
 0x130   : > { %v659_v29 = vadd.f32 %v3319_v56, %v637_v25 }
 0x131   : > { %v1295_v27 = vrot.slane %v1289_v18, 3  ;;  %v1297_v30 = vrot.slane %v1290_v19, 3  ;;  %v1294_v58 = vrot.slane %v1288_v20, 3 }
 0x132   : > { %1211 = vrot.lane.b32.xlu1 %v1208_v26, %s4016_s0  ;;  %v762_v26 = vrot.slane %v754_v9, 2 }
 0x133   : > { %1191 = vrot.lane.b32.xlu0 %v1188_v31, %s4016_s0 }
 0x134   : > { %v676_v56 = vpop.permute.xlu1 %675  ;;  %1213 = vrot.lane.b32.xlu2 %v1210_v11, %s4016_s0 }
 0x135   : > { %v681_v39 = vadd.f32 %v676_v56, %v659_v29  ;;  %v656_v37 = vpop.permute.xlu0 %655  ;;  %v1309_v29 = vstv %s3400_s17  ;;  %s1454_s17 = sadd.s32 61, %s2926_s12 }
 0x136   : > { %v660_v41 = vadd.f32 %v656_v37, %v638_v23  ;;  %v3395_v53 = vpop.permute.xlu2 %822  ;;  %v1310_v14 = vmul.f32 %v3310_v16, %v1309_v29  ;;  %v1311_v37 = vmul.f32 %v3344_v1, %v1309_v29  ;;  %v1312_v47 = vmul.f32 %v3365_v28, %v1309_v29  ;;  %s1455_s22 = sld [smem:[#allocation3 + %s1454_s17]] }
 0x138   : > { %v682_v7 = vadd.f32 %v3336_v55, %v660_v41  ;;  %v770_v55 = vstv %s3379_s18  ;;  %v1298_v41 = vsel %vm1059_vm3, %v1295_v27, %v1297_v30  ;;  %s1432_s18 = sadd.s32 60, %s2926_s12  ;;  %v1317_v61 = vrot.slane %v1311_v37, 3 }
 0x139   : > { %v771_v15 = vmul.f32 %v3304_v21, %v770_v55  ;;  %v772_v23 = vmul.f32 %v3328_v46, %v770_v55  ;;  %v773_v24 = vmul.f32 %v3388_v50, %v770_v55  ;;  %v1390_v55 = vstv %s3426_s26  ;;  %s1433_s27 = sld [smem:[#allocation3 + %s1432_s18]]  ;;  %s1498_s26 = sadd.s32 63, %s2926_s12 }
 0x13a   : > { %1235 = vrot.lane.b32.xlu1 %v1232_v45, %s2749_s23  ;;  %v1333_v45 = vmul.f32 %v3328_v46, %v1331_v32  ;;  %s1477_s18 = sld [smem:[#allocation3 + %s1476_s6]]  ;;  %s1564_s6 = sadd.s32 66, %s2926_s12 }
 0x13b   : > { %1233 = vrot.lane.b32.xlu0 %v1230_v54, %s2749_s23  ;;  %v778_v56 = vrot.slane %v772_v23, 2  ;;  %v780_v11 = vrot.slane %v773_v24, 2  ;;  %v1316_v54 = vrot.slane %v1310_v14, 3 }
 0x13c   : > { %v700_v3 = vpop.permute.xlu1 %699  ;;  %1255 = vrot.lane.b32.xlu2 %v1252_v0, %s2749_s23 }
 0x13d   : > { %v704_v2 = vadd.f32 %v700_v3, %v682_v7  ;;  %v698_v57 = vpop.permute.xlu0 %697  ;;  %v1296_v7 = vsel %vm1059_vm3, %v1294_v58, %v1295_v27  ;;  %v781_v48 = vsel %vm758_vm2, %v778_v56, %v780_v11  ;;  %v1339_v3 = vrot.slane %v1333_v45, 3 }
 0x13e   : > { %v703_v6 = vadd.f32 %v698_v57, %v681_v39  ;;  %v3421_v25 = vpop.permute.xlu2 %846  ;;  %v763_v39 = vsel %vm758_vm2, %v760_v22, %v762_v26  ;;  %v1334_v57 = vmul.f32 %v3388_v50, %v1331_v32  ;;  %v1412_v22 = vstv %s1411_s4  ;;  %s1499_s4 = sld [smem:[#allocation3 + %s1498_s26]] }
 0x13f   : > { %v1340_v9 = vsel %vm1059_vm3, %v1338_v52, %v1339_v3 }
 0x140   : > { %v725_v42 = vadd.f32 %v3355_v17, %v703_v6  ;;  %v777_v17 = vrot.slane %v771_v15, 2  ;;  %v1393_v15 = vmul.f32 %v3365_v28, %v1390_v55 }
 0x142   : > { %1277 = vrot.lane.b32.xlu1 %v1274_v10, %s4001_s3  ;;  %v779_v40 = vsel %vm758_vm2, %v777_v17, %v778_v56  ;;  %v1392_v10 = vmul.f32 %v3344_v1, %v1390_v55  ;;  %v1400_v44 = vrot.slane %v1393_v15, 4  ;;  %v1413_v17 = vmul.f32 %v3304_v21, %v1412_v22 }
 0x143   : > { %1257 = vrot.lane.b32.xlu0 %v1254_v12, %s2749_s23  ;;  %v1341_v12 = vrot.slane %v1334_v57, 3  ;;  %v1415_v56 = vmul.f32 %v3388_v50, %v1412_v22 }
 0x144   : > { %v742_v31 = vpop.permute.xlu1 %741  ;;  %1279 = vrot.lane.b32.xlu2 %v1276_v13, %s4001_s3  ;;  %v1398_v8 = vrot.slane %v1392_v10, 4 }
 0x145   : > { %v747_v36 = vadd.f32 %v742_v31, %v725_v42  ;;  %v722_v62 = vpop.permute.xlu0 %721  ;;  %v1391_v42 = vmul.f32 %v3310_v16, %v1390_v55  ;;  %v1342_v26 = vsel %vm1059_vm3, %v1339_v3, %v1341_v12  ;;  %v1414_v31 = vmul.f32 %v3328_v46, %v1412_v22 }
 0x146   : > { %v726_v38 = vadd.f32 %v722_v62, %v704_v2  ;;  %v3444_v59 = vpop.permute.xlu2 %888  ;;  %v1318_v2 = vsel %vm1059_vm3, %v1316_v54, %v1317_v61  ;;  %v1401_v58 = vsel %vm1360_vm4, %v1398_v8, %v1400_v44 }
 0x147   : > { %v766_v49 = vadd.f32 %v761_v34, %v747_v36  ;;  %v1397_v24 = vrot.slane %v1391_v42, 4  ;;  %v1419_v36 = vrot.slane %v1413_v17, 4  ;;  %v1420_v11 = vrot.slane %v1414_v31, 4 }
 0x148   : > { %v748_v51 = vadd.f32 %v3374_v33, %v726_v38  ;;  %v1319_v33 = vrot.slane %v1312_v47, 3 }
 0x149   : > { %v784_v63 = vadd.f32 %v779_v40, %v766_v49  ;;  %v1399_v34 = vsel %vm1360_vm4, %v1397_v24, %v1398_v8  ;;  %v1421_v43 = vsel %vm1360_vm4, %v1419_v36, %v1420_v11 }
 0x14a   : > { %v767_v60 = vadd.f32 %v763_v39, %v748_v51  ;;  %1301 = vrot.lane.b32.xlu1 %v1298_v41, %s4001_s3  ;;  %v1320_v19 = vsel %vm1059_vm3, %v1317_v61, %v1319_v33  ;;  %v1422_v41 = vrot.slane %v1415_v56, 4 }
 0x14b   : > { %1299 = vrot.lane.b32.xlu0 %v1296_v7, %s4001_s3 }
 0x14c   : > { %v785_v0 = vadd.f32 %v781_v48, %v767_v60  ;;  %v803_v35 = vpop.permute.xlu1 %802  ;;  %1321 = vrot.lane.b32.xlu2 %v1318_v2, %s3999_s28  ;;  %v1423_v60 = vsel %vm1360_vm4, %v1420_v11, %v1422_v41  ;;  %v1500_v2 = vstv %s1499_s4  ;;  %s1050_s4 = sadd.s32 42, %s2926_s12 }
 0x14d   : > { %v801_v4 = vpop.permute.xlu0 %800  ;;  %v1501_v15 = vmul.f32 %v3304_v21, %v1500_v2 }
 0x14e   : > { %v807_v5 = vadd.f32 %v803_v35, %v785_v0  ;;  %v806_v6 = vadd.f32 %v801_v4, %v784_v63  ;;  %v3459_v20 = vpop.permute.xlu2 %912  ;;  %v1478_v63 = vstv %s1477_s18  ;;  %s1565_s18 = sld [smem:[#allocation3 + %s1564_s6]] }
 0x14f   : > { %v1479_v57 = vmul.f32 %v3310_v16, %v1478_v63  ;;  %v1481_v12 = vmul.f32 %v3365_v28, %v1478_v63 }
 0x150   : > { %v828_v18 = vadd.f32 %v3395_v53, %v806_v6  ;;  %v1434_v53 = vstv %s1433_s27  ;;  %s1520_s27 = sadd.s32 64, %s2926_s12 }
 0x151   : > { %v1435_v32 = vmul.f32 %v3310_v16, %v1434_v53  ;;  %v1436_v13 = vmul.f32 %v3344_v1, %v1434_v53  ;;  %v1437_v45 = vmul.f32 %v3365_v28, %v1434_v53  ;;  %s1521_s17 = sld [smem:[#allocation3 + %s1520_s27]]  ;;  %v1485_v8 = vrot.slane %v1479_v57, 4  ;;  %s1069_s27 = sadd.s32 43, %s2926_s12 }
 0x152   : > { %1343 = vrot.lane.b32.xlu1 %v1340_v9, %s3999_s28  ;;  %v1480_v9 = vmul.f32 %v3344_v1, %v1478_v63  ;;  %s3526_s6 = sld [smem:[#allocation3 + %s1069_s27]] }
 0x153   : > { %1323 = vrot.lane.b32.xlu0 %v1320_v19, %s3999_s28  ;;  %v1441_v38 = vrot.slane %v1435_v32, 4  ;;  %v1442_v39 = vrot.slane %v1436_v13, 4  ;;  %v1444_v52 = vrot.slane %v1437_v45, 4 }
 0x154   : > { %v845_v23 = vpop.permute.xlu1 %844  ;;  %1345 = vrot.lane.b32.xlu2 %v1342_v26, %s3999_s28  ;;  %v1486_v22 = vrot.slane %v1480_v9, 4 }
 0x155   : > { %v850_v27 = vadd.f32 %v845_v23, %v828_v18  ;;  %v825_v30 = vpop.permute.xlu0 %824  ;;  %v1443_v7 = vsel %vm1360_vm4, %v1441_v38, %v1442_v39  ;;  %v1502_v18 = vmul.f32 %v3328_v46, %v1500_v2  ;;  %v1507_v23 = vrot.slane %v1501_v15, 4 }
 0x156   : > { %v829_v29 = vadd.f32 %v825_v30, %v807_v5  ;;  %v3475_v62 = vpop.permute.xlu2 %954  ;;  %v1487_v17 = vsel %vm1360_vm4, %v1485_v8, %v1486_v22 }
 0x157   : > { %v1508_v24 = vrot.slane %v1502_v18, 4  ;;  %v1522_v26 = vstv %s1521_s17  ;;  %s1586_s17 = sadd.s32 67, %s2926_s12 }
 0x158   : > { %v851_v14 = vadd.f32 %v3421_v25, %v829_v29  ;;  %v1456_v25 = vstv %s1455_s22  ;;  %s1542_s22 = sadd.s32 65, %s2926_s12  ;;  %v1524_v32 = vmul.f32 %v3344_v1, %v1522_v26  ;;  %v1525_v13 = vmul.f32 %v3365_v28, %v1522_v26  ;;  %s1587_s28 = sld [smem:[#allocation3 + %s1586_s17]] }
 0x159   : > { %v1458_v54 = vmul.f32 %v3328_v46, %v1456_v25  ;;  %v1459_v40 = vmul.f32 %v3388_v50, %v1456_v25  ;;  %v1457_v61 = vmul.f32 %v3304_v21, %v1456_v25  ;;  %s1543_s26 = sld [smem:[#allocation3 + %s1542_s22]]  ;;  %v1523_v56 = vmul.f32 %v3310_v16, %v1522_v26 }
 0x15a   : > { %1404 = vrot.lane.b32.xlu1 %v1401_v58, %s4018_s7  ;;  %v1509_v58 = vsel %vm1360_vm4, %v1507_v23, %v1508_v24  ;;  %s1051_s22 = sld [smem:[#allocation3 + %s1050_s4]]  ;;  %v1530_v38 = vrot.slane %v1524_v32, 4  ;;  %v1566_v25 = vstv %s1565_s18  ;;  %s1630_s18 = sadd.s32 69, %s2926_s12 }
 0x15b   : > { %1402 = vrot.lane.b32.xlu0 %v1399_v34, %s4018_s7  ;;  %v1464_v33 = vrot.slane %v1458_v54, 4  ;;  %v1466_v55 = vrot.slane %v1459_v40, 4  ;;  %v1463_v35 = vrot.slane %v1457_v61, 4  ;;  %v1529_v41 = vrot.slane %v1523_v56, 4  ;;  %s3547_s27 = sld [smem:[#allocation3 + %s1630_s18]] }
 0x15c   : > { %v869_v37 = vpop.permute.xlu1 %868  ;;  %1424 = vrot.lane.b32.xlu2 %v1421_v43, %s4018_s7  ;;  %v1567_v40 = vmul.f32 %v3310_v16, %v1566_v25 }
 0x15d   : > { %v873_v47 = vadd.f32 %v869_v37, %v851_v14  ;;  %v867_v49 = vpop.permute.xlu0 %866  ;;  %v1467_v10 = vsel %vm1360_vm4, %v1464_v33, %v1466_v55  ;;  %v1465_v42 = vsel %vm1360_vm4, %v1463_v35, %v1464_v33 }
 0x15e   : > { %v872_v51 = vadd.f32 %v867_v49, %v850_v27  ;;  %v3489_v3 = vpop.permute.xlu2 %978  ;;  %v1503_v27 = vmul.f32 %v3388_v50, %v1500_v2  ;;  %v1573_v35 = vrot.slane %v1567_v40, 4 }
 0x15f   : > { %v1544_v37 = vstv %s1543_s26  ;;  %s1608_s26 = sadd.s32 68, %s2926_s12 }
 0x160   : > { %v894_v48 = vadd.f32 %v3444_v59, %v872_v51  ;;  %v1445_v59 = vsel %vm1360_vm4, %v1442_v39, %v1444_v52  ;;  %v1510_v36 = vrot.slane %v1503_v27, 4  ;;  %v1532_v39 = vrot.slane %v1525_v13, 4  ;;  %s3544_s4 = sld [smem:[#allocation3 + %s1608_s26]] }
 0x161   : > { %v1545_v45 = vmul.f32 %v3304_v21, %v1544_v37  ;;  %v1531_v52 = vsel %vm1360_vm4, %v1529_v41, %v1530_v38 }
 0x162   : > { %1446 = vrot.lane.b32.xlu1 %v1443_v7, %s4017_s8  ;;  %v1511_v43 = vsel %vm1360_vm4, %v1508_v24, %v1510_v36  ;;  %v1546_v7 = vmul.f32 %v3328_v46, %v1544_v37  ;;  %v1533_v54 = vsel %vm1360_vm4, %v1530_v38, %v1532_v39  ;;  %v1632_v36 = vstv %s3547_s27  ;;  %s1755_s27 = sadd.s32 75, %s2926_s12 }
 0x163   : > { %1426 = vrot.lane.b32.xlu0 %v1423_v60, %s4018_s7  ;;  %v1547_v60 = vmul.f32 %v3388_v50, %v1544_v37  ;;  %v1551_v33 = vrot.slane %v1545_v45, 4 }
 0x164   : > { %v911_v0 = vpop.permute.xlu1 %910  ;;  %1448 = vrot.lane.b32.xlu2 %v1445_v59, %s4017_s8  ;;  %v1552_v63 = vrot.slane %v1546_v7, 4  ;;  %v1633_v7 = vmul.f32 %v3304_v21, %v1632_v36 }
 0x165   : > { %v916_v4 = vadd.f32 %v911_v0, %v894_v48  ;;  %v891_v5 = vpop.permute.xlu0 %890  ;;  %v1568_v48 = vmul.f32 %v3344_v1, %v1566_v25  ;;  %v1052_v0 = vstv %s1051_s22  ;;  %v1554_v59 = vrot.slane %v1547_v60, 4  ;;  %s1711_s22 = sadd.s32 73, %s2926_s12 }
 0x166   : > { %v895_v6 = vadd.f32 %v891_v5, %v873_v47  ;;  %v3505_v44 = vpop.permute.xlu2 %1020  ;;  %v1553_v5 = vsel %vm1360_vm4, %v1551_v33, %v1552_v63  ;;  %v1053_v15 = vmul.f32 %v3310_v16, %v1052_v0  ;;  %v1054_v18 = vmul.f32 %v3344_v1, %v1052_v0  ;;  %s1712_s26 = sld [smem:[#allocation3 + %s1711_s22]]  ;;  %s1799_s22 = sadd.s32 77, %s2926_s12 }
 0x167   : > { %v1574_v2 = vrot.slane %v1568_v48, 4 }
 0x168   : > { %v917_v19 = vadd.f32 %v3459_v20, %v895_v6  ;;  %v1488_v20 = vrot.slane %v1481_v12, 4  ;;  %v1569_v6 = vmul.f32 %v3365_v28, %v1566_v25  ;;  %v1061_v27 = vrot.slane %v1054_v18, 3 }
 0x169   : > { %v1575_v12 = vsel %vm1360_vm4, %v1573_v35, %v1574_v2 }
 0x16a   : > { %1470 = vrot.lane.b32.xlu1 %v1467_v10, %s4017_s8  ;;  %v1489_v34 = vsel %vm1360_vm4, %v1486_v22, %v1488_v20  ;;  %v1576_v26 = vrot.slane %v1569_v6, 4 }
 0x16b   : > { %1468 = vrot.lane.b32.xlu0 %v1465_v42, %s4017_s8  ;;  %v1055_v42 = vmul.f32 %v3365_v28, %v1052_v0 }
 0x16c   : > { %v935_v53 = vpop.permute.xlu1 %934  ;;  %1490 = vrot.lane.b32.xlu2 %v1487_v17, %s4016_s0  ;;  %v1060_v17 = vrot.slane %v1053_v15, 3  ;;  %v1577_v38 = vsel %vm1360_vm4, %v1574_v2, %v1576_v26 }
 0x16d   : > { %v939_v30 = vadd.f32 %v935_v53, %v917_v19  ;;  %v933_v29 = vpop.permute.xlu0 %932  ;;  %v1555_v53 = vsel %vm1360_vm4, %v1552_v63, %v1554_v59  ;;  %v1639_v59 = vrot.slane %v1633_v7, 4 }
 0x16e   : > { %v938_v31 = vadd.f32 %v933_v29, %v916_v4  ;;  %v3521_v11 = vpop.permute.xlu2 %1044  ;;  %v1588_v4 = vstv %s1587_s28  ;;  %s1689_s28 = sadd.s32 72, %s2926_s12  ;;  %v1062_v37 = vsel %vm1059_vm3, %v1060_v17, %v1061_v27 }
 0x16f   : > { %v1590_v22 = vmul.f32 %v3328_v46, %v1588_v4  ;;  %v1591_v23 = vmul.f32 %v3388_v50, %v1588_v4  ;;  %v1589_v20 = vmul.f32 %v3304_v21, %v1588_v4  ;;  %s3570_s17 = sld [smem:[#allocation3 + %s1689_s28]] }
 0x170   : > { %v960_v14 = vadd.f32 %v3475_v62, %v938_v31  ;;  %s1756_s28 = sld [smem:[#allocation3 + %s1755_s27]] }
 0x171   : > { %v1596_v32 = vrot.slane %v1590_v22, 4  ;;  %v1598_v13 = vrot.slane %v1591_v23, 4  ;;  %v1595_v56 = vrot.slane %v1589_v20, 4 }
 0x172   : > { %1512 = vrot.lane.b32.xlu1 %v1509_v58, %s4016_s0  ;;  %v1063_v58 = vrot.slane %v1055_v42, 3 }
 0x173   : > { %1492 = vrot.lane.b32.xlu0 %v1489_v34, %s4016_s0 }
 0x174   : > { %v977_v62 = vpop.permute.xlu1 %976  ;;  %1514 = vrot.lane.b32.xlu2 %v1511_v43, %s4016_s0 }
 0x175   : > { %v982_v47 = vadd.f32 %v977_v62, %v960_v14  ;;  %v957_v49 = vpop.permute.xlu0 %956  ;;  %v1610_v14 = vstv %s3544_s4  ;;  %s4019_s4 = smov 122  }
 0x176   : > { %v961_v51 = vadd.f32 %v957_v49, %v939_v30  ;;  %v3539_v55 = vpop.permute.xlu2 %1123  ;;  %v1611_v39 = vmul.f32 %v3310_v16, %v1610_v14  ;;  %v1612_v49 = vmul.f32 %v3344_v1, %v1610_v14  ;;  %v1613_v40 = vmul.f32 %v3365_v28, %v1610_v14 }
 0x178   : > { %v983_v61 = vadd.f32 %v3489_v3, %v961_v51  ;;  %v1071_v3 = vstv %s3526_s6  ;;  %v1599_v51 = vsel %vm1360_vm4, %v1596_v32, %v1598_v13  ;;  %s1733_s6 = sadd.s32 74, %s2926_s12  ;;  %v1618_v2 = vrot.slane %v1612_v49, 4 }
 0x179   : > { %v1072_v8 = vmul.f32 %v3304_v21, %v1071_v3  ;;  %v1073_v30 = vmul.f32 %v3328_v46, %v1071_v3  ;;  %v1074_v29 = vmul.f32 %v3388_v50, %v1071_v3  ;;  %v1691_v3 = vstv %s3570_s17  ;;  %s1734_s18 = sld [smem:[#allocation3 + %s1733_s6]]  ;;  %s1777_s17 = sadd.s32 76, %s2926_s12 }
 0x17a   : > { %1536 = vrot.lane.b32.xlu1 %v1533_v54, %s2749_s23  ;;  %v1634_v54 = vmul.f32 %v3328_v46, %v1632_v36  ;;  %s1778_s6 = sld [smem:[#allocation3 + %s1777_s17]]  ;;  %s1865_s17 = sadd.s32 80, %s2926_s12 }
 0x17b   : > { %1534 = vrot.lane.b32.xlu0 %v1531_v52, %s2749_s23  ;;  %v1079_v62 = vrot.slane %v1073_v30, 3  ;;  %v1081_v43 = vrot.slane %v1074_v29, 3  ;;  %v1617_v52 = vrot.slane %v1611_v39, 4 }
 0x17c   : > { %v1001_v57 = vpop.permute.xlu1 %1000  ;;  %1556 = vrot.lane.b32.xlu2 %v1553_v5, %s2749_s23 }
 0x17d   : > { %v1005_v9 = vadd.f32 %v1001_v57, %v983_v61  ;;  %v999_v10 = vpop.permute.xlu0 %998  ;;  %v1597_v61 = vsel %vm1360_vm4, %v1595_v56, %v1596_v32  ;;  %v1082_v63 = vsel %vm1059_vm3, %v1079_v62, %v1081_v43  ;;  %v1640_v57 = vrot.slane %v1634_v54, 4 }
 0x17e   : > { %v1004_v19 = vadd.f32 %v999_v10, %v982_v47  ;;  %v3565_v31 = vpop.permute.xlu2 %1147  ;;  %v1064_v47 = vsel %vm1059_vm3, %v1061_v27, %v1063_v58  ;;  %v1635_v10 = vmul.f32 %v3388_v50, %v1632_v36  ;;  %v1713_v27 = vstv %s1712_s26  ;;  %s1800_s26 = sld [smem:[#allocation3 + %s1799_s22]] }
 0x17f   : > { %v1641_v42 = vsel %vm1360_vm4, %v1639_v59, %v1640_v57 }
 0x180   : > { %v1026_v24 = vadd.f32 %v3505_v44, %v1004_v19  ;;  %v1078_v44 = vrot.slane %v1072_v8, 3  ;;  %v1694_v8 = vmul.f32 %v3365_v28, %v1691_v3 }
 0x182   : > { %1578 = vrot.lane.b32.xlu1 %v1575_v12, %s4001_s3  ;;  %v1080_v33 = vsel %vm1059_vm3, %v1078_v44, %v1079_v62  ;;  %v1693_v12 = vmul.f32 %v3344_v1, %v1691_v3  ;;  %v1701_v17 = vrot.slane %v1694_v8, 5  ;;  %v1714_v44 = vmul.f32 %v3304_v21, %v1713_v27 }
 0x183   : > { %1558 = vrot.lane.b32.xlu0 %v1555_v53, %s2749_s23  ;;  %v1642_v53 = vrot.slane %v1635_v10, 4  ;;  %v1716_v62 = vmul.f32 %v3388_v50, %v1713_v27 }
 0x184   : > { %v1043_v34 = vpop.permute.xlu1 %1042  ;;  %1580 = vrot.lane.b32.xlu2 %v1577_v38, %s4001_s3  ;;  %v1699_v26 = vrot.slane %v1693_v12, 5  ;;  %v3643_v12 = vld [vmem:[%s2917_s25 + $0x18] sm:$0xff] }
 0x185   : > { %v1048_v41 = vadd.f32 %v1043_v34, %v1026_v24  ;;  %v1023_v25 = vpop.permute.xlu0 %1022  ;;  %v1692_v24 = vmul.f32 %v3310_v16, %v1691_v3  ;;  %v1643_v58 = vsel %vm1360_vm4, %v1640_v57, %v1642_v53  ;;  %v1715_v34 = vmul.f32 %v3328_v46, %v1713_v27 }
 0x186   : > { %v1027_v45 = vadd.f32 %v1023_v25, %v1005_v9  ;;  %v3588_v0 = vpop.permute.xlu2 %1189  ;;  %v1619_v9 = vsel %vm1360_vm4, %v1617_v52, %v1618_v2  ;;  %v1702_v56 = vsel %vm1661_vm5, %v1699_v26, %v1701_v17 }
 0x187   : > { %v1067_v48 = vadd.f32 %v1062_v37, %v1048_v41  ;;  %v1698_v29 = vrot.slane %v1692_v24, 5  ;;  %v1720_v41 = vrot.slane %v1714_v44, 5  ;;  %v1721_v43 = vrot.slane %v1715_v34, 5 }
 0x188   : > { %v1049_v60 = vadd.f32 %v3521_v11, %v1027_v45  ;;  %v1620_v11 = vrot.slane %v1613_v40, 4 }
 0x189   : > { %v1085_v4 = vadd.f32 %v1080_v33, %v1067_v48  ;;  %v1700_v37 = vsel %vm1661_vm5, %v1698_v29, %v1699_v26  ;;  %v1722_v7 = vsel %vm1661_vm5, %v1720_v41, %v1721_v43 }
 0x18a   : > { %v1068_v35 = vadd.f32 %v1064_v47, %v1049_v60  ;;  %1602 = vrot.lane.b32.xlu1 %v1599_v51, %s4001_s3  ;;  %v1621_v23 = vsel %vm1360_vm4, %v1618_v2, %v1620_v11  ;;  %v1723_v51 = vrot.slane %v1716_v62, 5 }
 0x18b   : > { %1600 = vrot.lane.b32.xlu0 %v1597_v61, %s4001_s3 }
 0x18c   : > { %v1086_v5 = vadd.f32 %v1082_v63, %v1068_v35  ;;  %v1104_v6 = vpop.permute.xlu1 %1103  ;;  %1622 = vrot.lane.b32.xlu2 %v1619_v9, %s4019_s4  ;;  %v1724_v35 = vsel %vm1661_vm5, %v1721_v43, %v1723_v51  ;;  %v1801_v9 = vstv %s1800_s26  ;;  %s1351_s26 = sadd.s32 56, %s2926_s12 }
 0x18d   : > { %v1102_v15 = vpop.permute.xlu0 %1101  ;;  %v1802_v8 = vmul.f32 %v3643_v12, %v1801_v9 }
 0x18e   : > { %v1108_v18 = vadd.f32 %v1104_v6, %v1086_v5  ;;  %v1107_v19 = vadd.f32 %v1102_v15, %v1085_v4  ;;  %v3603_v20 = vpop.permute.xlu2 %1213  ;;  %v1779_v4 = vstv %s1778_s6  ;;  %s1866_s6 = sld [smem:[#allocation3 + %s1865_s17]] }
 0x18f   : > { %v1782_v24 = vmul.f32 %v3365_v28, %v1779_v4 }
 0x190   : > { %v1129_v22 = vadd.f32 %v3539_v55, %v1107_v19  ;;  %v1735_v55 = vstv %s1734_s18  ;;  %s1821_s18 = sadd.s32 78, %s2926_s12  ;;  %v1781_v19 = vmul.f32 %v3344_v1, %v1779_v4 }
 0x191   : > { %v1736_v36 = vmul.f32 %v3310_v16, %v1735_v55  ;;  %v1737_v38 = vmul.f32 %v3344_v1, %v1735_v55  ;;  %v1738_v54 = vmul.f32 %v3365_v28, %v1735_v55  ;;  %s1822_s27 = sld [smem:[#allocation3 + %s1821_s18]]  ;;  %s1370_s18 = sadd.s32 57, %s2926_s12 }
 0x192   : > { %1644 = vrot.lane.b32.xlu1 %v1641_v42, %s4019_s4  ;;  %v1787_v17 = vrot.slane %v1781_v19, 5  ;;  %s3678_s17 = sld [smem:[#allocation3 + %s1370_s18]] }
 0x193   : > { %1624 = vrot.lane.b32.xlu0 %v1621_v23, %s4019_s4  ;;  %v1742_v45 = vrot.slane %v1736_v36, 5  ;;  %v1743_v47 = vrot.slane %v1737_v38, 5  ;;  %v1745_v59 = vrot.slane %v1738_v54, 5 }
 0x194   : > { %v1146_v30 = vpop.permute.xlu1 %1145  ;;  %1646 = vrot.lane.b32.xlu2 %v1643_v58, %s4019_s4  ;;  %v1804_v58 = vmul.f32 %v3388_v50, %v1801_v9 }
 0x195   : > { %v1151_v32 = vadd.f32 %v1146_v30, %v1129_v22  ;;  %v1126_v13 = vpop.permute.xlu0 %1125  ;;  %v1744_v61 = vsel %vm1661_vm5, %v1742_v45, %v1743_v47  ;;  %v1803_v22 = vmul.f32 %v3328_v46, %v1801_v9 }
 0x196   : > { %v1130_v14 = vadd.f32 %v1126_v13, %v1108_v18  ;;  %v3619_v25 = vpop.permute.xlu2 %1255  ;;  %v1811_v62 = vrot.slane %v1804_v58, 5 }
 0x197   : > { %v1809_v27 = vrot.slane %v1803_v22, 5  ;;  %v1823_v29 = vstv %s1822_s27  ;;  %s1887_s27 = sadd.s32 81, %s2926_s12 }
 0x198   : > { %v1152_v39 = vadd.f32 %v3565_v31, %v1130_v14  ;;  %v1757_v31 = vstv %s1756_s28  ;;  %s1843_s28 = sadd.s32 79, %s2926_s12  ;;  %v1825_v34 = vmul.f32 %v3344_v1, %v1823_v29  ;;  %s3680_s3 = sld [smem:[#allocation3 + %s1887_s27]] }
 0x199   : > { %v1759_v52 = vmul.f32 %v3328_v46, %v1757_v31  ;;  %v1760_v33 = vmul.f32 %v3388_v50, %v1757_v31  ;;  %v1758_v2 = vmul.f32 %v3304_v21, %v1757_v31  ;;  %v1780_v21 = vmul.f32 %v3310_v16, %v1779_v4  ;;  %s1844_s22 = sld [smem:[#allocation3 + %s1843_s28]]  ;;  %s4020_s27 = smov 123  }
 0x19a   : > { %1705 = vrot.lane.b32.xlu1 %v1702_v56, %s4018_s7  ;;  %v1808_v46 = vrot.slane %v1802_v8, 5  ;;  %v1826_v56 = vmul.f32 %v3365_v28, %v1823_v29  ;;  %s3675_s28 = sld [smem:[#allocation3 + %s1351_s26]]  ;;  %v1831_v1 = vrot.slane %v1825_v34, 5 }
 0x19b   : > { %1703 = vrot.lane.b32.xlu0 %v1700_v37, %s4018_s7  ;;  %v1765_v11 = vrot.slane %v1759_v52, 5  ;;  %v1767_v3 = vrot.slane %v1760_v33, 5  ;;  %v1764_v6 = vrot.slane %v1758_v2, 5  ;;  %v1786_v53 = vrot.slane %v1780_v21, 5  ;;  %v3691_v52 = vld [vmem:[%s2917_s25 + $0x8] sm:$0xff] }
 0x19c   : > { %v1170_v49 = vpop.permute.xlu1 %1169  ;;  %1725 = vrot.lane.b32.xlu2 %v1722_v7, %s4018_s7  ;;  %v1810_v14 = vsel %vm1661_vm5, %v1808_v46, %v1809_v27  ;;  %v1833_v28 = vrot.slane %v1826_v56, 5 }
 0x19d   : > { %v1174_v40 = vadd.f32 %v1170_v49, %v1152_v39  ;;  %v1168_v48 = vpop.permute.xlu0 %1167  ;;  %v1768_v42 = vsel %vm1661_vm5, %v1765_v11, %v1767_v3  ;;  %v1766_v16 = vsel %vm1661_vm5, %v1764_v6, %v1765_v11  ;;  %v1788_v55 = vsel %vm1661_vm5, %v1786_v53, %v1787_v17  ;;  %v3667_v39 = vld [vmem:[%s2917_s25] sm:$0xff] }
 0x19e   : > { %v1173_v60 = vadd.f32 %v1168_v48, %v1151_v32  ;;  %v3633_v57 = vpop.permute.xlu2 %1279  ;;  %v1824_v37 = vmul.f32 %v3667_v39, %v1823_v29  ;;  %v1812_v49 = vsel %vm1661_vm5, %v1809_v27, %v1811_v62  ;;  %v1889_v21 = vstv %s3680_s3  ;;  %s1990_s3 = sadd.s32 86, %s2926_s12 }
 0x19f   : > { %v1892_v46 = vmul.f32 %v3388_v50, %v1889_v21 }
 0x1a0   : > { %v1195_v63 = vadd.f32 %v3588_v0, %v1173_v60  ;;  %v1746_v0 = vsel %vm1661_vm5, %v1743_v47, %v1745_v59  ;;  %v1830_v45 = vrot.slane %v1824_v37, 5  ;;  %v1867_v47 = vstv %s1866_s6  ;;  %s1931_s6 = sadd.s32 83, %s2926_s12 }
 0x1a1   : > { %v1834_v60 = vsel %vm1661_vm5, %v1831_v1, %v1833_v28  ;;  %v1869_v33 = vmul.f32 %v3691_v52, %v1867_v47  ;;  %v1353_v4 = vstv %s3675_s28  ;;  %s3709_s18 = sld [smem:[#allocation3 + %s1931_s6]]  ;;  %v1899_v56 = vrot.slane %v1892_v46, 5 }
 0x1a2   : > { %1747 = vrot.lane.b32.xlu1 %v1744_v61, %s4017_s8  ;;  %v1868_v61 = vmul.f32 %v3667_v39, %v1867_v47  ;;  %v1832_v2 = vsel %vm1661_vm5, %v1830_v45, %v1831_v1  ;;  %v1354_v8 = vmul.f32 %v3667_v39, %v1353_v4  ;;  %v1355_v22 = vmul.f32 %v3691_v52, %v1353_v4  ;;  %s3735_s28 = sld [smem:[#allocation3 + %s1990_s3]]  ;;  %s2078_s3 = sadd.s32 90, %s2926_s12 }
 0x1a3   : > { %1727 = vrot.lane.b32.xlu0 %v1724_v35, %s4018_s7  ;;  %v1875_v6 = vrot.slane %v1869_v33, 5 }
 0x1a4   : > { %v1212_v5 = vpop.permute.xlu1 %1211  ;;  %1749 = vrot.lane.b32.xlu2 %v1746_v0, %s4017_s8  ;;  %v1372_v0 = vstv %s3678_s17  ;;  %v1362_v58 = vrot.slane %v1355_v22, 4  ;;  %s2012_s17 = sadd.s32 87, %s2926_s12 }
 0x1a5   : > { %v1217_v10 = vadd.f32 %v1212_v5, %v1195_v63  ;;  %v1192_v15 = vpop.permute.xlu0 %1191  ;;  %v1874_v5 = vrot.slane %v1868_v61, 5  ;;  %v1373_v53 = vmul.f32 %v3643_v12, %v1372_v0  ;;  %s2013_s6 = sld [smem:[#allocation3 + %s2012_s17]] }
 0x1a6   : > { %v1196_v18 = vadd.f32 %v1192_v15, %v1174_v40  ;;  %v3652_v26 = vpop.permute.xlu2 %1321  ;;  %v3685_v40 = vld [vmem:[%s2917_s25 + $0x20] sm:$0xff]  ;;  %v3713_v15 = vld [vmem:[%s2917_s25 + $0x10] sm:$0x3f]  ;;  %s2079_s17 = sld [smem:[#allocation3 + %s2078_s3]] }
 0x1a7   : > { %v1933_v62 = vstv %s3709_s18 }
 0x1a8   : > { %v1218_v23 = vadd.f32 %v3603_v20, %v1196_v18  ;;  %v1789_v20 = vrot.slane %v1782_v24, 5  ;;  %v1870_v18 = vmul.f32 %v3713_v15, %v1867_v47  ;;  %v1876_v24 = vsel %vm1661_vm5, %v1874_v5, %v1875_v6 }
 0x1aa   : > { %1771 = vrot.lane.b32.xlu1 %v1768_v42, %s4017_s8  ;;  %v1790_v38 = vsel %vm1661_vm5, %v1787_v17, %v1789_v20  ;;  %v1891_v17 = vmul.f32 %v3685_v40, %v1889_v21  ;;  %v1890_v20 = vmul.f32 %v3643_v12, %v1889_v21  ;;  %v1877_v29 = vrot.slane %v1870_v18, 5 }
 0x1ab   : > { %1769 = vrot.lane.b32.xlu0 %v1766_v16, %s4017_s8  ;;  %v1356_v16 = vmul.f32 %v3713_v15, %v1353_v4 }
 0x1ac   : > { %v1236_v30 = vpop.permute.xlu1 %1235  ;;  %1791 = vrot.lane.b32.xlu2 %v1788_v55, %s4016_s0  ;;  %v1361_v55 = vrot.slane %v1354_v8, 4  ;;  %v1897_v34 = vrot.slane %v1891_v17, 5  ;;  %v1896_v37 = vrot.slane %v1890_v20, 5  ;;  %v1878_v1 = vsel %vm1661_vm5, %v1875_v6, %v1877_v29 }
 0x1ad   : > { %v1240_v44 = vadd.f32 %v1236_v30, %v1218_v23  ;;  %v1234_v32 = vpop.permute.xlu0 %1233 }
 0x1ae   : > { %v1239_v13 = vadd.f32 %v1234_v32, %v1217_v10  ;;  %v3671_v41 = vpop.permute.xlu2 %1345  ;;  %v1375_v32 = vmul.f32 %v3388_v50, %v1372_v0  ;;  %v1363_v28 = vsel %vm1360_vm4, %v1361_v55, %v1362_v58 }
 0x1b0   : > { %v1261_v36 = vadd.f32 %v3619_v25, %v1239_v13  ;;  %v1845_v25 = vstv %s1844_s22  ;;  %s1909_s22 = sadd.s32 82, %s2926_s12  ;;  %v1382_v47 = vrot.slane %v1375_v32, 4 }
 0x1b1   : > { %v1846_v51 = vmul.f32 %v3643_v12, %v1845_v25  ;;  %v1847_v48 = vmul.f32 %v3685_v40, %v1845_v25  ;;  %v1848_v63 = vmul.f32 %v3388_v50, %v1845_v25  ;;  %s3705_s26 = sld [smem:[#allocation3 + %s1909_s22]]  ;;  %s2034_s22 = sadd.s32 88, %s2926_s12 }
 0x1b2   : > { %1813 = vrot.lane.b32.xlu1 %v1810_v14, %s4016_s0  ;;  %v1364_v14 = vrot.slane %v1356_v16, 4 }
 0x1b3   : > { %1793 = vrot.lane.b32.xlu0 %v1790_v38, %s4016_s0  ;;  %v1852_v59 = vrot.slane %v1846_v51, 5  ;;  %v1853_v3 = vrot.slane %v1847_v48, 5  ;;  %v1855_v9 = vrot.slane %v1848_v63, 5  ;;  %v1935_v48 = vmul.f32 %v3685_v40, %v1933_v62 }
 0x1b4   : > { %v1278_v43 = vpop.permute.xlu1 %1277  ;;  %1815 = vrot.lane.b32.xlu2 %v1812_v49, %s4016_s0  ;;  %v1365_v51 = vsel %vm1360_vm4, %v1362_v58, %v1364_v14  ;;  %v1898_v63 = vsel %vm1661_vm5, %v1896_v37, %v1897_v34  ;;  %v2014_v58 = vstv %s2013_s6  ;;  %s2122_s6 = sadd.s32 92, %s2926_s12 }
 0x1b5   : > { %v1283_v31 = vadd.f32 %v1278_v43, %v1261_v36  ;;  %v1258_v7 = vpop.permute.xlu0 %1257  ;;  %v1854_v10 = vsel %vm1661_vm5, %v1852_v59, %v1853_v3  ;;  %v1856_v30 = vsel %vm1661_vm5, %v1853_v3, %v1855_v9 }
 0x1b6   : > { %v1262_v54 = vadd.f32 %v1258_v7, %v1240_v44  ;;  %v3699_v11 = vpop.permute.xlu2 %1424  ;;  %v1374_v44 = vmul.f32 %v3685_v40, %v1372_v0  ;;  %v1900_v7 = vsel %vm1661_vm5, %v1897_v34, %v1899_v56 }
 0x1b7   : > { %v1911_v36 = vstv %s3705_s26  ;;  %s2035_s26 = sld [smem:[#allocation3 + %s2034_s22]] }
 0x1b8   : > { %v1284_v35 = vadd.f32 %v3633_v57, %v1262_v54  ;;  %v1912_v50 = vmul.f32 %v3667_v39, %v1911_v36  ;;  %v1380_v25 = vrot.slane %v1374_v44, 4  ;;  %v1934_v54 = vmul.f32 %v3643_v12, %v1933_v62 }
 0x1ba   : > { %1837 = vrot.lane.b32.xlu1 %v1834_v60, %s2749_s23  ;;  %v1914_v60 = vmul.f32 %v3713_v15, %v1911_v36  ;;  %v1383_v59 = vsel %vm1360_vm4, %v1380_v25, %v1382_v47  ;;  %v1940_v6 = vrot.slane %v1934_v54, 5 }
 0x1bb   : > { %1835 = vrot.lane.b32.xlu0 %v1832_v2, %s2749_s23 }
 0x1bc   : > { %v1302_v57 = vpop.permute.xlu1 %1301  ;;  %1857 = vrot.lane.b32.xlu2 %v1854_v10, %s2749_s23  ;;  %v1921_v9 = vrot.slane %v1914_v60, 5 }
 0x1bd   : > { %v1306_v19 = vadd.f32 %v1302_v57, %v1284_v35  ;;  %v1300_v42 = vpop.permute.xlu0 %1299  ;;  %v1918_v35 = vrot.slane %v1912_v50, 5  ;;  %v1992_v57 = vstv %s3735_s28  ;;  %s2100_s28 = sadd.s32 91, %s2926_s12 }
 0x1be   : > { %v1305_v23 = vadd.f32 %v1300_v42, %v1283_v31  ;;  %v3730_v13 = vpop.permute.xlu2 %1448  ;;  %v1913_v31 = vmul.f32 %v3691_v52, %v1911_v36  ;;  %s2101_s22 = sld [smem:[#allocation3 + %s2100_s28]]  ;;  %s1652_s28 = sadd.s32 70, %s2926_s12 }
 0x1c0   : > { %v1327_v27 = vadd.f32 %v3652_v26, %v1305_v23  ;;  %v1379_v26 = vrot.slane %v1373_v53, 4  ;;  %v1919_v5 = vrot.slane %v1913_v31, 5  ;;  %v1995_v53 = vmul.f32 %v3713_v15, %v1992_v57 }
 0x1c2   : > { %1879 = vrot.lane.b32.xlu1 %v1876_v24, %s4020_s27  ;;  %v1381_v2 = vsel %vm1360_vm4, %v1379_v26, %v1380_v25  ;;  %v1920_v18 = vsel %vm1661_vm5, %v1918_v35, %v1919_v5  ;;  %v1994_v24 = vmul.f32 %v3691_v52, %v1992_v57  ;;  %v1922_v46 = vsel %vm1661_vm5, %v1919_v5, %v1921_v9 }
 0x1c3   : > { %1859 = vrot.lane.b32.xlu0 %v1856_v30, %s2749_s23  ;;  %v2002_v55 = vrot.slane %v1995_v53, 6  ;;  %v2015_v26 = vmul.f32 %v3643_v12, %v2014_v58 }
 0x1c4   : > { %v1344_v38 = vpop.permute.xlu1 %1343  ;;  %1881 = vrot.lane.b32.xlu2 %v1878_v1, %s4020_s27  ;;  %v2000_v29 = vrot.slane %v1994_v24, 6 }
 0x1c5   : > { %v1349_v43 = vadd.f32 %v1344_v38, %v1327_v27  ;;  %v1324_v45 = vpop.permute.xlu0 %1323  ;;  %v1993_v27 = vmul.f32 %v3667_v39, %v1992_v57  ;;  %v2016_v38 = vmul.f32 %v3685_v40, %v2014_v58 }
 0x1c6   : > { %v1328_v49 = vadd.f32 %v1324_v45, %v1306_v19  ;;  %v3753_v3 = vpop.permute.xlu2 %1490  ;;  %v3761_v19 = vld [vmem:[%s2917_s25 + $0x28] sm:$0x3f]  ;;  %s2056_s25 = sadd.s32 89, %s2926_s12  ;;  %v2003_v37 = vsel %vm1962_vm6, %v2000_v29, %v2002_v55 }
 0x1c7   : > { %v1368_v61 = vadd.f32 %v1363_v28, %v1349_v43  ;;  %v1936_v42 = vmul.f32 %v3761_v19, %v1933_v62  ;;  %v1999_v32 = vrot.slane %v1993_v27, 6  ;;  %s2057_s18 = sld [smem:[#allocation3 + %s2056_s25]]  ;;  %v2017_v25 = vmul.f32 %v3761_v19, %v2014_v58  ;;  %s2144_s25 = sadd.s32 93, %s2926_s12 }
 0x1c8   : > { %v1350_v33 = vadd.f32 %v3671_v41, %v1328_v49  ;;  %v1941_v41 = vrot.slane %v1935_v48, 5  ;;  %v2021_v43 = vrot.slane %v2015_v26, 6  ;;  %v2022_v47 = vrot.slane %v2016_v38, 6  ;;  %s2145_s3 = sld [smem:[#allocation3 + %s2144_s25]]  ;;  %s2232_s25 = sadd.s32 97, %s2926_s12 }
 0x1c9   : > { %v1386_v0 = vadd.f32 %v1381_v2, %v1368_v61  ;;  %v1943_v30 = vrot.slane %v1936_v42, 5  ;;  %v2001_v28 = vsel %vm1962_vm6, %v1999_v32, %v2000_v29 }
 0x1ca   : > { %v1369_v4 = vadd.f32 %v1365_v51, %v1350_v33  ;;  %1903 = vrot.lane.b32.xlu1 %v1900_v7, %s4020_s27  ;;  %v1942_v16 = vsel %vm1661_vm5, %v1940_v6, %v1941_v41  ;;  %v2023_v54 = vsel %vm1962_vm6, %v2021_v43, %v2022_v47 }
 0x1cb   : > { %1901 = vrot.lane.b32.xlu0 %v1898_v63, %s4020_s27  ;;  %v1944_v14 = vsel %vm1661_vm5, %v1941_v41, %v1943_v30 }
 0x1cc   : > { %v1387_v21 = vadd.f32 %v1383_v59, %v1369_v4  ;;  %v1405_v10 = vpop.permute.xlu1 %1404  ;;  %1923 = vrot.lane.b32.xlu2 %v1920_v18, %s4019_s4 }
 0x1cd   : > { %v1403_v8 = vpop.permute.xlu0 %1402  ;;  %v2058_v7 = vstv %s2057_s18 }
 0x1ce   : > { %v1409_v22 = vadd.f32 %v1405_v10, %v1387_v21  ;;  %v1408_v23 = vadd.f32 %v1403_v8, %v1386_v0  ;;  %v3771_v20 = vpop.permute.xlu2 %1514  ;;  %v2060_v35 = vmul.f32 %v3685_v40, %v2058_v7  ;;  %v2061_v2 = vmul.f32 %v3761_v19, %v2058_v7 }
 0x1cf   : > { %v2059_v5 = vmul.f32 %v3643_v12, %v2058_v7  ;;  %v2080_v0 = vstv %s2079_s17  ;;  %s2188_s17 = sadd.s32 95, %s2926_s12  ;;  %v2146_v7 = vstv %s2145_s3 }
 0x1d0   : > { %v1430_v17 = vadd.f32 %v3699_v11, %v1408_v23  ;;  %v2036_v11 = vstv %s2035_s26  ;;  %v2066_v9 = vrot.slane %v2060_v35, 6  ;;  %v2068_v57 = vrot.slane %v2061_v2, 6  ;;  %s2123_s26 = sld [smem:[#allocation3 + %s2122_s6]] }
 0x1d1   : > { %v2037_v62 = vmul.f32 %v3667_v39, %v2036_v11  ;;  %v2038_v1 = vmul.f32 %v3691_v52, %v2036_v11  ;;  %v2039_v48 = vmul.f32 %v3713_v15, %v2036_v11  ;;  %v2065_v10 = vrot.slane %v2059_v5, 6  ;;  %s2189_s6 = sld [smem:[#allocation3 + %s2188_s17]] }
 0x1d2   : > { %1945 = vrot.lane.b32.xlu1 %v1942_v16, %s4019_s4  ;;  %v2081_v42 = vmul.f32 %v3667_v39, %v2080_v0  ;;  %v2082_v16 = vmul.f32 %v3691_v52, %v2080_v0  ;;  %v2069_v24 = vsel %vm1962_vm6, %v2066_v9, %v2068_v57  ;;  %v2083_v30 = vmul.f32 %v3713_v15, %v2080_v0 }
 0x1d3   : > { %1925 = vrot.lane.b32.xlu0 %v1922_v46, %s4019_s4  ;;  %v2043_v49 = vrot.slane %v2037_v62, 6  ;;  %v2044_v51 = vrot.slane %v2038_v1, 6  ;;  %v2046_v6 = vrot.slane %v2039_v48, 6  ;;  %v2067_v27 = vsel %vm1962_vm6, %v2065_v10, %v2066_v9 }
 0x1d4   : > { %v1447_v44 = vpop.permute.xlu1 %1446  ;;  %1947 = vrot.lane.b32.xlu2 %v1944_v14, %s4019_s4  ;;  %v2087_v29 = vrot.slane %v2081_v42, 6  ;;  %v2088_v58 = vrot.slane %v2082_v16, 6  ;;  %v2090_v14 = vrot.slane %v2083_v30, 6  ;;  %v2147_v48 = vmul.f32 %v3643_v12, %v2146_v7 }
 0x1d5   : > { %v1452_v34 = vadd.f32 %v1447_v44, %v1430_v17  ;;  %v1427_v56 = vpop.permute.xlu0 %1426  ;;  %v2045_v63 = vsel %vm1962_vm6, %v2043_v49, %v2044_v51  ;;  %v2047_v18 = vsel %vm1962_vm6, %v2044_v51, %v2046_v6  ;;  %v2148_v2 = vmul.f32 %v3685_v40, %v2146_v7 }
 0x1d6   : > { %v1431_v36 = vadd.f32 %v1427_v56, %v1409_v22  ;;  %v3787_v45 = vpop.permute.xlu2 %1556  ;;  %v2124_v11 = vstv %s2123_s26  ;;  %v2089_v26 = vsel %vm1962_vm6, %v2087_v29, %v2088_v58  ;;  %v2149_v6 = vmul.f32 %v3761_v19, %v2146_v7 }
 0x1d7   : > { %v2127_v1 = vmul.f32 %v3713_v15, %v2124_v11  ;;  %v2153_v57 = vrot.slane %v2147_v48, 6 }
 0x1d8   : > { %v1453_v50 = vadd.f32 %v3730_v13, %v1431_v36  ;;  %v2024_v13 = vrot.slane %v2017_v25, 6  ;;  %v2091_v25 = vsel %vm1962_vm6, %v2088_v58, %v2090_v14 }
 0x1d9   : > { %v2134_v51 = vrot.slane %v2127_v1, 6 }
 0x1da   : > { %2006 = vrot.lane.b32.xlu1 %v2003_v37, %s4018_s7  ;;  %v2025_v4 = vsel %vm1962_vm6, %v2022_v47, %v2024_v13  ;;  %v2126_v37 = vmul.f32 %v3691_v52, %v2124_v11 }
 0x1db   : > { %2004 = vrot.lane.b32.xlu0 %v2001_v28, %s4018_s7 }
 0x1dc   : > { %v1471_v31 = vpop.permute.xlu1 %1470  ;;  %2026 = vrot.lane.b32.xlu2 %v2023_v54, %s4018_s7  ;;  %v2132_v49 = vrot.slane %v2126_v37, 6 }
 0x1dd   : > { %v1475_v60 = vadd.f32 %v1471_v31, %v1453_v50  ;;  %v1469_v61 = vpop.permute.xlu0 %1468  ;;  %v2125_v50 = vmul.f32 %v3667_v39, %v2124_v11 }
 0x1de   : > { %v1474_v33 = vadd.f32 %v1469_v61, %v1452_v34  ;;  %v3802_v41 = vpop.permute.xlu2 %1580 }
 0x1df   : > { %v2131_v31 = vrot.slane %v2125_v50, 6 }
 0x1e0   : > { %v1496_v59 = vadd.f32 %v3753_v3, %v1474_v33  ;;  %v2102_v3 = vstv %s2101_s22  ;;  %s1671_s22 = sadd.s32 71, %s2926_s12 }
 0x1e1   : > { %v2103_v53 = vmul.f32 %v3643_v12, %v2102_v3  ;;  %v2104_v17 = vmul.f32 %v3685_v40, %v2102_v3  ;;  %v2105_v34 = vmul.f32 %v3761_v19, %v2102_v3  ;;  %s1672_s26 = sld [smem:[#allocation3 + %s1671_s22]]  ;;  %v2154_v3 = vrot.slane %v2148_v2, 6 }
 0x1e2   : > { %2048 = vrot.lane.b32.xlu1 %v2045_v63, %s4017_s8 }
 0x1e3   : > { %2028 = vrot.lane.b32.xlu0 %v2025_v4, %s4018_s7  ;;  %s2166_s7 = sadd.s32 94, %s2926_s12  ;;  %v2109_v44 = vrot.slane %v2103_v53, 6  ;;  %v2110_v32 = vrot.slane %v2104_v17, 6  ;;  %v2112_v43 = vrot.slane %v2105_v34, 6  ;;  %v2133_v4 = vsel %vm1962_vm6, %v2131_v31, %v2132_v49 }
 0x1e4   : > { %v1513_v21 = vpop.permute.xlu1 %1512  ;;  %2050 = vrot.lane.b32.xlu2 %v2047_v18, %s4017_s8  ;;  %s2167_s18 = sld [smem:[#allocation3 + %s2166_s7]]  ;;  %s2210_s7 = sadd.s32 96, %s2926_s12 }
 0x1e5   : > { %v1518_v8 = vadd.f32 %v1513_v21, %v1496_v59  ;;  %v1493_v22 = vpop.permute.xlu0 %1492  ;;  %v2111_v62 = vsel %vm1962_vm6, %v2109_v44, %v2110_v32  ;;  %v2135_v59 = vsel %vm1962_vm6, %v2132_v49, %v2134_v51 }
 0x1e6   : > { %v1497_v23 = vadd.f32 %v1493_v22, %v1475_v60  ;;  %v3818_v55 = vpop.permute.xlu2 %1622  ;;  %v2190_v22 = vstv %s2189_s6 }
 0x1e7   : > { %v1673_v30 = vstv %s1672_s26  ;;  %v2192_v44 = vmul.f32 %v3685_v40, %v2190_v22  ;;  %v2191_v14 = vmul.f32 %v3643_v12, %v2190_v22 }
 0x1e8   : > { %v1519_v46 = vadd.f32 %v3771_v20, %v1497_v23  ;;  %v2155_v23 = vsel %vm1962_vm6, %v2153_v57, %v2154_v3  ;;  %v1675_v34 = vmul.f32 %v3685_v40, %v1673_v30 }
 0x1ea   : > { %2072 = vrot.lane.b32.xlu1 %v2069_v24, %s4017_s8  ;;  %v2168_v13 = vstv %s2167_s18  ;;  %s3858_s18 = sld [smem:[#allocation3 + %s2232_s25]]  ;;  %v1681_v7 = vrot.slane %v1675_v34, 5 }
 0x1eb   : > { %2070 = vrot.lane.b32.xlu0 %v2067_v27, %s4017_s8  ;;  %s1653_s8 = sld [smem:[#allocation3 + %s1652_s28]]  ;;  %v2169_v63 = vmul.f32 %v3667_v39, %v2168_v13  ;;  %v2170_v35 = vmul.f32 %v3691_v52, %v2168_v13  ;;  %v2171_v16 = vmul.f32 %v3713_v15, %v2168_v13 }
 0x1ec   : > { %v1537_v20 = vpop.permute.xlu1 %1536  ;;  %2092 = vrot.lane.b32.xlu2 %v2089_v26, %s4016_s0 }
 0x1ed   : > { %v1541_v56 = vadd.f32 %v1537_v20, %v1519_v46  ;;  %v1535_v36 = vpop.permute.xlu0 %1534  ;;  %v2175_v21 = vrot.slane %v2169_v63, 6  ;;  %v2176_v10 = vrot.slane %v2170_v35, 6  ;;  %v2178_v26 = vrot.slane %v2171_v16, 6 }
 0x1ee   : > { %v1540_v38 = vadd.f32 %v1535_v36, %v1518_v8  ;;  %v3832_v47 = vpop.permute.xlu2 %1646  ;;  %v2156_v8 = vrot.slane %v2149_v6, 6  ;;  %v1674_v36 = vmul.f32 %v3643_v12, %v1673_v30 }
 0x1ef   : > { %v2177_v46 = vsel %vm1962_vm6, %v2175_v21, %v2176_v10  ;;  %v2179_v49 = vsel %vm1962_vm6, %v2176_v10, %v2178_v26 }
 0x1f0   : > { %v1562_v28 = vadd.f32 %v3787_v45, %v1540_v38  ;;  %v2113_v45 = vsel %vm1962_vm6, %v2110_v32, %v2112_v43  ;;  %v2193_v32 = vmul.f32 %v3761_v19, %v2190_v22  ;;  %v2157_v20 = vsel %vm1962_vm6, %v2154_v3, %v2156_v8 }
 0x1f1   : > { %v1654_v9 = vstv %s1653_s8  ;;  %v2234_v43 = vstv %s3858_s18 }
 0x1f2   : > { %2114 = vrot.lane.b32.xlu1 %v2111_v62, %s4016_s0  ;;  %v1655_v18 = vmul.f32 %v3667_v39, %v1654_v9  ;;  %v1656_v42 = vmul.f32 %v3691_v52, %v1654_v9  ;;  %v1657_v27 = vmul.f32 %v3713_v15, %v1654_v9  ;;  %v2198_v62 = vrot.slane %v2192_v44, 6 }
 0x1f3   : > { %2094 = vrot.lane.b32.xlu0 %v2091_v25, %s4016_s0  ;;  %v2200_v1 = vrot.slane %v2193_v32, 6  ;;  %v2197_v25 = vrot.slane %v2191_v14, 6  ;;  %v2235_v63 = vmul.f32 %v3643_v12, %v2234_v43  ;;  %v2236_v35 = vmul.f32 %v3685_v40, %v2234_v43 }
 0x1f4   : > { %v1579_v54 = vpop.permute.xlu1 %1578  ;;  %2116 = vrot.lane.b32.xlu2 %v2113_v45, %s4016_s0  ;;  %s3856_s0 = sld [smem:[#allocation3 + %s2210_s7]]  ;;  %v1662_v29 = vrot.slane %v1655_v18, 5  ;;  %v1663_v58 = vrot.slane %v1656_v42, 5  ;;  %v1665_v37 = vrot.slane %v1657_v27, 5  ;;  %v1680_v45 = vrot.slane %v1674_v36, 5 }
 0x1f5   : > { %v1584_v60 = vadd.f32 %v1579_v54, %v1562_v28  ;;  %v1559_v61 = vpop.permute.xlu0 %1558  ;;  %v2241_v18 = vrot.slane %v2235_v63, 6  ;;  %v2242_v42 = vrot.slane %v2236_v35, 6  ;;  %v2237_v16 = vmul.f32 %v3761_v19, %v2234_v43 }
 0x1f6   : > { %v1563_v33 = vadd.f32 %v1559_v61, %v1541_v56  ;;  %v3849_v0 = vpop.permute.xlu2 %1725  ;;  %v1676_v56 = vmul.f32 %v3761_v19, %v1673_v30  ;;  %v1682_v57 = vsel %vm1661_vm5, %v1680_v45, %v1681_v7 }
 0x1f8   : > { %v1585_v5 = vadd.f32 %v3802_v41, %v1563_v33  ;;  %v1683_v54 = vrot.slane %v1676_v56, 5  ;;  %v2201_v33 = vsel %vm1962_vm6, %v2198_v62, %v2200_v1 }
 0x1fa   : > { %2138 = vrot.lane.b32.xlu1 %v2135_v59, %s2749_s23  ;;  %v2212_v50 = vstv %s3856_s0  ;;  %v1684_v9 = vsel %vm1661_vm5, %v1681_v7, %v1683_v54 }
 0x1fb   : > { %2136 = vrot.lane.b32.xlu0 %v2133_v4, %s2749_s23  ;;  %v2213_v51 = vmul.f32 %v3667_v39, %v2212_v50  ;;  %v2214_v61 = vmul.f32 %v3691_v52, %v2212_v50  ;;  %v2215_v2 = vmul.f32 %v3713_v15, %v2212_v50 }
 0x1fc   : > { %v1603_v41 = vpop.permute.xlu1 %1602  ;;  %2158 = vrot.lane.b32.xlu2 %v2155_v23, %s2749_s23 }
 0x1fd   : > { %v1607_v24 = vadd.f32 %v1603_v41, %v1585_v5  ;;  %v1601_v53 = vpop.permute.xlu0 %1600  ;;  %v2199_v5 = vsel %vm1962_vm6, %v2197_v25, %v2198_v62  ;;  %v2219_v6 = vrot.slane %v2213_v51, 6  ;;  %v2220_v3 = vrot.slane %v2214_v61, 6 }
 0x1fe   : > { %v1606_v17 = vadd.f32 %v1601_v53, %v1584_v60  ;;  %v1750_v38 = vpop.permute.xlu2 %1749  ;;  %v1666_v60 = vsel %vm1661_vm5, %v1663_v58, %v1665_v37  ;;  %v2222_v41 = vrot.slane %v2215_v2, 6 }
 0x1ff   : > { %v2221_v23 = vsel %vm1962_vm6, %v2219_v6, %v2220_v3 }
 0x200   : > { %v1628_v11 = vadd.f32 %v3818_v55, %v1606_v17  ;;  %v1664_v55 = vsel %vm1661_vm5, %v1662_v29, %v1663_v58  ;;  %v2223_v30 = vsel %vm1962_vm6, %v2220_v3, %v2222_v41  ;;  %v2244_v29 = vrot.slane %v2237_v16, 6 }
 0x202   : > { %2180 = vrot.lane.b32.xlu1 %v2177_v46, %s4020_s27  ;;  %v2243_v46 = vsel %vm1962_vm6, %v2241_v18, %v2242_v42  ;;  %v2245_v32 = vsel %vm1962_vm6, %v2242_v42, %v2244_v29 }
 0x203   : > { %2160 = vrot.lane.b32.xlu0 %v2157_v20, %s2749_s23  ;;  %s1953_s23 = sadd.s32 84, %s2926_s12 }
 0x204   : > { %v1645_v28 = vpop.permute.xlu1 %1644  ;;  %2182 = vrot.lane.b32.xlu2 %v2179_v49, %s4020_s27 }
 0x205   : > { %v1650_v31 = vadd.f32 %v1645_v28, %v1628_v11  ;;  %v1625_v13 = vpop.permute.xlu0 %1624 }
 0x206   : > { %v1629_v48 = vadd.f32 %v1625_v13, %v1607_v24  ;;  %v1792_v21 = vpop.permute.xlu2 %1791 }
 0x207   : > { %v1669_v59 = vadd.f32 %v1664_v55, %v1650_v31 }
 0x208   : > { %v1651_v4 = vadd.f32 %v3832_v47, %v1629_v48 }
 0x209   : > { %v1687_v47 = vadd.f32 %v1682_v57, %v1669_v59 }
 0x20a   : > { %v1670_v10 = vadd.f32 %v1666_v60, %v1651_v4  ;;  %2204 = vrot.lane.b32.xlu1 %v2201_v33, %s4020_s27 }
 0x20b   : > { %2202 = vrot.lane.b32.xlu0 %v2199_v5, %s4020_s27  ;;  %s1972_s27 = sadd.s32 85, %s2926_s12 }
 0x20c   : > { %v1706_v8 = vpop.permute.xlu1 %1705  ;;  %v1688_v22 = vadd.f32 %v1684_v9, %v1670_v10  ;;  %2224 = vrot.lane.b32.xlu2 %v2221_v23, %s4019_s4  ;;  %s1973_s3 = sld [smem:[#allocation3 + %s1972_s27]] }
 0x20d   : > { %v1704_v24 = vpop.permute.xlu0 %1703 }
 0x20e   : > { %v1710_v53 = vadd.f32 %v1706_v8, %v1688_v22  ;;  %v1709_v17 = vadd.f32 %v1704_v24, %v1687_v47  ;;  %v1816_v58 = vpop.permute.xlu2 %1815 }
 0x210   : > { %v1731_v27 = vadd.f32 %v3849_v0, %v1709_v17 }
 0x212   : > { %2246 = vrot.lane.b32.xlu1 %v2243_v46, %s4019_s4  ;;  %v1974_v41 = vstv %s1973_s3 }
 0x213   : > { %2226 = vrot.lane.b32.xlu0 %v2223_v30, %s4019_s4  ;;  %v1976_v24 = vmul.f32 %v3685_v40, %v1974_v41  ;;  %v1977_v29 = vmul.f32 %v3761_v19, %v1974_v41 }
 0x214   : > { %v1748_v44 = vpop.permute.xlu1 %1747  ;;  %2248 = vrot.lane.b32.xlu2 %v2245_v32, %s4019_s4  ;;  %s1954_s4 = sld [smem:[#allocation3 + %s1953_s23]] }
 0x215   : > { %v1753_v11 = vadd.f32 %v1748_v44, %v1731_v27  ;;  %v1728_v20 = vpop.permute.xlu0 %1727  ;;  %v1982_v32 = vrot.slane %v1976_v24, 6  ;;  %v1984_v40 = vrot.slane %v1977_v29, 6 }
 0x216   : > { %v1732_v14 = vadd.f32 %v1728_v20, %v1710_v53  ;;  %v1858_v34 = vpop.permute.xlu2 %1857  ;;  %v1975_v53 = vmul.f32 %v3643_v12, %v1974_v41 }
 0x218   : > { %v1754_v26 = vadd.f32 %v1750_v38, %v1732_v14 }
 0x21a   : > { %v1955_v4 = vstv %s1954_s4 }
 0x21b   : > { %v1956_v3 = vmul.f32 %v3667_v39, %v1955_v4  ;;  %v1958_v47 = vmul.f32 %v3713_v15, %v1955_v4 }
 0x21c   : > { %v1772_v56 = vpop.permute.xlu1 %1771 }
 0x21d   : > { %v1770_v0 = vpop.permute.xlu0 %1769  ;;  %v1776_v45 = vadd.f32 %v1772_v56, %v1754_v26  ;;  %v1963_v22 = vrot.slane %v1956_v3, 6  ;;  %v1966_v39 = vrot.slane %v1958_v47, 6  ;;  %v1985_v56 = vsel %vm1962_vm6, %v1982_v32, %v1984_v40  ;;  %v2255_v47 = vld [vmem:[#allocation2 + $0x8] sm:$0xff] }
 0x21e   : > { %v1882_v36 = vpop.permute.xlu2 %1881  ;;  %v1775_v38 = vadd.f32 %v1770_v0, %v1753_v11  ;;  %v1981_v11 = vrot.slane %v1975_v53, 6 }
 0x220   : > { %v1797_v48 = vadd.f32 %v1792_v21, %v1775_v38  ;;  %v1957_v21 = vmul.f32 %v3691_v52, %v1955_v4  ;;  %v1983_v12 = vsel %vm1962_vm6, %v1981_v11, %v1982_v32 }
 0x222   : > { %v1964_v16 = vrot.slane %v1957_v21, 6 }
 0x224   : > { %v1814_v37 = vpop.permute.xlu1 %1813  ;;  %v1965_v44 = vsel %vm1962_vm6, %v1963_v22, %v1964_v16  ;;  %v1967_v14 = vsel %vm1962_vm6, %v1964_v16, %v1966_v39 }
 0x225   : > { %v1794_v55 = vpop.permute.xlu0 %1793  ;;  %v1819_v33 = vadd.f32 %v1814_v37, %v1797_v48 }
 0x226   : > { %v1924_v62 = vpop.permute.xlu2 %1923  ;;  %v1798_v60 = vadd.f32 %v1794_v55, %v1776_v45 }
 0x228   : > { %v1820_v2 = vadd.f32 %v1816_v58, %v1798_v60 }
 0x22c   : > { %v1838_v1 = vpop.permute.xlu1 %1837 }
 0x22d   : > { %v1836_v50 = vpop.permute.xlu0 %1835  ;;  %v1842_v59 = vadd.f32 %v1838_v1, %v1820_v2 }
 0x22e   : > { %v1948_v43 = vpop.permute.xlu2 %1947  ;;  %v1841_v35 = vadd.f32 %v1836_v50, %v1819_v33 }
 0x230   : > { %v1863_v5 = vadd.f32 %v1858_v34, %v1841_v35 }
 0x234   : > { %v1880_v28 = vpop.permute.xlu1 %1879 }
 0x235   : > { %v1860_v25 = vpop.permute.xlu0 %1859  ;;  %v1885_v10 = vadd.f32 %v1880_v28, %v1863_v5 }
 0x236   : > { %v2027_v31 = vpop.permute.xlu2 %2026  ;;  %v1864_v9 = vadd.f32 %v1860_v25, %v1842_v59 }
 0x238   : > { %v1886_v8 = vadd.f32 %v1882_v36, %v1864_v9 }
 0x23c   : > { %v1904_v49 = vpop.permute.xlu1 %1903 }
 0x23d   : > { %v1902_v51 = vpop.permute.xlu0 %1901  ;;  %v1908_v23 = vadd.f32 %v1904_v49, %v1886_v8 }
 0x23e   : > { %v3904_v54 = vpop.permute.xlu2 %2050  ;;  %v1907_v42 = vadd.f32 %v1902_v51, %v1885_v10 }
 0x240   : > { %v1929_v17 = vadd.f32 %v1924_v62, %v1907_v42 }
 0x244   : > { %v1946_v13 = vpop.permute.xlu1 %1945 }
 0x245   : > { %v1926_v7 = vpop.permute.xlu0 %1925  ;;  %v1951_v30 = vadd.f32 %v1946_v13, %v1929_v17 }
 0x246   : > { %v2093_v6 = vpop.permute.xlu2 %2092  ;;  %v1930_v46 = vadd.f32 %v1926_v7, %v1908_v23 }
 0x247   : > { %v1970_v20 = vadd.f32 %v1965_v44, %v1951_v30 }
 0x248   : > { %v1952_v15 = vadd.f32 %v1948_v43, %v1930_v46 }
 0x249   : > { %v1988_v0 = vadd.f32 %v1983_v12, %v1970_v20 }
 0x24a   : > { %v1971_v26 = vadd.f32 %v1967_v14, %v1952_v15 }
 0x24c   : > { %v2007_v61 = vpop.permute.xlu1 %2006  ;;  %v1989_v55 = vadd.f32 %v1985_v56, %v1971_v26 }
 0x24d   : > { %v2005_v63 = vpop.permute.xlu0 %2004 }
 0x24e   : > { %v2117_v58 = vpop.permute.xlu2 %2116  ;;  %v2010_v19 = vadd.f32 %v2005_v63, %v1988_v0  ;;  %v2011_v1 = vadd.f32 %v2007_v61, %v1989_v55 }
 0x250   : > { %v2032_v62 = vadd.f32 %v2027_v31, %v2010_v19 }
 0x254   : > { %v2049_v57 = vpop.permute.xlu1 %2048 }
 0x255   : > { %v2029_v18 = vpop.permute.xlu0 %2028  ;;  %v2054_v28 = vadd.f32 %v2049_v57, %v2032_v62 }
 0x256   : > { %v2159_v37 = vpop.permute.xlu2 %2158  ;;  %v2033_v43 = vadd.f32 %v2029_v18, %v2011_v1 }
 0x258   : > { %v2055_v13 = vadd.f32 %v3904_v54, %v2033_v43  ;;  %v2254_v54 = vld [vmem:[#allocation2] sm:$0xff] }
 0x25c   : > { %v2073_v27 = vpop.permute.xlu1 %2072 }
 0x25d   : > { %v2071_v52 = vpop.permute.xlu0 %2070  ;;  %v2077_v38 = vadd.f32 %v2073_v27, %v2055_v13 }
 0x25e   : > { %v2076_v49 = vadd.f32 %v2071_v52, %v2054_v28  ;;  %v2183_v51 = vpop.permute.xlu2 %2182 }
 0x260   : > { %v2098_v7 = vadd.f32 %v2093_v6, %v2076_v49 }
 0x264   : > { %v2115_v34 = vpop.permute.xlu1 %2114 }
 0x265   : > { %v2095_v36 = vpop.permute.xlu0 %2094  ;;  %v2120_v48 = vadd.f32 %v2115_v34, %v2098_v7 }
 0x266   : > { %v2099_v33 = vadd.f32 %v2095_v36, %v2077_v38  ;;  %v2225_v59 = vpop.permute.xlu2 %2224 }
 0x268   : > { %v2121_v63 = vadd.f32 %v2117_v58, %v2099_v33 }
 0x26c   : > { %v2139_v50 = vpop.permute.xlu1 %2138 }
 0x26d   : > { %v2137_v25 = vpop.permute.xlu0 %2136  ;;  %v2143_v31 = vadd.f32 %v2139_v50, %v2121_v63 }
 0x26e   : > { %v2142_v35 = vadd.f32 %v2137_v25, %v2120_v48  ;;  %v2249_v41 = vpop.permute.xlu2 %2248 }
 0x270   : > { %v2164_v2 = vadd.f32 %v2159_v37, %v2142_v35 }
 0x274   : > { %v2181_v45 = vpop.permute.xlu1 %2180 }
 0x275   : > { %v2161_v60 = vpop.permute.xlu0 %2160  ;;  %v2186_v4 = vadd.f32 %v2181_v45, %v2164_v2 }
 0x276   : > { %v2165_v9 = vadd.f32 %v2161_v60, %v2143_v31 }
 0x278   : > { %v2187_v10 = vadd.f32 %v2183_v51, %v2165_v9 }
 0x27c   : > { %v2205_v61 = vpop.permute.xlu1 %2204 }
 0x27d   : > { %v2203_v5 = vpop.permute.xlu0 %2202  ;;  %v2209_v18 = vadd.f32 %v2205_v61, %v2187_v10 }
 0x27e   : > { %v2208_v57 = vadd.f32 %v2203_v5, %v2186_v4 }
 0x280   : > { %v2230_v3 = vadd.f32 %v2225_v59, %v2208_v57 }
 0x284   : > { %v2247_v6 = vpop.permute.xlu1 %2246 }
 0x285   : > { %v2252_v21 = vadd.f32 %v2247_v6, %v2230_v3  ;;  %v2227_v42 = vpop.permute.xlu0 %2226 }
 0x286   : > { %v2231_v8 = vadd.f32 %v2227_v42, %v2209_v18 }
 0x287   : > { %v2256_v22 = vadd.f32 %v2254_v54, %v2252_v21 }
 0x288   : > { %v2253_v23 = vadd.f32 %v2249_v41, %v2231_v8  ;;  %2264 = sbr.rel (%p2441_p8) target bundleno = 691 (0x2b3), region = 78 }
 0x289   : > { %2259 = vst.msk [vmem:[#allocation2] sm:$0xff] %vm2258_vm7, %v2256_v22 }
 0x28a   : > { %v2257_v16 = vadd.f32 %v2255_v47, %v2253_v23 }
 0x28c   : > { %2260 = vst.msk [vmem:[#allocation2 + $0x8] sm:$0xff] %vm2258_vm7, %v2257_v16 }
 0x290   : > { %v2265_v24 = vld [vmem:[#allocation2] sm:$0xff] }
 0x291   : > { %v2442_v17 = vmul.f32 -1.442695, %v2265_v24 }
 0x293   : > { %v2266_v53 = vld [vmem:[#allocation2 + $0x8] sm:$0xff]  ;;  %2589 = vpow2.f32 %v2442_v17 }
 0x294   : > { %v2443_v46 = vmul.f32 -1.442695, %v2266_v53 }
 0x296   : > { %2591 = vpow2.f32 %v2443_v46 }
 0x299   : > { %v2590_v27 = vpop.eup %2589 }
 0x29a   : > { %v2273_v39 = vadd.f32 1.0, %v2590_v27 }
 0x29c   : > { %v2592_v30 = vpop.eup %2591  ;;  %2593 = vrcp.f32 %v2273_v39  ;;  %vm2280_vm8 = vweird.f32 %v2273_v39  ;;  %v2286_v32 = vand.u32 2147483648, %v2273_v39  ;;  %v2284_v20 = vand.u32 2147483647, %v2273_v39 }
 0x29d   : > { %v2274_v29 = vadd.f32 1.0, %v2592_v30 }
 0x29e   : > { %v2287_v34 = vor.u32 1.1754944e-38, %v2286_v32  ;;  %vm2285_vm13 = vcmp.eq.f32.partialorder %v2284_v20, 8.507059e+37 }
 0x29f   : > { %2595 = vrcp.f32 %v2274_v29  ;;  %v2301_v14 = vand.u32 2147483648, %v2274_v29  ;;  %vm2295_vm10 = vweird.f32 %v2274_v29  ;;  %v2299_v12 = vand.u32 2147483647, %v2274_v29 }
 0x2a1   : > { %v2302_v36 = vor.u32 1.1754944e-38, %v2301_v14  ;;  %vm2300_vm15 = vcmp.eq.f32.partialorder %v2299_v12, 8.507059e+37 }
 0x2a2   : > { %v2594_v52 = vpop.eup %2593 }
 0x2a3   : > { %v2276_v44 = vmul.f32 %v2594_v52, %v2273_v39  ;;  %vm2281_vm9 = vweird.f32 %v2594_v52 }
 0x2a4   : > { %vm2282_vm12 = vmor %vm2280_vm8, %vm2281_vm9 }
 0x2a5   : > { %v2596_v58 = vpop.eup %2595  ;;  %v2277_v15 = vsub.f32 1.0, %v2276_v44 }
 0x2a6   : > { %v2291_v11 = vmul.f32 %v2596_v58, %v2274_v29  ;;  %vm2296_vm11 = vweird.f32 %v2596_v58 }
 0x2a7   : > { %v2278_v26 = vmul.f32 %v2594_v52, %v2277_v15  ;;  %vm2297_vm14 = vmor %vm2295_vm10, %vm2296_vm11 }
 0x2a8   : > { %v2292_v40 = vsub.f32 1.0, %v2291_v11 }
 0x2a9   : > { %v2279_v0 = vadd.f32 %v2594_v52, %v2278_v26 }
 0x2aa   : > { %v2293_v56 = vmul.f32 %v2596_v58, %v2292_v40 }
 0x2ab   : > { %v2283_v37 = vsel %vm2282_vm12, %v2594_v52, %v2279_v0 }
 0x2ac   : > { %v2294_v19 = vadd.f32 %v2596_v58, %v2293_v56  ;;  %v2288_v55 = vsel %vm2285_vm13, %v2287_v34, %v2283_v37 }
 0x2ad   : > { %v2305_v1 = vmul.f32 %v2288_v55, %v2265_v24 }
 0x2ae   : > { %v2298_v62 = vsel %vm2297_vm14, %v2596_v58, %v2294_v19 }
 0x2af   : > { %v2303_v50 = vsel %vm2300_vm15, %v2302_v36, %v2298_v62  ;;  %2307 = vst.msk [vmem:[%s2922_s29] sm:$0xff] %vm2258_vm7, %v2305_v1 }
 0x2b0   : > { %v2306_v28 = vmul.f32 %v2303_v50, %v2266_v53 }
 0x2b2   : > { %2308 = vst.msk [vmem:[%s2922_s29 + $0x8] sm:$0xff] %vm2258_vm7, %v2306_v28 }
 0x2b3 PF: > { %s2445_s14 = sshll.u32 %s2722_s15, 1  ;;  %s2446_s12 = sshll.u32 %s2726_s16, 5 }
 0x2b4   : > { %s2324_s28 = sshll.u32 %s2922_s29, 4  ;;  %s2321_s8 = sadd.s32 %s2446_s12, %s2445_s14  ;;  %s2325_s28 = int_to_ptr.vmem [resolvable:$true] %s2324_s28 }
 0x2b5   : > { %s2447_s17 = sshll.u32 %s2321_s8, 3  ;;  %s4021_s25 = sand.u32 1, %s2702_s10  }
 0x2b6   : > { %s2323_s26 = scalar_lea.hbm %s3985_s2, %s2447_s17  ;;  %s2310_s0 = scalar_lea.sflag [#allocation4], %s4021_s25 }
 0x2b7   : > { %s2326_s7 = sshll.u32 %s2323_s26, 4  ;;  %s2632_s29 = scalar_lea.hbm %s3985_s2, 512  ;;  %s2327_s7 = int_to_ptr.hbm [resolvable:$true] %s2326_s7 }
 0x2b8   : > { %s2626_s18 = sshra.s32 %s2327_s7, 4  ;;  %s2627_s18 = int_to_ptr.hbm [resolvable:$true] %s2626_s18 }
 0x2b9   : > { %s2628_s23 = scalar_lea.hbm %s2627_s18, 16  ;;  %p2633_p13 = scmp.lt.s32.totalorder %s2627_s18, %s3985_s2 }
 0x2ba   : > { %p2629_p10 = scmp.ne.s32.totalorder %s2627_s18, %s2628_s23  ;;  %p2634_p1 = scmp.lt.s32.totalorder %s2632_s29, %s2628_s23 }
 0x2bc   : > { %p2630_p11 = pnand %p2629_p10, %p2866_p9  ;;  %p2635_p2 = por %p2634_p1, %p2633_p13 }
 0x2be   : > { %p2631_p12 = pneg %p2630_p11 }
 0x2c0   : > { %p2636_p3 = pnand %p2635_p2, %p2631_p12 }
 0x2c2   : > { %2639 = shalt.err (!%p2636_p3)
}
 0x2c3   : > { %s2752_s3 = smov 128   ;;  %s2753_s14 = smov 8  }
 0x2c4   : > { %2458 = dma.vmem_to_hbm [thread:$0]  (%p2866_p9), %s2325_s28, 256, %s2327_s7, %s2310_s0, %s2752_s3, %s2752_s3, %s2753_s14  }
 0x2c5 PF: > { %p2470_p5 = scmp.ge.s32.totalorder %s2742_s20, 2  ;;  %s2341_s12 = sand.u32 1, %s2698_s9  }
 0x2c6   : > { %s2342_s8 = scalar_lea.sflag [#allocation4], %s2341_s12 }
 0x2c7   : > { %p2465_p6 = pnand %p2470_p5, %p2873_p0 }
 0x2c9   : > { %p2466_p7 = pneg %p2465_p6 }
 0x2cb   : > { %2693 = dma.done.wait (%p2466_p7), %s2342_s8, 256  }
 0x2cc   : > { %2695 = vsyncadd (%p2466_p7), %s2342_s8, 4294967040  ;;  %s16_s20 = sadd.s32 1, %s2742_s20   ;;  %s4022_s14 = sld [smem:[#allocation10_spill]] }
 0x2cd   : > { %p13_p4 = scmp.ge.s32.totalorder %s16_s20, 226   ;;  %s4023_s15 = sld [smem:[#allocation11_spill]] }
 0x2ce   : > { %s4024_s17 = sld [smem:[#allocation12_spill]]  ;;  %s4027_s9 = smov %s2702_s10 }
 0x2cf   : > { %s4025_s18 = sld [smem:[#allocation13_spill]]  ;;  %s4028_s10 = smov %s2706_s11 }
 0x2d0   : > { %s4026_s5 = sld [smem:[#allocation14_spill]]  ;;  %s4029_s11 = smov %s2882_s24 }
 0x2d1   : > { %s4030_s12 = smov %s2714_s13  ;;  %s4031_s13 = smov %s2879_s21 }
 0x2d2   : > { %s4032_s16 = smov %s2738_s19  ;;  %15 = sbr.rel (!%p13_p4) target bundleno = 10 (0xa), region = 119 }
 0x2d6   : > { %s4033_s19 = smov %s4026_s5 }
 0x2d7   :  { %2348 = vsyncpa [#allocation4], 1 }
 0x2d8   :  { %2350 = vsyncpa [#allocation4 + $0x1], 1 }
 0x2d9   :  { %2351 = vsyncpa [#allocation5], 1 }
 0x2da   :  { %2353 = vsyncpa [#allocation5 + $0x1], 1 }

</bundles_post_ra>
